<compile_context>
chip_gen: v7x
topology: tpu7x:2x2x1
jax: 0.10.0
libtpu: 0.0.40
codegen_flags: <defaults>
</compile_context>

<pallas_src>
import functools

import jax
import jax.numpy as jnp
from jax.experimental import pallas as pl
from jax.experimental.pallas import tpu as pltpu


_LANE = 128


def _round_up(x, m):
    return (x + m - 1) // m * m


def _vmem_limit_bytes():
    """Gate the scoped-VMEM budget per TPU generation (128 MiB vs 64 MiB chips)."""
    try:
        info = pltpu.get_tpu_info()
        phys = 0
        for attr in ("vmem_capacity_bytes", "vmem_size_bytes", "vmem_bytes"):
            phys = getattr(info, attr, 0) or 0
            if phys:
                break
        if phys >= 100 * 1024 * 1024:        # v5e / v6e: 128 MiB physical VMEM
            return 96 * 1024 * 1024
        if phys > 0:                          # v7x: 64 MiB physical VMEM
            return 44 * 1024 * 1024
    except Exception:
        pass
    return 44 * 1024 * 1024


# -----------------------------------------------------------------------------
# Fused layer kernel: Conv2d(+bias) [+ InstanceNorm2d(affine=False)] [+ LeakyReLU]
# One grid step = one sample x one 128-wide output-channel tile.
# -----------------------------------------------------------------------------
def _conv_layer_kernel(x_ref, w_ref, b_ref, m_ref, o_ref, acc_ref, *,
                       tap_offsets, p_rows, n_valid,
                       do_norm, do_leaky, neg_slope, eps):
    """
    x_ref  : (1, P_in, C_eff)   bf16  flattened (row-major, width = We) input slab
    w_ref  : (T,  C_eff, 128)   bf16  per-tap weights, T = k_eff * k_eff
    b_ref  : (1, 128)           f32   bias (zero on padded channels)
    m_ref  : (P_rows, 1)        f32   1.0 on valid output columns, 0.0 on junk
    o_ref  : (1, P_rows, 128)   bf16 / f32
    acc_ref: (P_rows, 128)      f32   VMEM accumulator
    """
    # Tap-sum convolution: each tap is a contiguous static row-slice of the
    # flattened input slab matmul'd against its (C_eff, 128) weight slice,
    # accumulated in f32 on the MXU.
    for t, off in enumerate(tap_offsets):
        lhs = x_ref[0, off:off + p_rows, :]
        contrib = jnp.dot(lhs, w_ref[t], preferred_element_type=jnp.float32)
        if t == 0:
            acc_ref[...] = contrib
        else:
            acc_ref[...] += contrib

    y = acc_ref[...] + b_ref[...]                        # (P_rows, 128) f32

    if do_norm:
        # InstanceNorm2d(affine=False): per-channel stats over the valid spatial
        # positions only (masked), centered variance (no E[x^2]-E[x]^2
        # cancellation), biased variance + eps=1e-5 like PyTorch.
        m = m_ref[...]                                   # (P_rows, 1)
        inv_n = 1.0 / float(n_valid)
        mean = jnp.sum(y * m, axis=0, keepdims=True) * inv_n
        cen = (y - mean) * m
        var = jnp.sum(cen * cen, axis=0, keepdims=True) * inv_n
        y = (y - mean) * jax.lax.rsqrt(var + eps)

    if do_leaky:
        y = jnp.where(y >= 0, y, neg_slope * y)

    o_ref[0] = y.astype(o_ref.dtype)


# -----------------------------------------------------------------------------
# Host-side prep: pad (+ space-to-depth for stride 2) + flatten + bf16 cast.
# Single 1x relayout of the activation -- no k*k patch materialization.
# -----------------------------------------------------------------------------
def _prep_activation(x, stride, ksize, pad):
    n, h, w, c = x.shape
    ho = (h + 2 * pad - ksize) // stride + 1
    wo = (w + 2 * pad - ksize) // stride + 1
    xp = jnp.pad(x, ((0, 0), (pad, pad), (pad, pad), (0, 0)))
    hp, wp = h + 2 * pad, w + 2 * pad
    if stride == 2:
        assert hp % 2 == 0 and wp % 2 == 0, "stride-2 layers require even H/W"
        he, we = hp // 2, wp // 2
        xs = xp.reshape(n, he, 2, we, 2, c)
        xs = jnp.transpose(xs, (0, 1, 3, 2, 4, 5)).reshape(n, he, we, 4 * c)
        k_eff, c_eff = ksize // 2, 4 * c
    else:
        assert stride == 1
        he, we, xs = hp, wp, xp
        k_eff, c_eff = ksize, c
    p_rows = ho * we            # accumulator rows (junk columns ow >= wo included)
    # Trailing taps of the junk rows read up to k_eff-1 rows past the slab end;
    # pad with zeros so every static slice in the kernel stays in bounds.
    x_flat = xs.reshape(n, he * we, c_eff)
    x_flat = jnp.pad(x_flat, ((0, 0), (0, k_eff - 1), (0, 0))).astype(jnp.bfloat16)
    return x_flat, dict(ho=ho, wo=wo, we=we, k_eff=k_eff, c_eff=c_eff,
                        p_rows=p_rows)


# -----------------------------------------------------------------------------
# Layer wrapper
# -----------------------------------------------------------------------------
def conv_block(x, layer, *, ksize=4, pad=1, neg_slope=0.2, eps=1e-5):
    """x: (N, H, W, C_in) NHWC.  layer: prepacked dict.  Returns NHWC output."""
    n = x.shape[0]
    stride, c_out = layer["stride"], layer["c_out"]
    w_packed, b_packed = layer["w"], layer["b"]      # (T, C_eff, C_pad), (1, C_pad)

    x_flat, g = _prep_activation(x, stride, ksize, pad)
    ho, wo, we = g["ho"], g["wo"], g["we"]
    k_eff, c_eff, p_rows = g["k_eff"], g["c_eff"], g["p_rows"]
    assert w_packed.shape[0] == k_eff * k_eff and w_packed.shape[1] == c_eff

    p_in = x_flat.shape[1]
    c_pad = w_packed.shape[2]
    n_ct = c_pad // _LANE
    tap_offsets = tuple(qh * we + qw for qh in range(k_eff) for qw in range(k_eff))

    # 1.0 on output columns < Wo (valid), 0.0 on the We-Wo junk columns that
    # exist because the conv is evaluated over the full flattened input width.
    mask = ((jnp.arange(p_rows) % we) < wo).astype(jnp.float32).reshape(p_rows, 1)

    kernel = functools.partial(
        _conv_layer_kernel, tap_offsets=tap_offsets, p_rows=p_rows,
        n_valid=ho * wo, do_norm=layer["norm"], do_leaky=layer["leaky"],
        neg_slope=neg_slope, eps=eps)

    x_spec = pl.BlockSpec((1, p_in, c_eff), lambda i, j: (i, 0, 0))
    if n_ct == 1:
        # Constant index maps -> single-buffered (no pointless 2x VMEM copies).
        w_spec = pl.BlockSpec((k_eff * k_eff, c_eff, _LANE), lambda i, j: (0, 0, 0),
                              pipeline_mode=pl.Buffered(1))
        b_spec = pl.BlockSpec((1, _LANE), lambda i, j: (0, 0),
                              pipeline_mode=pl.Buffered(1))
    else:
        w_spec = pl.BlockSpec((k_eff * k_eff, c_eff, _LANE), lambda i, j: (0, 0, j))
        b_spec = pl.BlockSpec((1, _LANE), lambda i, j: (0, j))
    m_spec = pl.BlockSpec((p_rows, 1), lambda i, j: (0, 0),
                          pipeline_mode=pl.Buffered(1))
    o_spec = pl.BlockSpec((1, p_rows, _LANE), lambda i, j: (i, 0, j))

    y = pl.pallas_call(
        kernel,
        out_shape=jax.ShapeDtypeStruct((n, p_rows, c_pad), layer["out_dtype"]),
        grid=(n, n_ct),
        in_specs=[x_spec, w_spec, b_spec, m_spec],
        out_specs=o_spec,
        scratch_shapes=[pltpu.VMEM((p_rows, _LANE), jnp.float32)],
        compiler_params=pltpu.CompilerParams(
            dimension_semantics=("parallel", "parallel"),
            vmem_limit_bytes=_vmem_limit_bytes()),
    )(x_flat, w_packed, b_packed, mask)

    # Strip junk columns / padded channels; stay NHWC for the next layer.
    return y.reshape(n, ho, we, c_pad)[:, :, :wo, :c_out]


# -----------------------------------------------------------------------------
# Model glue
# -----------------------------------------------------------------------------
def init_discriminator_params(key, in_channels, num_filters, num_layers):
    """Deterministic synthetic parameters matching the PyTorch layer shapes."""
    # (c_in, c_out, stride, instance_norm, leaky_relu)
    cfg = [(in_channels, num_filters, 2, False, True)]
    mult = 1
    for i in range(1, num_layers):
        prev_mult, mult = mult, min(2 ** i, 8)
        cfg.append((num_filters * prev_mult, num_filters * mult, 2, True, True))
    prev_mult, mult = mult, min(2 ** num_layers, 8)
    cfg.append((num_filters * prev_mult, num_filters * mult, 1, True, True))
    cfg.append((num_filters * mult, 1, 1, False, False))

    params = []
    for (cin, cout, stride, norm, leaky) in cfg:
        key, kw, kb = jax.random.split(key, 3)
        w = jax.random.normal(kw, (cout, cin, 4, 4), jnp.float32) * 0.05
        b = jax.random.normal(kb, (cout,), jnp.float32) * 0.01
        params.append(dict(w=w, b=b, stride=stride, norm=norm, leaky=leaky))
    return params


def prepack_params(params, *, ksize=4):
    """One-time weight/bias prepack: OIHW -> per-tap (T, C_eff, C_pad) bf16 plus
    (1, C_pad) f32 bias, matching the kernel's space-to-depth tap layout."""
    packed = []
    n_layers = len(params)
    for li, layer in enumerate(params):
        w, b, stride = layer["w"], layer["b"], layer["stride"]
        c_out, c_in = w.shape[0], w.shape[1]
        wt = jnp.transpose(w, (2, 3, 1, 0))                     # (kh, kw, ci, co)
        if stride == 2:
            k_eff = ksize // 2
            wt = wt.reshape(k_eff, 2, k_eff, 2, c_in, c_out)    # (qh, rh, qw, rw, ci, co)
            wt = jnp.transpose(wt, (0, 2, 1, 3, 4, 5))          # (qh, qw, rh, rw, ci, co)
            c_eff = 4 * c_in
        else:
            k_eff, c_eff = ksize, c_in
        wt = wt.reshape(k_eff * k_eff, c_eff, c_out)
        c_pad = _round_up(c_out, _LANE)
        wt = jnp.pad(wt, ((0, 0), (0, 0), (0, c_pad - c_out))).astype(jnp.bfloat16)
        bt = jnp.pad(b.astype(jnp.float32), (0, c_pad - c_out)).reshape(1, c_pad)
        packed.append(dict(
            w=wt, b=bt, stride=stride, norm=layer["norm"], leaky=layer["leaky"],
            c_out=c_out,
            out_dtype=jnp.float32 if li == n_layers - 1 else jnp.bfloat16))
    return packed


def discriminator_forward(x_nchw, packed_params):
    x = jnp.transpose(x_nchw, (0, 2, 3, 1))     # NCHW -> NHWC, once
    for layer in packed_params:
        x = conv_block(x, layer)
    return jnp.transpose(x, (0, 3, 1, 2))       # NHWC -> NCHW, once (already f32)


if __name__ == "__main__":
    key = jax.random.PRNGKey(0)
    kx, kp = jax.random.split(key)

    in_channels, num_filters, num_layers = 4, 8, 2
    x = jax.random.normal(kx, (2, in_channels, 16, 16), jnp.float32)  # NCHW

    params = init_discriminator_params(kp, in_channels, num_filters, num_layers)
    packed = prepack_params(params)            # one-time weight/bias prepack

    fwd = jax.jit(lambda inp: discriminator_forward(inp, packed))
    out = fwd(x)
    jax.block_until_ready(out)

    # 16 -> 8 (s2) -> 4 (s2) -> 3 (s1,k4,p1) -> 2 (s1,k4,p1), 1 output channel
    assert out.shape == (2, 1, 2, 2), out.shape
    assert out.dtype == jnp.float32
    assert bool(jnp.all(jnp.isfinite(out)))
    print("KERNEL_OK")
</pallas_src>

<mosaic_0001>
module attributes {stable_mosaic.version = 11 : i64} {
  func.func @_conv_layer_kernel(%arg0: i32, %arg1: i32, %arg2: memref<1x82x16xbf16, #tpu.memory_space<vmem>>, %arg3: memref<4x16x128xbf16, #tpu.memory_space<vmem>>, %arg4: memref<1x128xf32, #tpu.memory_space<vmem>>, %arg5: memref<72x1xf32, #tpu.memory_space<vmem>>, %arg6: memref<1x72x128xbf16, #tpu.memory_space<vmem>>, %arg7: memref<72x128xf32, #tpu.memory_space<vmem>>) attributes {dimension_semantics = [#tpu.dimension_semantics<parallel>, #tpu.dimension_semantics<parallel>], iteration_bounds = array<i64: 2, 1>, scalar_prefetch = 0 : i64, scratch_operands = 1 : i64, tpu.core_type = #tpu.core_type<tc>, window_params = [{transform_indices = @transform_0, window_bounds = array<i64: 1, 82, 16>}, {pipeline_mode = #tpu.pipeline_mode<synchronous>, transform_indices = @transform_1, window_bounds = array<i64: 4, 16, 128>}, {pipeline_mode = #tpu.pipeline_mode<synchronous>, transform_indices = @transform_2, window_bounds = array<i64: 1, 128>}, {pipeline_mode = #tpu.pipeline_mode<synchronous>, transform_indices = @transform_3, window_bounds = array<i64: 72, 1>}, {transform_indices = @transform_4, window_bounds = array<i64: 1, 72, 128>}]} {
    %c0 = arith.constant 0 : index
    %c0_0 = arith.constant 0 : index
    %c0_1 = arith.constant 0 : index
    %0 = vector.load %arg2[%c0, %c0_0, %c0_1] : memref<1x82x16xbf16, #tpu.memory_space<vmem>>, vector<1x72x16xbf16>
    %1 = vector.shape_cast %0 : vector<1x72x16xbf16> to vector<72x16xbf16>
    %c0_2 = arith.constant 0 : index
    %c0_3 = arith.constant 0 : index
    %c0_4 = arith.constant 0 : index
    %2 = vector.load %arg3[%c0_2, %c0_3, %c0_4] : memref<4x16x128xbf16, #tpu.memory_space<vmem>>, vector<1x16x128xbf16>
    %3 = vector.shape_cast %2 : vector<1x16x128xbf16> to vector<16x128xbf16>
    %cst = arith.constant dense<0.000000e+00> : vector<72x128xf32>
    %4 = tpu.matmul %1, %3, %cst {dimension_numbers = #tpu.dot_dimension_numbers<[1], [0], [0], [1], [0, 0, 1, 1], [], []>} : vector<72x16xbf16>, vector<16x128xbf16>, vector<72x128xf32> -> vector<72x128xf32>
    %c0_5 = arith.constant 0 : index
    %c0_6 = arith.constant 0 : index
    %5 = vector.load %arg7[%c0_5, %c0_6] : memref<72x128xf32, #tpu.memory_space<vmem>>, vector<72x128xf32>
    tpu.vector_store %arg7[%c0_5, %c0_6], %4 {strides = array<i32>} : memref<72x128xf32, #tpu.memory_space<vmem>>, vector<72x128xf32>,
    %c0_7 = arith.constant 0 : index
    %c1 = arith.constant 1 : index
    %c0_8 = arith.constant 0 : index
    %6 = vector.load %arg2[%c0_7, %c1, %c0_8] : memref<1x82x16xbf16, #tpu.memory_space<vmem>>, vector<1x72x16xbf16>
    %7 = vector.shape_cast %6 : vector<1x72x16xbf16> to vector<72x16xbf16>
    %c1_9 = arith.constant 1 : index
    %c0_10 = arith.constant 0 : index
    %c0_11 = arith.constant 0 : index
    %8 = vector.load %arg3[%c1_9, %c0_10, %c0_11] : memref<4x16x128xbf16, #tpu.memory_space<vmem>>, vector<1x16x128xbf16>
    %9 = vector.shape_cast %8 : vector<1x16x128xbf16> to vector<16x128xbf16>
    %cst_12 = arith.constant dense<0.000000e+00> : vector<72x128xf32>
    %10 = tpu.matmul %7, %9, %cst_12 {dimension_numbers = #tpu.dot_dimension_numbers<[1], [0], [0], [1], [0, 0, 1, 1], [], []>} : vector<72x16xbf16>, vector<16x128xbf16>, vector<72x128xf32> -> vector<72x128xf32>
    %c0_13 = arith.constant 0 : index
    %c0_14 = arith.constant 0 : index
    %11 = vector.load %arg7[%c0_13, %c0_14] : memref<72x128xf32, #tpu.memory_space<vmem>>, vector<72x128xf32>
    %12 = arith.addf %11, %10 : vector<72x128xf32>
    %c0_15 = arith.constant 0 : index
    %c0_16 = arith.constant 0 : index
    %13 = vector.load %arg7[%c0_15, %c0_16] : memref<72x128xf32, #tpu.memory_space<vmem>>, vector<72x128xf32>
    tpu.vector_store %arg7[%c0_15, %c0_16], %12 {strides = array<i32>} : memref<72x128xf32, #tpu.memory_space<vmem>>, vector<72x128xf32>,
    %c0_17 = arith.constant 0 : index
    %c9 = arith.constant 9 : index
    %c0_18 = arith.constant 0 : index
    %14 = vector.load %arg2[%c0_17, %c9, %c0_18] : memref<1x82x16xbf16, #tpu.memory_space<vmem>>, vector<1x72x16xbf16>
    %15 = vector.shape_cast %14 : vector<1x72x16xbf16> to vector<72x16xbf16>
    %c2 = arith.constant 2 : index
    %c0_19 = arith.constant 0 : index
    %c0_20 = arith.constant 0 : index
    %16 = vector.load %arg3[%c2, %c0_19, %c0_20] : memref<4x16x128xbf16, #tpu.memory_space<vmem>>, vector<1x16x128xbf16>
    %17 = vector.shape_cast %16 : vector<1x16x128xbf16> to vector<16x128xbf16>
    %cst_21 = arith.constant dense<0.000000e+00> : vector<72x128xf32>
    %18 = tpu.matmul %15, %17, %cst_21 {dimension_numbers = #tpu.dot_dimension_numbers<[1], [0], [0], [1], [0, 0, 1, 1], [], []>} : vector<72x16xbf16>, vector<16x128xbf16>, vector<72x128xf32> -> vector<72x128xf32>
    %c0_22 = arith.constant 0 : index
    %c0_23 = arith.constant 0 : index
    %19 = vector.load %arg7[%c0_22, %c0_23] : memref<72x128xf32, #tpu.memory_space<vmem>>, vector<72x128xf32>
    %20 = arith.addf %19, %18 : vector<72x128xf32>
    %c0_24 = arith.constant 0 : index
    %c0_25 = arith.constant 0 : index
    %21 = vector.load %arg7[%c0_24, %c0_25] : memref<72x128xf32, #tpu.memory_space<vmem>>, vector<72x128xf32>
    tpu.vector_store %arg7[%c0_24, %c0_25], %20 {strides = array<i32>} : memref<72x128xf32, #tpu.memory_space<vmem>>, vector<72x128xf32>,
    %c0_26 = arith.constant 0 : index
    %c10 = arith.constant 10 : index
    %c0_27 = arith.constant 0 : index
    %22 = vector.load %arg2[%c0_26, %c10, %c0_27] : memref<1x82x16xbf16, #tpu.memory_space<vmem>>, vector<1x72x16xbf16>
    %23 = vector.shape_cast %22 : vector<1x72x16xbf16> to vector<72x16xbf16>
    %c3 = arith.constant 3 : index
    %c0_28 = arith.constant 0 : index
    %c0_29 = arith.constant 0 : index
    %24 = vector.load %arg3[%c3, %c0_28, %c0_29] : memref<4x16x128xbf16, #tpu.memory_space<vmem>>, vector<1x16x128xbf16>
    %25 = vector.shape_cast %24 : vector<1x16x128xbf16> to vector<16x128xbf16>
    %cst_30 = arith.constant dense<0.000000e+00> : vector<72x128xf32>
    %26 = tpu.matmul %23, %25, %cst_30 {dimension_numbers = #tpu.dot_dimension_numbers<[1], [0], [0], [1], [0, 0, 1, 1], [], []>} : vector<72x16xbf16>, vector<16x128xbf16>, vector<72x128xf32> -> vector<72x128xf32>
    %c0_31 = arith.constant 0 : index
    %c0_32 = arith.constant 0 : index
    %27 = vector.load %arg7[%c0_31, %c0_32] : memref<72x128xf32, #tpu.memory_space<vmem>>, vector<72x128xf32>
    %28 = arith.addf %27, %26 : vector<72x128xf32>
    %c0_33 = arith.constant 0 : index
    %c0_34 = arith.constant 0 : index
    %29 = vector.load %arg7[%c0_33, %c0_34] : memref<72x128xf32, #tpu.memory_space<vmem>>, vector<72x128xf32>
    tpu.vector_store %arg7[%c0_33, %c0_34], %28 {strides = array<i32>} : memref<72x128xf32, #tpu.memory_space<vmem>>, vector<72x128xf32>,
    %c0_35 = arith.constant 0 : index
    %c0_36 = arith.constant 0 : index
    %30 = vector.load %arg7[%c0_35, %c0_36] : memref<72x128xf32, #tpu.memory_space<vmem>>, vector<72x128xf32>
    %c0_37 = arith.constant 0 : index
    %c0_38 = arith.constant 0 : index
    %31 = vector.load %arg4[%c0_37, %c0_38] : memref<1x128xf32, #tpu.memory_space<vmem>>, vector<1x128xf32>
    %32 = vector.broadcast %31 : vector<1x128xf32> to vector<72x128xf32>
    %33 = arith.addf %30, %32 : vector<72x128xf32>
    %cst_39 = arith.constant 0.000000e+00 : f32
    %34 = vector.broadcast %cst_39 : f32 to vector<72x128xf32>
    %35 = arith.cmpf oge, %33, %34 : vector<72x128xf32>
    %cst_40 = arith.constant 2.000000e-01 : f32
    %36 = vector.broadcast %cst_40 : f32 to vector<72x128xf32>
    %37 = arith.mulf %36, %33 : vector<72x128xf32>
    %38 = arith.select %35, %33, %37 : vector<72x128xi1>, vector<72x128xf32>
    %39 = arith.truncf %38 : vector<72x128xf32> to vector<72x128xbf16>
    %c0_41 = arith.constant 0 : index
    %c0_42 = arith.constant 0 : index
    %c0_43 = arith.constant 0 : index
    %40 = vector.load %arg6[%c0_41, %c0_42, %c0_43] : memref<1x72x128xbf16, #tpu.memory_space<vmem>>, vector<1x72x128xbf16>
    %41 = vector.shape_cast %40 : vector<1x72x128xbf16> to vector<72x128xbf16>
    %42 = vector.shape_cast %39 : vector<72x128xbf16> to vector<1x72x128xbf16>
    tpu.vector_store %arg6[%c0_41, %c0_42, %c0_43], %42 {strides = array<i32>} : memref<1x72x128xbf16, #tpu.memory_space<vmem>>, vector<1x72x128xbf16>,
    return
  }
  func.func @transform_0(%arg0: i32, %arg1: i32) -> (i32, i32, i32) {
    %c0_i32 = arith.constant 0 : i32
    %c0_i32_0 = arith.constant 0 : i32
    %c0_i32_1 = arith.constant 0 : i32
    return %arg0, %c0_i32, %c0_i32_0 : i32, i32, i32
  }
  func.func @transform_1(%arg0: i32, %arg1: i32) -> (i32, i32, i32) {
    %c0_i32 = arith.constant 0 : i32
    %c0_i32_0 = arith.constant 0 : i32
    %c0_i32_1 = arith.constant 0 : i32
    %c0_i32_2 = arith.constant 0 : i32
    return %c0_i32, %c0_i32_0, %c0_i32_1 : i32, i32, i32
  }
  func.func @transform_2(%arg0: i32, %arg1: i32) -> (i32, i32) {
    %c0_i32 = arith.constant 0 : i32
    %c0_i32_0 = arith.constant 0 : i32
    %c0_i32_1 = arith.constant 0 : i32
    return %c0_i32, %c0_i32_0 : i32, i32
  }
  func.func @transform_3(%arg0: i32, %arg1: i32) -> (i32, i32) {
    %c0_i32 = arith.constant 0 : i32
    %c0_i32_0 = arith.constant 0 : i32
    %c0_i32_1 = arith.constant 0 : i32
    return %c0_i32, %c0_i32_0 : i32, i32
  }
  func.func @transform_4(%arg0: i32, %arg1: i32) -> (i32, i32, i32) {
    %c0_i32 = arith.constant 0 : i32
    %c0_i32_0 = arith.constant 0 : i32
    return %arg0, %c0_i32, %arg1 : i32, i32, i32
  }
}

module attributes {stable_mosaic.version = 11 : i64} {
  func.func @_conv_layer_kernel(%arg0: i32, %arg1: i32, %arg2: memref<1x26x32xbf16, #tpu.memory_space<vmem>>, %arg3: memref<4x32x128xbf16, #tpu.memory_space<vmem>>, %arg4: memref<1x128xf32, #tpu.memory_space<vmem>>, %arg5: memref<20x1xf32, #tpu.memory_space<vmem>>, %arg6: memref<1x20x128xbf16, #tpu.memory_space<vmem>>, %arg7: memref<20x128xf32, #tpu.memory_space<vmem>>) attributes {dimension_semantics = [#tpu.dimension_semantics<parallel>, #tpu.dimension_semantics<parallel>], iteration_bounds = array<i64: 2, 1>, scalar_prefetch = 0 : i64, scratch_operands = 1 : i64, tpu.core_type = #tpu.core_type<tc>, window_params = [{transform_indices = @transform_0, window_bounds = array<i64: 1, 26, 32>}, {pipeline_mode = #tpu.pipeline_mode<synchronous>, transform_indices = @transform_1, window_bounds = array<i64: 4, 32, 128>}, {pipeline_mode = #tpu.pipeline_mode<synchronous>, transform_indices = @transform_2, window_bounds = array<i64: 1, 128>}, {pipeline_mode = #tpu.pipeline_mode<synchronous>, transform_indices = @transform_3, window_bounds = array<i64: 20, 1>}, {transform_indices = @transform_4, window_bounds = array<i64: 1, 20, 128>}]} {
    %c0 = arith.constant 0 : index
    %c0_0 = arith.constant 0 : index
    %c0_1 = arith.constant 0 : index
    %0 = vector.load %arg2[%c0, %c0_0, %c0_1] : memref<1x26x32xbf16, #tpu.memory_space<vmem>>, vector<1x20x32xbf16>
    %1 = vector.shape_cast %0 : vector<1x20x32xbf16> to vector<20x32xbf16>
    %c0_2 = arith.constant 0 : index
    %c0_3 = arith.constant 0 : index
    %c0_4 = arith.constant 0 : index
    %2 = vector.load %arg3[%c0_2, %c0_3, %c0_4] : memref<4x32x128xbf16, #tpu.memory_space<vmem>>, vector<1x32x128xbf16>
    %3 = vector.shape_cast %2 : vector<1x32x128xbf16> to vector<32x128xbf16>
    %cst = arith.constant dense<0.000000e+00> : vector<20x128xf32>
    %4 = tpu.matmul %1, %3, %cst {dimension_numbers = #tpu.dot_dimension_numbers<[1], [0], [0], [1], [0, 0, 1, 1], [], []>} : vector<20x32xbf16>, vector<32x128xbf16>, vector<20x128xf32> -> vector<20x128xf32>
    %c0_5 = arith.constant 0 : index
    %c0_6 = arith.constant 0 : index
    %5 = vector.load %arg7[%c0_5, %c0_6] : memref<20x128xf32, #tpu.memory_space<vmem>>, vector<20x128xf32>
    tpu.vector_store %arg7[%c0_5, %c0_6], %4 {strides = array<i32>} : memref<20x128xf32, #tpu.memory_space<vmem>>, vector<20x128xf32>,
    %c0_7 = arith.constant 0 : index
    %c1 = arith.constant 1 : index
    %c0_8 = arith.constant 0 : index
    %6 = vector.load %arg2[%c0_7, %c1, %c0_8] : memref<1x26x32xbf16, #tpu.memory_space<vmem>>, vector<1x20x32xbf16>
    %7 = vector.shape_cast %6 : vector<1x20x32xbf16> to vector<20x32xbf16>
    %c1_9 = arith.constant 1 : index
    %c0_10 = arith.constant 0 : index
    %c0_11 = arith.constant 0 : index
    %8 = vector.load %arg3[%c1_9, %c0_10, %c0_11] : memref<4x32x128xbf16, #tpu.memory_space<vmem>>, vector<1x32x128xbf16>
    %9 = vector.shape_cast %8 : vector<1x32x128xbf16> to vector<32x128xbf16>
    %cst_12 = arith.constant dense<0.000000e+00> : vector<20x128xf32>
    %10 = tpu.matmul %7, %9, %cst_12 {dimension_numbers = #tpu.dot_dimension_numbers<[1], [0], [0], [1], [0, 0, 1, 1], [], []>} : vector<20x32xbf16>, vector<32x128xbf16>, vector<20x128xf32> -> vector<20x128xf32>
    %c0_13 = arith.constant 0 : index
    %c0_14 = arith.constant 0 : index
    %11 = vector.load %arg7[%c0_13, %c0_14] : memref<20x128xf32, #tpu.memory_space<vmem>>, vector<20x128xf32>
    %12 = arith.addf %11, %10 : vector<20x128xf32>
    %c0_15 = arith.constant 0 : index
    %c0_16 = arith.constant 0 : index
    %13 = vector.load %arg7[%c0_15, %c0_16] : memref<20x128xf32, #tpu.memory_space<vmem>>, vector<20x128xf32>
    tpu.vector_store %arg7[%c0_15, %c0_16], %12 {strides = array<i32>} : memref<20x128xf32, #tpu.memory_space<vmem>>, vector<20x128xf32>,
    %c0_17 = arith.constant 0 : index
    %c5 = arith.constant 5 : index
    %c0_18 = arith.constant 0 : index
    %14 = vector.load %arg2[%c0_17, %c5, %c0_18] : memref<1x26x32xbf16, #tpu.memory_space<vmem>>, vector<1x20x32xbf16>
    %15 = vector.shape_cast %14 : vector<1x20x32xbf16> to vector<20x32xbf16>
    %c2 = arith.constant 2 : index
    %c0_19 = arith.constant 0 : index
    %c0_20 = arith.constant 0 : index
    %16 = vector.load %arg3[%c2, %c0_19, %c0_20] : memref<4x32x128xbf16, #tpu.memory_space<vmem>>, vector<1x32x128xbf16>
    %17 = vector.shape_cast %16 : vector<1x32x128xbf16> to vector<32x128xbf16>
    %cst_21 = arith.constant dense<0.000000e+00> : vector<20x128xf32>
    %18 = tpu.matmul %15, %17, %cst_21 {dimension_numbers = #tpu.dot_dimension_numbers<[1], [0], [0], [1], [0, 0, 1, 1], [], []>} : vector<20x32xbf16>, vector<32x128xbf16>, vector<20x128xf32> -> vector<20x128xf32>
    %c0_22 = arith.constant 0 : index
    %c0_23 = arith.constant 0 : index
    %19 = vector.load %arg7[%c0_22, %c0_23] : memref<20x128xf32, #tpu.memory_space<vmem>>, vector<20x128xf32>
    %20 = arith.addf %19, %18 : vector<20x128xf32>
    %c0_24 = arith.constant 0 : index
    %c0_25 = arith.constant 0 : index
    %21 = vector.load %arg7[%c0_24, %c0_25] : memref<20x128xf32, #tpu.memory_space<vmem>>, vector<20x128xf32>
    tpu.vector_store %arg7[%c0_24, %c0_25], %20 {strides = array<i32>} : memref<20x128xf32, #tpu.memory_space<vmem>>, vector<20x128xf32>,
    %c0_26 = arith.constant 0 : index
    %c6 = arith.constant 6 : index
    %c0_27 = arith.constant 0 : index
    %22 = vector.load %arg2[%c0_26, %c6, %c0_27] : memref<1x26x32xbf16, #tpu.memory_space<vmem>>, vector<1x20x32xbf16>
    %23 = vector.shape_cast %22 : vector<1x20x32xbf16> to vector<20x32xbf16>
    %c3 = arith.constant 3 : index
    %c0_28 = arith.constant 0 : index
    %c0_29 = arith.constant 0 : index
    %24 = vector.load %arg3[%c3, %c0_28, %c0_29] : memref<4x32x128xbf16, #tpu.memory_space<vmem>>, vector<1x32x128xbf16>
    %25 = vector.shape_cast %24 : vector<1x32x128xbf16> to vector<32x128xbf16>
    %cst_30 = arith.constant dense<0.000000e+00> : vector<20x128xf32>
    %26 = tpu.matmul %23, %25, %cst_30 {dimension_numbers = #tpu.dot_dimension_numbers<[1], [0], [0], [1], [0, 0, 1, 1], [], []>} : vector<20x32xbf16>, vector<32x128xbf16>, vector<20x128xf32> -> vector<20x128xf32>
    %c0_31 = arith.constant 0 : index
    %c0_32 = arith.constant 0 : index
    %27 = vector.load %arg7[%c0_31, %c0_32] : memref<20x128xf32, #tpu.memory_space<vmem>>, vector<20x128xf32>
    %28 = arith.addf %27, %26 : vector<20x128xf32>
    %c0_33 = arith.constant 0 : index
    %c0_34 = arith.constant 0 : index
    %29 = vector.load %arg7[%c0_33, %c0_34] : memref<20x128xf32, #tpu.memory_space<vmem>>, vector<20x128xf32>
    tpu.vector_store %arg7[%c0_33, %c0_34], %28 {strides = array<i32>} : memref<20x128xf32, #tpu.memory_space<vmem>>, vector<20x128xf32>,
    %c0_35 = arith.constant 0 : index
    %c0_36 = arith.constant 0 : index
    %30 = vector.load %arg7[%c0_35, %c0_36] : memref<20x128xf32, #tpu.memory_space<vmem>>, vector<20x128xf32>
    %c0_37 = arith.constant 0 : index
    %c0_38 = arith.constant 0 : index
    %31 = vector.load %arg4[%c0_37, %c0_38] : memref<1x128xf32, #tpu.memory_space<vmem>>, vector<1x128xf32>
    %32 = vector.broadcast %31 : vector<1x128xf32> to vector<20x128xf32>
    %33 = arith.addf %30, %32 : vector<20x128xf32>
    %c0_39 = arith.constant 0 : index
    %c0_40 = arith.constant 0 : index
    %34 = vector.load %arg5[%c0_39, %c0_40] : memref<20x1xf32, #tpu.memory_space<vmem>>, vector<20x1xf32>
    %35 = vector.broadcast %34 : vector<20x1xf32> to vector<20x128xf32>
    %36 = arith.mulf %33, %35 : vector<20x128xf32>
    %cst_41 = arith.constant dense<0.000000e+00> : vector<128xf32>
    %37 = vector.multi_reduction <add>, %36, %cst_41 [0] : vector<20x128xf32> to vector<128xf32>
    %38 = vector.shape_cast %37 : vector<128xf32> to vector<1x128xf32>
    %cst_42 = arith.constant 6.250000e-02 : f32
    %39 = vector.broadcast %cst_42 : f32 to vector<1x128xf32>
    %40 = arith.mulf %38, %39 : vector<1x128xf32>
    %41 = vector.broadcast %40 : vector<1x128xf32> to vector<20x128xf32>
    %42 = arith.subf %33, %41 : vector<20x128xf32>
    %43 = vector.broadcast %34 : vector<20x1xf32> to vector<20x128xf32>
    %44 = arith.mulf %42, %43 : vector<20x128xf32>
    %45 = arith.mulf %44, %44 : vector<20x128xf32>
    %cst_43 = arith.constant dense<0.000000e+00> : vector<128xf32>
    %46 = vector.multi_reduction <add>, %45, %cst_43 [0] : vector<20x128xf32> to vector<128xf32>
    %47 = vector.shape_cast %46 : vector<128xf32> to vector<1x128xf32>
    %cst_44 = arith.constant 6.250000e-02 : f32
    %48 = vector.broadcast %cst_44 : f32 to vector<1x128xf32>
    %49 = arith.mulf %47, %48 : vector<1x128xf32>
    %50 = vector.broadcast %40 : vector<1x128xf32> to vector<20x128xf32>
    %51 = arith.subf %33, %50 : vector<20x128xf32>
    %cst_45 = arith.constant 9.99999974E-6 : f32
    %52 = vector.broadcast %cst_45 : f32 to vector<1x128xf32>
    %53 = arith.addf %49, %52 : vector<1x128xf32>
    %54 = math.rsqrt %53 : vector<1x128xf32>
    %55 = vector.broadcast %54 : vector<1x128xf32> to vector<20x128xf32>
    %56 = arith.mulf %51, %55 : vector<20x128xf32>
    %cst_46 = arith.constant 0.000000e+00 : f32
    %57 = vector.broadcast %cst_46 : f32 to vector<20x128xf32>
    %58 = arith.cmpf oge, %56, %57 : vector<20x128xf32>
    %cst_47 = arith.constant 2.000000e-01 : f32
    %59 = vector.broadcast %cst_47 : f32 to vector<20x128xf32>
    %60 = arith.mulf %59, %56 : vector<20x128xf32>
    %61 = arith.select %58, %56, %60 : vector<20x128xi1>, vector<20x128xf32>
    %62 = arith.truncf %61 : vector<20x128xf32> to vector<20x128xbf16>
    %c0_48 = arith.constant 0 : index
    %c0_49 = arith.constant 0 : index
    %c0_50 = arith.constant 0 : index
    %63 = vector.load %arg6[%c0_48, %c0_49, %c0_50] : memref<1x20x128xbf16, #tpu.memory_space<vmem>>, vector<1x20x128xbf16>
    %64 = vector.shape_cast %63 : vector<1x20x128xbf16> to vector<20x128xbf16>
    %65 = vector.shape_cast %62 : vector<20x128xbf16> to vector<1x20x128xbf16>
    tpu.vector_store %arg6[%c0_48, %c0_49, %c0_50], %65 {strides = array<i32>} : memref<1x20x128xbf16, #tpu.memory_space<vmem>>, vector<1x20x128xbf16>,
    return
  }
  func.func @transform_0(%arg0: i32, %arg1: i32) -> (i32, i32, i32) {
    %c0_i32 = arith.constant 0 : i32
    %c0_i32_0 = arith.constant 0 : i32
    %c0_i32_1 = arith.constant 0 : i32
    return %arg0, %c0_i32, %c0_i32_0 : i32, i32, i32
  }
  func.func @transform_1(%arg0: i32, %arg1: i32) -> (i32, i32, i32) {
    %c0_i32 = arith.constant 0 : i32
    %c0_i32_0 = arith.constant 0 : i32
    %c0_i32_1 = arith.constant 0 : i32
    %c0_i32_2 = arith.constant 0 : i32
    return %c0_i32, %c0_i32_0, %c0_i32_1 : i32, i32, i32
  }
  func.func @transform_2(%arg0: i32, %arg1: i32) -> (i32, i32) {
    %c0_i32 = arith.constant 0 : i32
    %c0_i32_0 = arith.constant 0 : i32
    %c0_i32_1 = arith.constant 0 : i32
    return %c0_i32, %c0_i32_0 : i32, i32
  }
  func.func @transform_3(%arg0: i32, %arg1: i32) -> (i32, i32) {
    %c0_i32 = arith.constant 0 : i32
    %c0_i32_0 = arith.constant 0 : i32
    %c0_i32_1 = arith.constant 0 : i32
    return %c0_i32, %c0_i32_0 : i32, i32
  }
  func.func @transform_4(%arg0: i32, %arg1: i32) -> (i32, i32, i32) {
    %c0_i32 = arith.constant 0 : i32
    %c0_i32_0 = arith.constant 0 : i32
    return %arg0, %c0_i32, %arg1 : i32, i32, i32
  }
}

module attributes {stable_mosaic.version = 11 : i64} {
  func.func @_conv_layer_kernel(%arg0: i32, %arg1: i32, %arg2: memref<1x39x16xbf16, #tpu.memory_space<vmem>>, %arg3: memref<16x16x128xbf16, #tpu.memory_space<vmem>>, %arg4: memref<1x128xf32, #tpu.memory_space<vmem>>, %arg5: memref<18x1xf32, #tpu.memory_space<vmem>>, %arg6: memref<1x18x128xbf16, #tpu.memory_space<vmem>>, %arg7: memref<18x128xf32, #tpu.memory_space<vmem>>) attributes {dimension_semantics = [#tpu.dimension_semantics<parallel>, #tpu.dimension_semantics<parallel>], iteration_bounds = array<i64: 2, 1>, scalar_prefetch = 0 : i64, scratch_operands = 1 : i64, tpu.core_type = #tpu.core_type<tc>, window_params = [{transform_indices = @transform_0, window_bounds = array<i64: 1, 39, 16>}, {pipeline_mode = #tpu.pipeline_mode<synchronous>, transform_indices = @transform_1, window_bounds = array<i64: 16, 16, 128>}, {pipeline_mode = #tpu.pipeline_mode<synchronous>, transform_indices = @transform_2, window_bounds = array<i64: 1, 128>}, {pipeline_mode = #tpu.pipeline_mode<synchronous>, transform_indices = @transform_3, window_bounds = array<i64: 18, 1>}, {transform_indices = @transform_4, window_bounds = array<i64: 1, 18, 128>}]} {
    %c0 = arith.constant 0 : index
    %c0_0 = arith.constant 0 : index
    %c0_1 = arith.constant 0 : index
    %0 = vector.load %arg2[%c0, %c0_0, %c0_1] : memref<1x39x16xbf16, #tpu.memory_space<vmem>>, vector<1x18x16xbf16>
    %1 = vector.shape_cast %0 : vector<1x18x16xbf16> to vector<18x16xbf16>
    %c0_2 = arith.constant 0 : index
    %c0_3 = arith.constant 0 : index
    %c0_4 = arith.constant 0 : index
    %2 = vector.load %arg3[%c0_2, %c0_3, %c0_4] : memref<16x16x128xbf16, #tpu.memory_space<vmem>>, vector<1x16x128xbf16>
    %3 = vector.shape_cast %2 : vector<1x16x128xbf16> to vector<16x128xbf16>
    %cst = arith.constant dense<0.000000e+00> : vector<18x128xf32>
    %4 = tpu.matmul %1, %3, %cst {dimension_numbers = #tpu.dot_dimension_numbers<[1], [0], [0], [1], [0, 0, 1, 1], [], []>} : vector<18x16xbf16>, vector<16x128xbf16>, vector<18x128xf32> -> vector<18x128xf32>
    %c0_5 = arith.constant 0 : index
    %c0_6 = arith.constant 0 : index
    %5 = vector.load %arg7[%c0_5, %c0_6] : memref<18x128xf32, #tpu.memory_space<vmem>>, vector<18x128xf32>
    tpu.vector_store %arg7[%c0_5, %c0_6], %4 {strides = array<i32>} : memref<18x128xf32, #tpu.memory_space<vmem>>, vector<18x128xf32>,
    %c0_7 = arith.constant 0 : index
    %c1 = arith.constant 1 : index
    %c0_8 = arith.constant 0 : index
    %6 = vector.load %arg2[%c0_7, %c1, %c0_8] : memref<1x39x16xbf16, #tpu.memory_space<vmem>>, vector<1x18x16xbf16>
    %7 = vector.shape_cast %6 : vector<1x18x16xbf16> to vector<18x16xbf16>
    %c1_9 = arith.constant 1 : index
    %c0_10 = arith.constant 0 : index
    %c0_11 = arith.constant 0 : index
    %8 = vector.load %arg3[%c1_9, %c0_10, %c0_11] : memref<16x16x128xbf16, #tpu.memory_space<vmem>>, vector<1x16x128xbf16>
    %9 = vector.shape_cast %8 : vector<1x16x128xbf16> to vector<16x128xbf16>
    %cst_12 = arith.constant dense<0.000000e+00> : vector<18x128xf32>
    %10 = tpu.matmul %7, %9, %cst_12 {dimension_numbers = #tpu.dot_dimension_numbers<[1], [0], [0], [1], [0, 0, 1, 1], [], []>} : vector<18x16xbf16>, vector<16x128xbf16>, vector<18x128xf32> -> vector<18x128xf32>
    %c0_13 = arith.constant 0 : index
    %c0_14 = arith.constant 0 : index
    %11 = vector.load %arg7[%c0_13, %c0_14] : memref<18x128xf32, #tpu.memory_space<vmem>>, vector<18x128xf32>
    %12 = arith.addf %11, %10 : vector<18x128xf32>
    %c0_15 = arith.constant 0 : index
    %c0_16 = arith.constant 0 : index
    %13 = vector.load %arg7[%c0_15, %c0_16] : memref<18x128xf32, #tpu.memory_space<vmem>>, vector<18x128xf32>
    tpu.vector_store %arg7[%c0_15, %c0_16], %12 {strides = array<i32>} : memref<18x128xf32, #tpu.memory_space<vmem>>, vector<18x128xf32>,
    %c0_17 = arith.constant 0 : index
    %c2 = arith.constant 2 : index
    %c0_18 = arith.constant 0 : index
    %14 = vector.load %arg2[%c0_17, %c2, %c0_18] : memref<1x39x16xbf16, #tpu.memory_space<vmem>>, vector<1x18x16xbf16>
    %15 = vector.shape_cast %14 : vector<1x18x16xbf16> to vector<18x16xbf16>
    %c2_19 = arith.constant 2 : index
    %c0_20 = arith.constant 0 : index
    %c0_21 = arith.constant 0 : index
    %16 = vector.load %arg3[%c2_19, %c0_20, %c0_21] : memref<16x16x128xbf16, #tpu.memory_space<vmem>>, vector<1x16x128xbf16>
    %17 = vector.shape_cast %16 : vector<1x16x128xbf16> to vector<16x128xbf16>
    %cst_22 = arith.constant dense<0.000000e+00> : vector<18x128xf32>
    %18 = tpu.matmul %15, %17, %cst_22 {dimension_numbers = #tpu.dot_dimension_numbers<[1], [0], [0], [1], [0, 0, 1, 1], [], []>} : vector<18x16xbf16>, vector<16x128xbf16>, vector<18x128xf32> -> vector<18x128xf32>
    %c0_23 = arith.constant 0 : index
    %c0_24 = arith.constant 0 : index
    %19 = vector.load %arg7[%c0_23, %c0_24] : memref<18x128xf32, #tpu.memory_space<vmem>>, vector<18x128xf32>
    %20 = arith.addf %19, %18 : vector<18x128xf32>
    %c0_25 = arith.constant 0 : index
    %c0_26 = arith.constant 0 : index
    %21 = vector.load %arg7[%c0_25, %c0_26] : memref<18x128xf32, #tpu.memory_space<vmem>>, vector<18x128xf32>
    tpu.vector_store %arg7[%c0_25, %c0_26], %20 {strides = array<i32>} : memref<18x128xf32, #tpu.memory_space<vmem>>, vector<18x128xf32>,
    %c0_27 = arith.constant 0 : index
    %c3 = arith.constant 3 : index
    %c0_28 = arith.constant 0 : index
    %22 = vector.load %arg2[%c0_27, %c3, %c0_28] : memref<1x39x16xbf16, #tpu.memory_space<vmem>>, vector<1x18x16xbf16>
    %23 = vector.shape_cast %22 : vector<1x18x16xbf16> to vector<18x16xbf16>
    %c3_29 = arith.constant 3 : index
    %c0_30 = arith.constant 0 : index
    %c0_31 = arith.constant 0 : index
    %24 = vector.load %arg3[%c3_29, %c0_30, %c0_31] : memref<16x16x128xbf16, #tpu.memory_space<vmem>>, vector<1x16x128xbf16>
    %25 = vector.shape_cast %24 : vector<1x16x128xbf16> to vector<16x128xbf16>
    %cst_32 = arith.constant dense<0.000000e+00> : vector<18x128xf32>
    %26 = tpu.matmul %23, %25, %cst_32 {dimension_numbers = #tpu.dot_dimension_numbers<[1], [0], [0], [1], [0, 0, 1, 1], [], []>} : vector<18x16xbf16>, vector<16x128xbf16>, vector<18x128xf32> -> vector<18x128xf32>
    %c0_33 = arith.constant 0 : index
    %c0_34 = arith.constant 0 : index
    %27 = vector.load %arg7[%c0_33, %c0_34] : memref<18x128xf32, #tpu.memory_space<vmem>>, vector<18x128xf32>
    %28 = arith.addf %27, %26 : vector<18x128xf32>
    %c0_35 = arith.constant 0 : index
    %c0_36 = arith.constant 0 : index
    %29 = vector.load %arg7[%c0_35, %c0_36] : memref<18x128xf32, #tpu.memory_space<vmem>>, vector<18x128xf32>
    tpu.vector_store %arg7[%c0_35, %c0_36], %28 {strides = array<i32>} : memref<18x128xf32, #tpu.memory_space<vmem>>, vector<18x128xf32>,
    %c0_37 = arith.constant 0 : index
    %c6 = arith.constant 6 : index
    %c0_38 = arith.constant 0 : index
    %30 = vector.load %arg2[%c0_37, %c6, %c0_38] : memref<1x39x16xbf16, #tpu.memory_space<vmem>>, vector<1x18x16xbf16>
    %31 = vector.shape_cast %30 : vector<1x18x16xbf16> to vector<18x16xbf16>
    %c4 = arith.constant 4 : index
    %c0_39 = arith.constant 0 : index
    %c0_40 = arith.constant 0 : index
    %32 = vector.load %arg3[%c4, %c0_39, %c0_40] : memref<16x16x128xbf16, #tpu.memory_space<vmem>>, vector<1x16x128xbf16>
    %33 = vector.shape_cast %32 : vector<1x16x128xbf16> to vector<16x128xbf16>
    %cst_41 = arith.constant dense<0.000000e+00> : vector<18x128xf32>
    %34 = tpu.matmul %31, %33, %cst_41 {dimension_numbers = #tpu.dot_dimension_numbers<[1], [0], [0], [1], [0, 0, 1, 1], [], []>} : vector<18x16xbf16>, vector<16x128xbf16>, vector<18x128xf32> -> vector<18x128xf32>
    %c0_42 = arith.constant 0 : index
    %c0_43 = arith.constant 0 : index
    %35 = vector.load %arg7[%c0_42, %c0_43] : memref<18x128xf32, #tpu.memory_space<vmem>>, vector<18x128xf32>
    %36 = arith.addf %35, %34 : vector<18x128xf32>
    %c0_44 = arith.constant 0 : index
    %c0_45 = arith.constant 0 : index
    %37 = vector.load %arg7[%c0_44, %c0_45] : memref<18x128xf32, #tpu.memory_space<vmem>>, vector<18x128xf32>
    tpu.vector_store %arg7[%c0_44, %c0_45], %36 {strides = array<i32>} : memref<18x128xf32, #tpu.memory_space<vmem>>, vector<18x128xf32>,
    %c0_46 = arith.constant 0 : index
    %c7 = arith.constant 7 : index
    %c0_47 = arith.constant 0 : index
    %38 = vector.load %arg2[%c0_46, %c7, %c0_47] : memref<1x39x16xbf16, #tpu.memory_space<vmem>>, vector<1x18x16xbf16>
    %39 = vector.shape_cast %38 : vector<1x18x16xbf16> to vector<18x16xbf16>
    %c5 = arith.constant 5 : index
    %c0_48 = arith.constant 0 : index
    %c0_49 = arith.constant 0 : index
    %40 = vector.load %arg3[%c5, %c0_48, %c0_49] : memref<16x16x128xbf16, #tpu.memory_space<vmem>>, vector<1x16x128xbf16>
    %41 = vector.shape_cast %40 : vector<1x16x128xbf16> to vector<16x128xbf16>
    %cst_50 = arith.constant dense<0.000000e+00> : vector<18x128xf32>
    %42 = tpu.matmul %39, %41, %cst_50 {dimension_numbers = #tpu.dot_dimension_numbers<[1], [0], [0], [1], [0, 0, 1, 1], [], []>} : vector<18x16xbf16>, vector<16x128xbf16>, vector<18x128xf32> -> vector<18x128xf32>
    %c0_51 = arith.constant 0 : index
    %c0_52 = arith.constant 0 : index
    %43 = vector.load %arg7[%c0_51, %c0_52] : memref<18x128xf32, #tpu.memory_space<vmem>>, vector<18x128xf32>
    %44 = arith.addf %43, %42 : vector<18x128xf32>
    %c0_53 = arith.constant 0 : index
    %c0_54 = arith.constant 0 : index
    %45 = vector.load %arg7[%c0_53, %c0_54] : memref<18x128xf32, #tpu.memory_space<vmem>>, vector<18x128xf32>
    tpu.vector_store %arg7[%c0_53, %c0_54], %44 {strides = array<i32>} : memref<18x128xf32, #tpu.memory_space<vmem>>, vector<18x128xf32>,
    %c0_55 = arith.constant 0 : index
    %c8 = arith.constant 8 : index
    %c0_56 = arith.constant 0 : index
    %46 = vector.load %arg2[%c0_55, %c8, %c0_56] : memref<1x39x16xbf16, #tpu.memory_space<vmem>>, vector<1x18x16xbf16>
    %47 = vector.shape_cast %46 : vector<1x18x16xbf16> to vector<18x16xbf16>
    %c6_57 = arith.constant 6 : index
    %c0_58 = arith.constant 0 : index
    %c0_59 = arith.constant 0 : index
    %48 = vector.load %arg3[%c6_57, %c0_58, %c0_59] : memref<16x16x128xbf16, #tpu.memory_space<vmem>>, vector<1x16x128xbf16>
    %49 = vector.shape_cast %48 : vector<1x16x128xbf16> to vector<16x128xbf16>
    %cst_60 = arith.constant dense<0.000000e+00> : vector<18x128xf32>
    %50 = tpu.matmul %47, %49, %cst_60 {dimension_numbers = #tpu.dot_dimension_numbers<[1], [0], [0], [1], [0, 0, 1, 1], [], []>} : vector<18x16xbf16>, vector<16x128xbf16>, vector<18x128xf32> -> vector<18x128xf32>
    %c0_61 = arith.constant 0 : index
    %c0_62 = arith.constant 0 : index
    %51 = vector.load %arg7[%c0_61, %c0_62] : memref<18x128xf32, #tpu.memory_space<vmem>>, vector<18x128xf32>
    %52 = arith.addf %51, %50 : vector<18x128xf32>
    %c0_63 = arith.constant 0 : index
    %c0_64 = arith.constant 0 : index
    %53 = vector.load %arg7[%c0_63, %c0_64] : memref<18x128xf32, #tpu.memory_space<vmem>>, vector<18x128xf32>
    tpu.vector_store %arg7[%c0_63, %c0_64], %52 {strides = array<i32>} : memref<18x128xf32, #tpu.memory_space<vmem>>, vector<18x128xf32>,
    %c0_65 = arith.constant 0 : index
    %c9 = arith.constant 9 : index
    %c0_66 = arith.constant 0 : index
    %54 = vector.load %arg2[%c0_65, %c9, %c0_66] : memref<1x39x16xbf16, #tpu.memory_space<vmem>>, vector<1x18x16xbf16>
    %55 = vector.shape_cast %54 : vector<1x18x16xbf16> to vector<18x16xbf16>
    %c7_67 = arith.constant 7 : index
    %c0_68 = arith.constant 0 : index
    %c0_69 = arith.constant 0 : index
    %56 = vector.load %arg3[%c7_67, %c0_68, %c0_69] : memref<16x16x128xbf16, #tpu.memory_space<vmem>>, vector<1x16x128xbf16>
    %57 = vector.shape_cast %56 : vector<1x16x128xbf16> to vector<16x128xbf16>
    %cst_70 = arith.constant dense<0.000000e+00> : vector<18x128xf32>
    %58 = tpu.matmul %55, %57, %cst_70 {dimension_numbers = #tpu.dot_dimension_numbers<[1], [0], [0], [1], [0, 0, 1, 1], [], []>} : vector<18x16xbf16>, vector<16x128xbf16>, vector<18x128xf32> -> vector<18x128xf32>
    %c0_71 = arith.constant 0 : index
    %c0_72 = arith.constant 0 : index
    %59 = vector.load %arg7[%c0_71, %c0_72] : memref<18x128xf32, #tpu.memory_space<vmem>>, vector<18x128xf32>
    %60 = arith.addf %59, %58 : vector<18x128xf32>
    %c0_73 = arith.constant 0 : index
    %c0_74 = arith.constant 0 : index
    %61 = vector.load %arg7[%c0_73, %c0_74] : memref<18x128xf32, #tpu.memory_space<vmem>>, vector<18x128xf32>
    tpu.vector_store %arg7[%c0_73, %c0_74], %60 {strides = array<i32>} : memref<18x128xf32, #tpu.memory_space<vmem>>, vector<18x128xf32>,
    %c0_75 = arith.constant 0 : index
    %c12 = arith.constant 12 : index
    %c0_76 = arith.constant 0 : index
    %62 = vector.load %arg2[%c0_75, %c12, %c0_76] : memref<1x39x16xbf16, #tpu.memory_space<vmem>>, vector<1x18x16xbf16>
    %63 = vector.shape_cast %62 : vector<1x18x16xbf16> to vector<18x16xbf16>
    %c8_77 = arith.constant 8 : index
    %c0_78 = arith.constant 0 : index
    %c0_79 = arith.constant 0 : index
    %64 = vector.load %arg3[%c8_77, %c0_78, %c0_79] : memref<16x16x128xbf16, #tpu.memory_space<vmem>>, vector<1x16x128xbf16>
    %65 = vector.shape_cast %64 : vector<1x16x128xbf16> to vector<16x128xbf16>
    %cst_80 = arith.constant dense<0.000000e+00> : vector<18x128xf32>
    %66 = tpu.matmul %63, %65, %cst_80 {dimension_numbers = #tpu.dot_dimension_numbers<[1], [0], [0], [1], [0, 0, 1, 1], [], []>} : vector<18x16xbf16>, vector<16x128xbf16>, vector<18x128xf32> -> vector<18x128xf32>
    %c0_81 = arith.constant 0 : index
    %c0_82 = arith.constant 0 : index
    %67 = vector.load %arg7[%c0_81, %c0_82] : memref<18x128xf32, #tpu.memory_space<vmem>>, vector<18x128xf32>
    %68 = arith.addf %67, %66 : vector<18x128xf32>
    %c0_83 = arith.constant 0 : index
    %c0_84 = arith.constant 0 : index
    %69 = vector.load %arg7[%c0_83, %c0_84] : memref<18x128xf32, #tpu.memory_space<vmem>>, vector<18x128xf32>
    tpu.vector_store %arg7[%c0_83, %c0_84], %68 {strides = array<i32>} : memref<18x128xf32, #tpu.memory_space<vmem>>, vector<18x128xf32>,
    %c0_85 = arith.constant 0 : index
    %c13 = arith.constant 13 : index
    %c0_86 = arith.constant 0 : index
    %70 = vector.load %arg2[%c0_85, %c13, %c0_86] : memref<1x39x16xbf16, #tpu.memory_space<vmem>>, vector<1x18x16xbf16>
    %71 = vector.shape_cast %70 : vector<1x18x16xbf16> to vector<18x16xbf16>
    %c9_87 = arith.constant 9 : index
    %c0_88 = arith.constant 0 : index
    %c0_89 = arith.constant 0 : index
    %72 = vector.load %arg3[%c9_87, %c0_88, %c0_89] : memref<16x16x128xbf16, #tpu.memory_space<vmem>>, vector<1x16x128xbf16>
    %73 = vector.shape_cast %72 : vector<1x16x128xbf16> to vector<16x128xbf16>
    %cst_90 = arith.constant dense<0.000000e+00> : vector<18x128xf32>
    %74 = tpu.matmul %71, %73, %cst_90 {dimension_numbers = #tpu.dot_dimension_numbers<[1], [0], [0], [1], [0, 0, 1, 1], [], []>} : vector<18x16xbf16>, vector<16x128xbf16>, vector<18x128xf32> -> vector<18x128xf32>
    %c0_91 = arith.constant 0 : index
    %c0_92 = arith.constant 0 : index
    %75 = vector.load %arg7[%c0_91, %c0_92] : memref<18x128xf32, #tpu.memory_space<vmem>>, vector<18x128xf32>
    %76 = arith.addf %75, %74 : vector<18x128xf32>
    %c0_93 = arith.constant 0 : index
    %c0_94 = arith.constant 0 : index
    %77 = vector.load %arg7[%c0_93, %c0_94] : memref<18x128xf32, #tpu.memory_space<vmem>>, vector<18x128xf32>
    tpu.vector_store %arg7[%c0_93, %c0_94], %76 {strides = array<i32>} : memref<18x128xf32, #tpu.memory_space<vmem>>, vector<18x128xf32>,
    %c0_95 = arith.constant 0 : index
    %c14 = arith.constant 14 : index
    %c0_96 = arith.constant 0 : index
    %78 = vector.load %arg2[%c0_95, %c14, %c0_96] : memref<1x39x16xbf16, #tpu.memory_space<vmem>>, vector<1x18x16xbf16>
    %79 = vector.shape_cast %78 : vector<1x18x16xbf16> to vector<18x16xbf16>
    %c10 = arith.constant 10 : index
    %c0_97 = arith.constant 0 : index
    %c0_98 = arith.constant 0 : index
    %80 = vector.load %arg3[%c10, %c0_97, %c0_98] : memref<16x16x128xbf16, #tpu.memory_space<vmem>>, vector<1x16x128xbf16>
    %81 = vector.shape_cast %80 : vector<1x16x128xbf16> to vector<16x128xbf16>
    %cst_99 = arith.constant dense<0.000000e+00> : vector<18x128xf32>
    %82 = tpu.matmul %79, %81, %cst_99 {dimension_numbers = #tpu.dot_dimension_numbers<[1], [0], [0], [1], [0, 0, 1, 1], [], []>} : vector<18x16xbf16>, vector<16x128xbf16>, vector<18x128xf32> -> vector<18x128xf32>
    %c0_100 = arith.constant 0 : index
    %c0_101 = arith.constant 0 : index
    %83 = vector.load %arg7[%c0_100, %c0_101] : memref<18x128xf32, #tpu.memory_space<vmem>>, vector<18x128xf32>
    %84 = arith.addf %83, %82 : vector<18x128xf32>
    %c0_102 = arith.constant 0 : index
    %c0_103 = arith.constant 0 : index
    %85 = vector.load %arg7[%c0_102, %c0_103] : memref<18x128xf32, #tpu.memory_space<vmem>>, vector<18x128xf32>
    tpu.vector_store %arg7[%c0_102, %c0_103], %84 {strides = array<i32>} : memref<18x128xf32, #tpu.memory_space<vmem>>, vector<18x128xf32>,
    %c0_104 = arith.constant 0 : index
    %c15 = arith.constant 15 : index
    %c0_105 = arith.constant 0 : index
    %86 = vector.load %arg2[%c0_104, %c15, %c0_105] : memref<1x39x16xbf16, #tpu.memory_space<vmem>>, vector<1x18x16xbf16>
    %87 = vector.shape_cast %86 : vector<1x18x16xbf16> to vector<18x16xbf16>
    %c11 = arith.constant 11 : index
    %c0_106 = arith.constant 0 : index
    %c0_107 = arith.constant 0 : index
    %88 = vector.load %arg3[%c11, %c0_106, %c0_107] : memref<16x16x128xbf16, #tpu.memory_space<vmem>>, vector<1x16x128xbf16>
    %89 = vector.shape_cast %88 : vector<1x16x128xbf16> to vector<16x128xbf16>
    %cst_108 = arith.constant dense<0.000000e+00> : vector<18x128xf32>
    %90 = tpu.matmul %87, %89, %cst_108 {dimension_numbers = #tpu.dot_dimension_numbers<[1], [0], [0], [1], [0, 0, 1, 1], [], []>} : vector<18x16xbf16>, vector<16x128xbf16>, vector<18x128xf32> -> vector<18x128xf32>
    %c0_109 = arith.constant 0 : index
    %c0_110 = arith.constant 0 : index
    %91 = vector.load %arg7[%c0_109, %c0_110] : memref<18x128xf32, #tpu.memory_space<vmem>>, vector<18x128xf32>
    %92 = arith.addf %91, %90 : vector<18x128xf32>
    %c0_111 = arith.constant 0 : index
    %c0_112 = arith.constant 0 : index
    %93 = vector.load %arg7[%c0_111, %c0_112] : memref<18x128xf32, #tpu.memory_space<vmem>>, vector<18x128xf32>
    tpu.vector_store %arg7[%c0_111, %c0_112], %92 {strides = array<i32>} : memref<18x128xf32, #tpu.memory_space<vmem>>, vector<18x128xf32>,
    %c0_113 = arith.constant 0 : index
    %c18 = arith.constant 18 : index
    %c0_114 = arith.constant 0 : index
    %94 = vector.load %arg2[%c0_113, %c18, %c0_114] : memref<1x39x16xbf16, #tpu.memory_space<vmem>>, vector<1x18x16xbf16>
    %95 = vector.shape_cast %94 : vector<1x18x16xbf16> to vector<18x16xbf16>
    %c12_115 = arith.constant 12 : index
    %c0_116 = arith.constant 0 : index
    %c0_117 = arith.constant 0 : index
    %96 = vector.load %arg3[%c12_115, %c0_116, %c0_117] : memref<16x16x128xbf16, #tpu.memory_space<vmem>>, vector<1x16x128xbf16>
    %97 = vector.shape_cast %96 : vector<1x16x128xbf16> to vector<16x128xbf16>
    %cst_118 = arith.constant dense<0.000000e+00> : vector<18x128xf32>
    %98 = tpu.matmul %95, %97, %cst_118 {dimension_numbers = #tpu.dot_dimension_numbers<[1], [0], [0], [1], [0, 0, 1, 1], [], []>} : vector<18x16xbf16>, vector<16x128xbf16>, vector<18x128xf32> -> vector<18x128xf32>
    %c0_119 = arith.constant 0 : index
    %c0_120 = arith.constant 0 : index
    %99 = vector.load %arg7[%c0_119, %c0_120] : memref<18x128xf32, #tpu.memory_space<vmem>>, vector<18x128xf32>
    %100 = arith.addf %99, %98 : vector<18x128xf32>
    %c0_121 = arith.constant 0 : index
    %c0_122 = arith.constant 0 : index
    %101 = vector.load %arg7[%c0_121, %c0_122] : memref<18x128xf32, #tpu.memory_space<vmem>>, vector<18x128xf32>
    tpu.vector_store %arg7[%c0_121, %c0_122], %100 {strides = array<i32>} : memref<18x128xf32, #tpu.memory_space<vmem>>, vector<18x128xf32>,
    %c0_123 = arith.constant 0 : index
    %c19 = arith.constant 19 : index
    %c0_124 = arith.constant 0 : index
    %102 = vector.load %arg2[%c0_123, %c19, %c0_124] : memref<1x39x16xbf16, #tpu.memory_space<vmem>>, vector<1x18x16xbf16>
    %103 = vector.shape_cast %102 : vector<1x18x16xbf16> to vector<18x16xbf16>
    %c13_125 = arith.constant 13 : index
    %c0_126 = arith.constant 0 : index
    %c0_127 = arith.constant 0 : index
    %104 = vector.load %arg3[%c13_125, %c0_126, %c0_127] : memref<16x16x128xbf16, #tpu.memory_space<vmem>>, vector<1x16x128xbf16>
    %105 = vector.shape_cast %104 : vector<1x16x128xbf16> to vector<16x128xbf16>
    %cst_128 = arith.constant dense<0.000000e+00> : vector<18x128xf32>
    %106 = tpu.matmul %103, %105, %cst_128 {dimension_numbers = #tpu.dot_dimension_numbers<[1], [0], [0], [1], [0, 0, 1, 1], [], []>} : vector<18x16xbf16>, vector<16x128xbf16>, vector<18x128xf32> -> vector<18x128xf32>
    %c0_129 = arith.constant 0 : index
    %c0_130 = arith.constant 0 : index
    %107 = vector.load %arg7[%c0_129, %c0_130] : memref<18x128xf32, #tpu.memory_space<vmem>>, vector<18x128xf32>
    %108 = arith.addf %107, %106 : vector<18x128xf32>
    %c0_131 = arith.constant 0 : index
    %c0_132 = arith.constant 0 : index
    %109 = vector.load %arg7[%c0_131, %c0_132] : memref<18x128xf32, #tpu.memory_space<vmem>>, vector<18x128xf32>
    tpu.vector_store %arg7[%c0_131, %c0_132], %108 {strides = array<i32>} : memref<18x128xf32, #tpu.memory_space<vmem>>, vector<18x128xf32>,
    %c0_133 = arith.constant 0 : index
    %c20 = arith.constant 20 : index
    %c0_134 = arith.constant 0 : index
    %110 = vector.load %arg2[%c0_133, %c20, %c0_134] : memref<1x39x16xbf16, #tpu.memory_space<vmem>>, vector<1x18x16xbf16>
    %111 = vector.shape_cast %110 : vector<1x18x16xbf16> to vector<18x16xbf16>
    %c14_135 = arith.constant 14 : index
    %c0_136 = arith.constant 0 : index
    %c0_137 = arith.constant 0 : index
    %112 = vector.load %arg3[%c14_135, %c0_136, %c0_137] : memref<16x16x128xbf16, #tpu.memory_space<vmem>>, vector<1x16x128xbf16>
    %113 = vector.shape_cast %112 : vector<1x16x128xbf16> to vector<16x128xbf16>
    %cst_138 = arith.constant dense<0.000000e+00> : vector<18x128xf32>
    %114 = tpu.matmul %111, %113, %cst_138 {dimension_numbers = #tpu.dot_dimension_numbers<[1], [0], [0], [1], [0, 0, 1, 1], [], []>} : vector<18x16xbf16>, vector<16x128xbf16>, vector<18x128xf32> -> vector<18x128xf32>
    %c0_139 = arith.constant 0 : index
    %c0_140 = arith.constant 0 : index
    %115 = vector.load %arg7[%c0_139, %c0_140] : memref<18x128xf32, #tpu.memory_space<vmem>>, vector<18x128xf32>
    %116 = arith.addf %115, %114 : vector<18x128xf32>
    %c0_141 = arith.constant 0 : index
    %c0_142 = arith.constant 0 : index
    %117 = vector.load %arg7[%c0_141, %c0_142] : memref<18x128xf32, #tpu.memory_space<vmem>>, vector<18x128xf32>
    tpu.vector_store %arg7[%c0_141, %c0_142], %116 {strides = array<i32>} : memref<18x128xf32, #tpu.memory_space<vmem>>, vector<18x128xf32>,
    %c0_143 = arith.constant 0 : index
    %c21 = arith.constant 21 : index
    %c0_144 = arith.constant 0 : index
    %118 = vector.load %arg2[%c0_143, %c21, %c0_144] : memref<1x39x16xbf16, #tpu.memory_space<vmem>>, vector<1x18x16xbf16>
    %119 = vector.shape_cast %118 : vector<1x18x16xbf16> to vector<18x16xbf16>
    %c15_145 = arith.constant 15 : index
    %c0_146 = arith.constant 0 : index
    %c0_147 = arith.constant 0 : index
    %120 = vector.load %arg3[%c15_145, %c0_146, %c0_147] : memref<16x16x128xbf16, #tpu.memory_space<vmem>>, vector<1x16x128xbf16>
    %121 = vector.shape_cast %120 : vector<1x16x128xbf16> to vector<16x128xbf16>
    %cst_148 = arith.constant dense<0.000000e+00> : vector<18x128xf32>
    %122 = tpu.matmul %119, %121, %cst_148 {dimension_numbers = #tpu.dot_dimension_numbers<[1], [0], [0], [1], [0, 0, 1, 1], [], []>} : vector<18x16xbf16>, vector<16x128xbf16>, vector<18x128xf32> -> vector<18x128xf32>
    %c0_149 = arith.constant 0 : index
    %c0_150 = arith.constant 0 : index
    %123 = vector.load %arg7[%c0_149, %c0_150] : memref<18x128xf32, #tpu.memory_space<vmem>>, vector<18x128xf32>
    %124 = arith.addf %123, %122 : vector<18x128xf32>
    %c0_151 = arith.constant 0 : index
    %c0_152 = arith.constant 0 : index
    %125 = vector.load %arg7[%c0_151, %c0_152] : memref<18x128xf32, #tpu.memory_space<vmem>>, vector<18x128xf32>
    tpu.vector_store %arg7[%c0_151, %c0_152], %124 {strides = array<i32>} : memref<18x128xf32, #tpu.memory_space<vmem>>, vector<18x128xf32>,
    %c0_153 = arith.constant 0 : index
    %c0_154 = arith.constant 0 : index
    %126 = vector.load %arg7[%c0_153, %c0_154] : memref<18x128xf32, #tpu.memory_space<vmem>>, vector<18x128xf32>
    %c0_155 = arith.constant 0 : index
    %c0_156 = arith.constant 0 : index
    %127 = vector.load %arg4[%c0_155, %c0_156] : memref<1x128xf32, #tpu.memory_space<vmem>>, vector<1x128xf32>
    %128 = vector.broadcast %127 : vector<1x128xf32> to vector<18x128xf32>
    %129 = arith.addf %126, %128 : vector<18x128xf32>
    %c0_157 = arith.constant 0 : index
    %c0_158 = arith.constant 0 : index
    %130 = vector.load %arg5[%c0_157, %c0_158] : memref<18x1xf32, #tpu.memory_space<vmem>>, vector<18x1xf32>
    %131 = vector.broadcast %130 : vector<18x1xf32> to vector<18x128xf32>
    %132 = arith.mulf %129, %131 : vector<18x128xf32>
    %cst_159 = arith.constant dense<0.000000e+00> : vector<128xf32>
    %133 = vector.multi_reduction <add>, %132, %cst_159 [0] : vector<18x128xf32> to vector<128xf32>
    %134 = vector.shape_cast %133 : vector<128xf32> to vector<1x128xf32>
    %cst_160 = arith.constant 0.111111112 : f32
    %135 = vector.broadcast %cst_160 : f32 to vector<1x128xf32>
    %136 = arith.mulf %134, %135 : vector<1x128xf32>
    %137 = vector.broadcast %136 : vector<1x128xf32> to vector<18x128xf32>
    %138 = arith.subf %129, %137 : vector<18x128xf32>
    %139 = vector.broadcast %130 : vector<18x1xf32> to vector<18x128xf32>
    %140 = arith.mulf %138, %139 : vector<18x128xf32>
    %141 = arith.mulf %140, %140 : vector<18x128xf32>
    %cst_161 = arith.constant dense<0.000000e+00> : vector<128xf32>
    %142 = vector.multi_reduction <add>, %141, %cst_161 [0] : vector<18x128xf32> to vector<128xf32>
    %143 = vector.shape_cast %142 : vector<128xf32> to vector<1x128xf32>
    %cst_162 = arith.constant 0.111111112 : f32
    %144 = vector.broadcast %cst_162 : f32 to vector<1x128xf32>
    %145 = arith.mulf %143, %144 : vector<1x128xf32>
    %146 = vector.broadcast %136 : vector<1x128xf32> to vector<18x128xf32>
    %147 = arith.subf %129, %146 : vector<18x128xf32>
    %cst_163 = arith.constant 9.99999974E-6 : f32
    %148 = vector.broadcast %cst_163 : f32 to vector<1x128xf32>
    %149 = arith.addf %145, %148 : vector<1x128xf32>
    %150 = math.rsqrt %149 : vector<1x128xf32>
    %151 = vector.broadcast %150 : vector<1x128xf32> to vector<18x128xf32>
    %152 = arith.mulf %147, %151 : vector<18x128xf32>
    %cst_164 = arith.constant 0.000000e+00 : f32
    %153 = vector.broadcast %cst_164 : f32 to vector<18x128xf32>
    %154 = arith.cmpf oge, %152, %153 : vector<18x128xf32>
    %cst_165 = arith.constant 2.000000e-01 : f32
    %155 = vector.broadcast %cst_165 : f32 to vector<18x128xf32>
    %156 = arith.mulf %155, %152 : vector<18x128xf32>
    %157 = arith.select %154, %152, %156 : vector<18x128xi1>, vector<18x128xf32>
    %158 = arith.truncf %157 : vector<18x128xf32> to vector<18x128xbf16>
    %c0_166 = arith.constant 0 : index
    %c0_167 = arith.constant 0 : index
    %c0_168 = arith.constant 0 : index
    %159 = vector.load %arg6[%c0_166, %c0_167, %c0_168] : memref<1x18x128xbf16, #tpu.memory_space<vmem>>, vector<1x18x128xbf16>
    %160 = vector.shape_cast %159 : vector<1x18x128xbf16> to vector<18x128xbf16>
    %161 = vector.shape_cast %158 : vector<18x128xbf16> to vector<1x18x128xbf16>
    tpu.vector_store %arg6[%c0_166, %c0_167, %c0_168], %161 {strides = array<i32>} : memref<1x18x128xbf16, #tpu.memory_space<vmem>>, vector<1x18x128xbf16>,
    return
  }
  func.func @transform_0(%arg0: i32, %arg1: i32) -> (i32, i32, i32) {
    %c0_i32 = arith.constant 0 : i32
    %c0_i32_0 = arith.constant 0 : i32
    %c0_i32_1 = arith.constant 0 : i32
    return %arg0, %c0_i32, %c0_i32_0 : i32, i32, i32
  }
  func.func @transform_1(%arg0: i32, %arg1: i32) -> (i32, i32, i32) {
    %c0_i32 = arith.constant 0 : i32
    %c0_i32_0 = arith.constant 0 : i32
    %c0_i32_1 = arith.constant 0 : i32
    %c0_i32_2 = arith.constant 0 : i32
    return %c0_i32, %c0_i32_0, %c0_i32_1 : i32, i32, i32
  }
  func.func @transform_2(%arg0: i32, %arg1: i32) -> (i32, i32) {
    %c0_i32 = arith.constant 0 : i32
    %c0_i32_0 = arith.constant 0 : i32
    %c0_i32_1 = arith.constant 0 : i32
    return %c0_i32, %c0_i32_0 : i32, i32
  }
  func.func @transform_3(%arg0: i32, %arg1: i32) -> (i32, i32) {
    %c0_i32 = arith.constant 0 : i32
    %c0_i32_0 = arith.constant 0 : i32
    %c0_i32_1 = arith.constant 0 : i32
    return %c0_i32, %c0_i32_0 : i32, i32
  }
  func.func @transform_4(%arg0: i32, %arg1: i32) -> (i32, i32, i32) {
    %c0_i32 = arith.constant 0 : i32
    %c0_i32_0 = arith.constant 0 : i32
    return %arg0, %c0_i32, %arg1 : i32, i32, i32
  }
}

module attributes {stable_mosaic.version = 11 : i64} {
  func.func @_conv_layer_kernel(%arg0: i32, %arg1: i32, %arg2: memref<1x28x32xbf16, #tpu.memory_space<vmem>>, %arg3: memref<16x32x128xbf16, #tpu.memory_space<vmem>>, %arg4: memref<1x128xf32, #tpu.memory_space<vmem>>, %arg5: memref<10x1xf32, #tpu.memory_space<vmem>>, %arg6: memref<1x10x128xf32, #tpu.memory_space<vmem>>, %arg7: memref<10x128xf32, #tpu.memory_space<vmem>>) attributes {dimension_semantics = [#tpu.dimension_semantics<parallel>, #tpu.dimension_semantics<parallel>], iteration_bounds = array<i64: 2, 1>, scalar_prefetch = 0 : i64, scratch_operands = 1 : i64, tpu.core_type = #tpu.core_type<tc>, window_params = [{transform_indices = @transform_0, window_bounds = array<i64: 1, 28, 32>}, {pipeline_mode = #tpu.pipeline_mode<synchronous>, transform_indices = @transform_1, window_bounds = array<i64: 16, 32, 128>}, {pipeline_mode = #tpu.pipeline_mode<synchronous>, transform_indices = @transform_2, window_bounds = array<i64: 1, 128>}, {pipeline_mode = #tpu.pipeline_mode<synchronous>, transform_indices = @transform_3, window_bounds = array<i64: 10, 1>}, {transform_indices = @transform_4, window_bounds = array<i64: 1, 10, 128>}]} {
    %c0 = arith.constant 0 : index
    %c0_0 = arith.constant 0 : index
    %c0_1 = arith.constant 0 : index
    %0 = vector.load %arg2[%c0, %c0_0, %c0_1] : memref<1x28x32xbf16, #tpu.memory_space<vmem>>, vector<1x10x32xbf16>
    %1 = vector.shape_cast %0 : vector<1x10x32xbf16> to vector<10x32xbf16>
    %c0_2 = arith.constant 0 : index
    %c0_3 = arith.constant 0 : index
    %c0_4 = arith.constant 0 : index
    %2 = vector.load %arg3[%c0_2, %c0_3, %c0_4] : memref<16x32x128xbf16, #tpu.memory_space<vmem>>, vector<1x32x128xbf16>
    %3 = vector.shape_cast %2 : vector<1x32x128xbf16> to vector<32x128xbf16>
    %cst = arith.constant dense<0.000000e+00> : vector<10x128xf32>
    %4 = tpu.matmul %1, %3, %cst {dimension_numbers = #tpu.dot_dimension_numbers<[1], [0], [0], [1], [0, 0, 1, 1], [], []>} : vector<10x32xbf16>, vector<32x128xbf16>, vector<10x128xf32> -> vector<10x128xf32>
    %c0_5 = arith.constant 0 : index
    %c0_6 = arith.constant 0 : index
    %5 = vector.load %arg7[%c0_5, %c0_6] : memref<10x128xf32, #tpu.memory_space<vmem>>, vector<10x128xf32>
    tpu.vector_store %arg7[%c0_5, %c0_6], %4 {strides = array<i32>} : memref<10x128xf32, #tpu.memory_space<vmem>>, vector<10x128xf32>,
    %c0_7 = arith.constant 0 : index
    %c1 = arith.constant 1 : index
    %c0_8 = arith.constant 0 : index
    %6 = vector.load %arg2[%c0_7, %c1, %c0_8] : memref<1x28x32xbf16, #tpu.memory_space<vmem>>, vector<1x10x32xbf16>
    %7 = vector.shape_cast %6 : vector<1x10x32xbf16> to vector<10x32xbf16>
    %c1_9 = arith.constant 1 : index
    %c0_10 = arith.constant 0 : index
    %c0_11 = arith.constant 0 : index
    %8 = vector.load %arg3[%c1_9, %c0_10, %c0_11] : memref<16x32x128xbf16, #tpu.memory_space<vmem>>, vector<1x32x128xbf16>
    %9 = vector.shape_cast %8 : vector<1x32x128xbf16> to vector<32x128xbf16>
    %cst_12 = arith.constant dense<0.000000e+00> : vector<10x128xf32>
    %10 = tpu.matmul %7, %9, %cst_12 {dimension_numbers = #tpu.dot_dimension_numbers<[1], [0], [0], [1], [0, 0, 1, 1], [], []>} : vector<10x32xbf16>, vector<32x128xbf16>, vector<10x128xf32> -> vector<10x128xf32>
    %c0_13 = arith.constant 0 : index
    %c0_14 = arith.constant 0 : index
    %11 = vector.load %arg7[%c0_13, %c0_14] : memref<10x128xf32, #tpu.memory_space<vmem>>, vector<10x128xf32>
    %12 = arith.addf %11, %10 : vector<10x128xf32>
    %c0_15 = arith.constant 0 : index
    %c0_16 = arith.constant 0 : index
    %13 = vector.load %arg7[%c0_15, %c0_16] : memref<10x128xf32, #tpu.memory_space<vmem>>, vector<10x128xf32>
    tpu.vector_store %arg7[%c0_15, %c0_16], %12 {strides = array<i32>} : memref<10x128xf32, #tpu.memory_space<vmem>>, vector<10x128xf32>,
    %c0_17 = arith.constant 0 : index
    %c2 = arith.constant 2 : index
    %c0_18 = arith.constant 0 : index
    %14 = vector.load %arg2[%c0_17, %c2, %c0_18] : memref<1x28x32xbf16, #tpu.memory_space<vmem>>, vector<1x10x32xbf16>
    %15 = vector.shape_cast %14 : vector<1x10x32xbf16> to vector<10x32xbf16>
    %c2_19 = arith.constant 2 : index
    %c0_20 = arith.constant 0 : index
    %c0_21 = arith.constant 0 : index
    %16 = vector.load %arg3[%c2_19, %c0_20, %c0_21] : memref<16x32x128xbf16, #tpu.memory_space<vmem>>, vector<1x32x128xbf16>
    %17 = vector.shape_cast %16 : vector<1x32x128xbf16> to vector<32x128xbf16>
    %cst_22 = arith.constant dense<0.000000e+00> : vector<10x128xf32>
    %18 = tpu.matmul %15, %17, %cst_22 {dimension_numbers = #tpu.dot_dimension_numbers<[1], [0], [0], [1], [0, 0, 1, 1], [], []>} : vector<10x32xbf16>, vector<32x128xbf16>, vector<10x128xf32> -> vector<10x128xf32>
    %c0_23 = arith.constant 0 : index
    %c0_24 = arith.constant 0 : index
    %19 = vector.load %arg7[%c0_23, %c0_24] : memref<10x128xf32, #tpu.memory_space<vmem>>, vector<10x128xf32>
    %20 = arith.addf %19, %18 : vector<10x128xf32>
    %c0_25 = arith.constant 0 : index
    %c0_26 = arith.constant 0 : index
    %21 = vector.load %arg7[%c0_25, %c0_26] : memref<10x128xf32, #tpu.memory_space<vmem>>, vector<10x128xf32>
    tpu.vector_store %arg7[%c0_25, %c0_26], %20 {strides = array<i32>} : memref<10x128xf32, #tpu.memory_space<vmem>>, vector<10x128xf32>,
    %c0_27 = arith.constant 0 : index
    %c3 = arith.constant 3 : index
    %c0_28 = arith.constant 0 : index
    %22 = vector.load %arg2[%c0_27, %c3, %c0_28] : memref<1x28x32xbf16, #tpu.memory_space<vmem>>, vector<1x10x32xbf16>
    %23 = vector.shape_cast %22 : vector<1x10x32xbf16> to vector<10x32xbf16>
    %c3_29 = arith.constant 3 : index
    %c0_30 = arith.constant 0 : index
    %c0_31 = arith.constant 0 : index
    %24 = vector.load %arg3[%c3_29, %c0_30, %c0_31] : memref<16x32x128xbf16, #tpu.memory_space<vmem>>, vector<1x32x128xbf16>
    %25 = vector.shape_cast %24 : vector<1x32x128xbf16> to vector<32x128xbf16>
    %cst_32 = arith.constant dense<0.000000e+00> : vector<10x128xf32>
    %26 = tpu.matmul %23, %25, %cst_32 {dimension_numbers = #tpu.dot_dimension_numbers<[1], [0], [0], [1], [0, 0, 1, 1], [], []>} : vector<10x32xbf16>, vector<32x128xbf16>, vector<10x128xf32> -> vector<10x128xf32>
    %c0_33 = arith.constant 0 : index
    %c0_34 = arith.constant 0 : index
    %27 = vector.load %arg7[%c0_33, %c0_34] : memref<10x128xf32, #tpu.memory_space<vmem>>, vector<10x128xf32>
    %28 = arith.addf %27, %26 : vector<10x128xf32>
    %c0_35 = arith.constant 0 : index
    %c0_36 = arith.constant 0 : index
    %29 = vector.load %arg7[%c0_35, %c0_36] : memref<10x128xf32, #tpu.memory_space<vmem>>, vector<10x128xf32>
    tpu.vector_store %arg7[%c0_35, %c0_36], %28 {strides = array<i32>} : memref<10x128xf32, #tpu.memory_space<vmem>>, vector<10x128xf32>,
    %c0_37 = arith.constant 0 : index
    %c5 = arith.constant 5 : index
    %c0_38 = arith.constant 0 : index
    %30 = vector.load %arg2[%c0_37, %c5, %c0_38] : memref<1x28x32xbf16, #tpu.memory_space<vmem>>, vector<1x10x32xbf16>
    %31 = vector.shape_cast %30 : vector<1x10x32xbf16> to vector<10x32xbf16>
    %c4 = arith.constant 4 : index
    %c0_39 = arith.constant 0 : index
    %c0_40 = arith.constant 0 : index
    %32 = vector.load %arg3[%c4, %c0_39, %c0_40] : memref<16x32x128xbf16, #tpu.memory_space<vmem>>, vector<1x32x128xbf16>
    %33 = vector.shape_cast %32 : vector<1x32x128xbf16> to vector<32x128xbf16>
    %cst_41 = arith.constant dense<0.000000e+00> : vector<10x128xf32>
    %34 = tpu.matmul %31, %33, %cst_41 {dimension_numbers = #tpu.dot_dimension_numbers<[1], [0], [0], [1], [0, 0, 1, 1], [], []>} : vector<10x32xbf16>, vector<32x128xbf16>, vector<10x128xf32> -> vector<10x128xf32>
    %c0_42 = arith.constant 0 : index
    %c0_43 = arith.constant 0 : index
    %35 = vector.load %arg7[%c0_42, %c0_43] : memref<10x128xf32, #tpu.memory_space<vmem>>, vector<10x128xf32>
    %36 = arith.addf %35, %34 : vector<10x128xf32>
    %c0_44 = arith.constant 0 : index
    %c0_45 = arith.constant 0 : index
    %37 = vector.load %arg7[%c0_44, %c0_45] : memref<10x128xf32, #tpu.memory_space<vmem>>, vector<10x128xf32>
    tpu.vector_store %arg7[%c0_44, %c0_45], %36 {strides = array<i32>} : memref<10x128xf32, #tpu.memory_space<vmem>>, vector<10x128xf32>,
    %c0_46 = arith.constant 0 : index
    %c6 = arith.constant 6 : index
    %c0_47 = arith.constant 0 : index
    %38 = vector.load %arg2[%c0_46, %c6, %c0_47] : memref<1x28x32xbf16, #tpu.memory_space<vmem>>, vector<1x10x32xbf16>
    %39 = vector.shape_cast %38 : vector<1x10x32xbf16> to vector<10x32xbf16>
    %c5_48 = arith.constant 5 : index
    %c0_49 = arith.constant 0 : index
    %c0_50 = arith.constant 0 : index
    %40 = vector.load %arg3[%c5_48, %c0_49, %c0_50] : memref<16x32x128xbf16, #tpu.memory_space<vmem>>, vector<1x32x128xbf16>
    %41 = vector.shape_cast %40 : vector<1x32x128xbf16> to vector<32x128xbf16>
    %cst_51 = arith.constant dense<0.000000e+00> : vector<10x128xf32>
    %42 = tpu.matmul %39, %41, %cst_51 {dimension_numbers = #tpu.dot_dimension_numbers<[1], [0], [0], [1], [0, 0, 1, 1], [], []>} : vector<10x32xbf16>, vector<32x128xbf16>, vector<10x128xf32> -> vector<10x128xf32>
    %c0_52 = arith.constant 0 : index
    %c0_53 = arith.constant 0 : index
    %43 = vector.load %arg7[%c0_52, %c0_53] : memref<10x128xf32, #tpu.memory_space<vmem>>, vector<10x128xf32>
    %44 = arith.addf %43, %42 : vector<10x128xf32>
    %c0_54 = arith.constant 0 : index
    %c0_55 = arith.constant 0 : index
    %45 = vector.load %arg7[%c0_54, %c0_55] : memref<10x128xf32, #tpu.memory_space<vmem>>, vector<10x128xf32>
    tpu.vector_store %arg7[%c0_54, %c0_55], %44 {strides = array<i32>} : memref<10x128xf32, #tpu.memory_space<vmem>>, vector<10x128xf32>,
    %c0_56 = arith.constant 0 : index
    %c7 = arith.constant 7 : index
    %c0_57 = arith.constant 0 : index
    %46 = vector.load %arg2[%c0_56, %c7, %c0_57] : memref<1x28x32xbf16, #tpu.memory_space<vmem>>, vector<1x10x32xbf16>
    %47 = vector.shape_cast %46 : vector<1x10x32xbf16> to vector<10x32xbf16>
    %c6_58 = arith.constant 6 : index
    %c0_59 = arith.constant 0 : index
    %c0_60 = arith.constant 0 : index
    %48 = vector.load %arg3[%c6_58, %c0_59, %c0_60] : memref<16x32x128xbf16, #tpu.memory_space<vmem>>, vector<1x32x128xbf16>
    %49 = vector.shape_cast %48 : vector<1x32x128xbf16> to vector<32x128xbf16>
    %cst_61 = arith.constant dense<0.000000e+00> : vector<10x128xf32>
    %50 = tpu.matmul %47, %49, %cst_61 {dimension_numbers = #tpu.dot_dimension_numbers<[1], [0], [0], [1], [0, 0, 1, 1], [], []>} : vector<10x32xbf16>, vector<32x128xbf16>, vector<10x128xf32> -> vector<10x128xf32>
    %c0_62 = arith.constant 0 : index
    %c0_63 = arith.constant 0 : index
    %51 = vector.load %arg7[%c0_62, %c0_63] : memref<10x128xf32, #tpu.memory_space<vmem>>, vector<10x128xf32>
    %52 = arith.addf %51, %50 : vector<10x128xf32>
    %c0_64 = arith.constant 0 : index
    %c0_65 = arith.constant 0 : index
    %53 = vector.load %arg7[%c0_64, %c0_65] : memref<10x128xf32, #tpu.memory_space<vmem>>, vector<10x128xf32>
    tpu.vector_store %arg7[%c0_64, %c0_65], %52 {strides = array<i32>} : memref<10x128xf32, #tpu.memory_space<vmem>>, vector<10x128xf32>,
    %c0_66 = arith.constant 0 : index
    %c8 = arith.constant 8 : index
    %c0_67 = arith.constant 0 : index
    %54 = vector.load %arg2[%c0_66, %c8, %c0_67] : memref<1x28x32xbf16, #tpu.memory_space<vmem>>, vector<1x10x32xbf16>
    %55 = vector.shape_cast %54 : vector<1x10x32xbf16> to vector<10x32xbf16>
    %c7_68 = arith.constant 7 : index
    %c0_69 = arith.constant 0 : index
    %c0_70 = arith.constant 0 : index
    %56 = vector.load %arg3[%c7_68, %c0_69, %c0_70] : memref<16x32x128xbf16, #tpu.memory_space<vmem>>, vector<1x32x128xbf16>
    %57 = vector.shape_cast %56 : vector<1x32x128xbf16> to vector<32x128xbf16>
    %cst_71 = arith.constant dense<0.000000e+00> : vector<10x128xf32>
    %58 = tpu.matmul %55, %57, %cst_71 {dimension_numbers = #tpu.dot_dimension_numbers<[1], [0], [0], [1], [0, 0, 1, 1], [], []>} : vector<10x32xbf16>, vector<32x128xbf16>, vector<10x128xf32> -> vector<10x128xf32>
    %c0_72 = arith.constant 0 : index
    %c0_73 = arith.constant 0 : index
    %59 = vector.load %arg7[%c0_72, %c0_73] : memref<10x128xf32, #tpu.memory_space<vmem>>, vector<10x128xf32>
    %60 = arith.addf %59, %58 : vector<10x128xf32>
    %c0_74 = arith.constant 0 : index
    %c0_75 = arith.constant 0 : index
    %61 = vector.load %arg7[%c0_74, %c0_75] : memref<10x128xf32, #tpu.memory_space<vmem>>, vector<10x128xf32>
    tpu.vector_store %arg7[%c0_74, %c0_75], %60 {strides = array<i32>} : memref<10x128xf32, #tpu.memory_space<vmem>>, vector<10x128xf32>,
    %c0_76 = arith.constant 0 : index
    %c10 = arith.constant 10 : index
    %c0_77 = arith.constant 0 : index
    %62 = vector.load %arg2[%c0_76, %c10, %c0_77] : memref<1x28x32xbf16, #tpu.memory_space<vmem>>, vector<1x10x32xbf16>
    %63 = vector.shape_cast %62 : vector<1x10x32xbf16> to vector<10x32xbf16>
    %c8_78 = arith.constant 8 : index
    %c0_79 = arith.constant 0 : index
    %c0_80 = arith.constant 0 : index
    %64 = vector.load %arg3[%c8_78, %c0_79, %c0_80] : memref<16x32x128xbf16, #tpu.memory_space<vmem>>, vector<1x32x128xbf16>
    %65 = vector.shape_cast %64 : vector<1x32x128xbf16> to vector<32x128xbf16>
    %cst_81 = arith.constant dense<0.000000e+00> : vector<10x128xf32>
    %66 = tpu.matmul %63, %65, %cst_81 {dimension_numbers = #tpu.dot_dimension_numbers<[1], [0], [0], [1], [0, 0, 1, 1], [], []>} : vector<10x32xbf16>, vector<32x128xbf16>, vector<10x128xf32> -> vector<10x128xf32>
    %c0_82 = arith.constant 0 : index
    %c0_83 = arith.constant 0 : index
    %67 = vector.load %arg7[%c0_82, %c0_83] : memref<10x128xf32, #tpu.memory_space<vmem>>, vector<10x128xf32>
    %68 = arith.addf %67, %66 : vector<10x128xf32>
    %c0_84 = arith.constant 0 : index
    %c0_85 = arith.constant 0 : index
    %69 = vector.load %arg7[%c0_84, %c0_85] : memref<10x128xf32, #tpu.memory_space<vmem>>, vector<10x128xf32>
    tpu.vector_store %arg7[%c0_84, %c0_85], %68 {strides = array<i32>} : memref<10x128xf32, #tpu.memory_space<vmem>>, vector<10x128xf32>,
    %c0_86 = arith.constant 0 : index
    %c11 = arith.constant 11 : index
    %c0_87 = arith.constant 0 : index
    %70 = vector.load %arg2[%c0_86, %c11, %c0_87] : memref<1x28x32xbf16, #tpu.memory_space<vmem>>, vector<1x10x32xbf16>
    %71 = vector.shape_cast %70 : vector<1x10x32xbf16> to vector<10x32xbf16>
    %c9 = arith.constant 9 : index
    %c0_88 = arith.constant 0 : index
    %c0_89 = arith.constant 0 : index
    %72 = vector.load %arg3[%c9, %c0_88, %c0_89] : memref<16x32x128xbf16, #tpu.memory_space<vmem>>, vector<1x32x128xbf16>
    %73 = vector.shape_cast %72 : vector<1x32x128xbf16> to vector<32x128xbf16>
    %cst_90 = arith.constant dense<0.000000e+00> : vector<10x128xf32>
    %74 = tpu.matmul %71, %73, %cst_90 {dimension_numbers = #tpu.dot_dimension_numbers<[1], [0], [0], [1], [0, 0, 1, 1], [], []>} : vector<10x32xbf16>, vector<32x128xbf16>, vector<10x128xf32> -> vector<10x128xf32>
    %c0_91 = arith.constant 0 : index
    %c0_92 = arith.constant 0 : index
    %75 = vector.load %arg7[%c0_91, %c0_92] : memref<10x128xf32, #tpu.memory_space<vmem>>, vector<10x128xf32>
    %76 = arith.addf %75, %74 : vector<10x128xf32>
    %c0_93 = arith.constant 0 : index
    %c0_94 = arith.constant 0 : index
    %77 = vector.load %arg7[%c0_93, %c0_94] : memref<10x128xf32, #tpu.memory_space<vmem>>, vector<10x128xf32>
    tpu.vector_store %arg7[%c0_93, %c0_94], %76 {strides = array<i32>} : memref<10x128xf32, #tpu.memory_space<vmem>>, vector<10x128xf32>,
    %c0_95 = arith.constant 0 : index
    %c12 = arith.constant 12 : index
    %c0_96 = arith.constant 0 : index
    %78 = vector.load %arg2[%c0_95, %c12, %c0_96] : memref<1x28x32xbf16, #tpu.memory_space<vmem>>, vector<1x10x32xbf16>
    %79 = vector.shape_cast %78 : vector<1x10x32xbf16> to vector<10x32xbf16>
    %c10_97 = arith.constant 10 : index
    %c0_98 = arith.constant 0 : index
    %c0_99 = arith.constant 0 : index
    %80 = vector.load %arg3[%c10_97, %c0_98, %c0_99] : memref<16x32x128xbf16, #tpu.memory_space<vmem>>, vector<1x32x128xbf16>
    %81 = vector.shape_cast %80 : vector<1x32x128xbf16> to vector<32x128xbf16>
    %cst_100 = arith.constant dense<0.000000e+00> : vector<10x128xf32>
    %82 = tpu.matmul %79, %81, %cst_100 {dimension_numbers = #tpu.dot_dimension_numbers<[1], [0], [0], [1], [0, 0, 1, 1], [], []>} : vector<10x32xbf16>, vector<32x128xbf16>, vector<10x128xf32> -> vector<10x128xf32>
    %c0_101 = arith.constant 0 : index
    %c0_102 = arith.constant 0 : index
    %83 = vector.load %arg7[%c0_101, %c0_102] : memref<10x128xf32, #tpu.memory_space<vmem>>, vector<10x128xf32>
    %84 = arith.addf %83, %82 : vector<10x128xf32>
    %c0_103 = arith.constant 0 : index
    %c0_104 = arith.constant 0 : index
    %85 = vector.load %arg7[%c0_103, %c0_104] : memref<10x128xf32, #tpu.memory_space<vmem>>, vector<10x128xf32>
    tpu.vector_store %arg7[%c0_103, %c0_104], %84 {strides = array<i32>} : memref<10x128xf32, #tpu.memory_space<vmem>>, vector<10x128xf32>,
    %c0_105 = arith.constant 0 : index
    %c13 = arith.constant 13 : index
    %c0_106 = arith.constant 0 : index
    %86 = vector.load %arg2[%c0_105, %c13, %c0_106] : memref<1x28x32xbf16, #tpu.memory_space<vmem>>, vector<1x10x32xbf16>
    %87 = vector.shape_cast %86 : vector<1x10x32xbf16> to vector<10x32xbf16>
    %c11_107 = arith.constant 11 : index
    %c0_108 = arith.constant 0 : index
    %c0_109 = arith.constant 0 : index
    %88 = vector.load %arg3[%c11_107, %c0_108, %c0_109] : memref<16x32x128xbf16, #tpu.memory_space<vmem>>, vector<1x32x128xbf16>
    %89 = vector.shape_cast %88 : vector<1x32x128xbf16> to vector<32x128xbf16>
    %cst_110 = arith.constant dense<0.000000e+00> : vector<10x128xf32>
    %90 = tpu.matmul %87, %89, %cst_110 {dimension_numbers = #tpu.dot_dimension_numbers<[1], [0], [0], [1], [0, 0, 1, 1], [], []>} : vector<10x32xbf16>, vector<32x128xbf16>, vector<10x128xf32> -> vector<10x128xf32>
    %c0_111 = arith.constant 0 : index
    %c0_112 = arith.constant 0 : index
    %91 = vector.load %arg7[%c0_111, %c0_112] : memref<10x128xf32, #tpu.memory_space<vmem>>, vector<10x128xf32>
    %92 = arith.addf %91, %90 : vector<10x128xf32>
    %c0_113 = arith.constant 0 : index
    %c0_114 = arith.constant 0 : index
    %93 = vector.load %arg7[%c0_113, %c0_114] : memref<10x128xf32, #tpu.memory_space<vmem>>, vector<10x128xf32>
    tpu.vector_store %arg7[%c0_113, %c0_114], %92 {strides = array<i32>} : memref<10x128xf32, #tpu.memory_space<vmem>>, vector<10x128xf32>,
    %c0_115 = arith.constant 0 : index
    %c15 = arith.constant 15 : index
    %c0_116 = arith.constant 0 : index
    %94 = vector.load %arg2[%c0_115, %c15, %c0_116] : memref<1x28x32xbf16, #tpu.memory_space<vmem>>, vector<1x10x32xbf16>
    %95 = vector.shape_cast %94 : vector<1x10x32xbf16> to vector<10x32xbf16>
    %c12_117 = arith.constant 12 : index
    %c0_118 = arith.constant 0 : index
    %c0_119 = arith.constant 0 : index
    %96 = vector.load %arg3[%c12_117, %c0_118, %c0_119] : memref<16x32x128xbf16, #tpu.memory_space<vmem>>, vector<1x32x128xbf16>
    %97 = vector.shape_cast %96 : vector<1x32x128xbf16> to vector<32x128xbf16>
    %cst_120 = arith.constant dense<0.000000e+00> : vector<10x128xf32>
    %98 = tpu.matmul %95, %97, %cst_120 {dimension_numbers = #tpu.dot_dimension_numbers<[1], [0], [0], [1], [0, 0, 1, 1], [], []>} : vector<10x32xbf16>, vector<32x128xbf16>, vector<10x128xf32> -> vector<10x128xf32>
    %c0_121 = arith.constant 0 : index
    %c0_122 = arith.constant 0 : index
    %99 = vector.load %arg7[%c0_121, %c0_122] : memref<10x128xf32, #tpu.memory_space<vmem>>, vector<10x128xf32>
    %100 = arith.addf %99, %98 : vector<10x128xf32>
    %c0_123 = arith.constant 0 : index
    %c0_124 = arith.constant 0 : index
    %101 = vector.load %arg7[%c0_123, %c0_124] : memref<10x128xf32, #tpu.memory_space<vmem>>, vector<10x128xf32>
    tpu.vector_store %arg7[%c0_123, %c0_124], %100 {strides = array<i32>} : memref<10x128xf32, #tpu.memory_space<vmem>>, vector<10x128xf32>,
    %c0_125 = arith.constant 0 : index
    %c16 = arith.constant 16 : index
    %c0_126 = arith.constant 0 : index
    %102 = vector.load %arg2[%c0_125, %c16, %c0_126] : memref<1x28x32xbf16, #tpu.memory_space<vmem>>, vector<1x10x32xbf16>
    %103 = vector.shape_cast %102 : vector<1x10x32xbf16> to vector<10x32xbf16>
    %c13_127 = arith.constant 13 : index
    %c0_128 = arith.constant 0 : index
    %c0_129 = arith.constant 0 : index
    %104 = vector.load %arg3[%c13_127, %c0_128, %c0_129] : memref<16x32x128xbf16, #tpu.memory_space<vmem>>, vector<1x32x128xbf16>
    %105 = vector.shape_cast %104 : vector<1x32x128xbf16> to vector<32x128xbf16>
    %cst_130 = arith.constant dense<0.000000e+00> : vector<10x128xf32>
    %106 = tpu.matmul %103, %105, %cst_130 {dimension_numbers = #tpu.dot_dimension_numbers<[1], [0], [0], [1], [0, 0, 1, 1], [], []>} : vector<10x32xbf16>, vector<32x128xbf16>, vector<10x128xf32> -> vector<10x128xf32>
    %c0_131 = arith.constant 0 : index
    %c0_132 = arith.constant 0 : index
    %107 = vector.load %arg7[%c0_131, %c0_132] : memref<10x128xf32, #tpu.memory_space<vmem>>, vector<10x128xf32>
    %108 = arith.addf %107, %106 : vector<10x128xf32>
    %c0_133 = arith.constant 0 : index
    %c0_134 = arith.constant 0 : index
    %109 = vector.load %arg7[%c0_133, %c0_134] : memref<10x128xf32, #tpu.memory_space<vmem>>, vector<10x128xf32>
    tpu.vector_store %arg7[%c0_133, %c0_134], %108 {strides = array<i32>} : memref<10x128xf32, #tpu.memory_space<vmem>>, vector<10x128xf32>,
    %c0_135 = arith.constant 0 : index
    %c17 = arith.constant 17 : index
    %c0_136 = arith.constant 0 : index
    %110 = vector.load %arg2[%c0_135, %c17, %c0_136] : memref<1x28x32xbf16, #tpu.memory_space<vmem>>, vector<1x10x32xbf16>
    %111 = vector.shape_cast %110 : vector<1x10x32xbf16> to vector<10x32xbf16>
    %c14 = arith.constant 14 : index
    %c0_137 = arith.constant 0 : index
    %c0_138 = arith.constant 0 : index
    %112 = vector.load %arg3[%c14, %c0_137, %c0_138] : memref<16x32x128xbf16, #tpu.memory_space<vmem>>, vector<1x32x128xbf16>
    %113 = vector.shape_cast %112 : vector<1x32x128xbf16> to vector<32x128xbf16>
    %cst_139 = arith.constant dense<0.000000e+00> : vector<10x128xf32>
    %114 = tpu.matmul %111, %113, %cst_139 {dimension_numbers = #tpu.dot_dimension_numbers<[1], [0], [0], [1], [0, 0, 1, 1], [], []>} : vector<10x32xbf16>, vector<32x128xbf16>, vector<10x128xf32> -> vector<10x128xf32>
    %c0_140 = arith.constant 0 : index
    %c0_141 = arith.constant 0 : index
    %115 = vector.load %arg7[%c0_140, %c0_141] : memref<10x128xf32, #tpu.memory_space<vmem>>, vector<10x128xf32>
    %116 = arith.addf %115, %114 : vector<10x128xf32>
    %c0_142 = arith.constant 0 : index
    %c0_143 = arith.constant 0 : index
    %117 = vector.load %arg7[%c0_142, %c0_143] : memref<10x128xf32, #tpu.memory_space<vmem>>, vector<10x128xf32>
    tpu.vector_store %arg7[%c0_142, %c0_143], %116 {strides = array<i32>} : memref<10x128xf32, #tpu.memory_space<vmem>>, vector<10x128xf32>,
    %c0_144 = arith.constant 0 : index
    %c18 = arith.constant 18 : index
    %c0_145 = arith.constant 0 : index
    %118 = vector.load %arg2[%c0_144, %c18, %c0_145] : memref<1x28x32xbf16, #tpu.memory_space<vmem>>, vector<1x10x32xbf16>
    %119 = vector.shape_cast %118 : vector<1x10x32xbf16> to vector<10x32xbf16>
    %c15_146 = arith.constant 15 : index
    %c0_147 = arith.constant 0 : index
    %c0_148 = arith.constant 0 : index
    %120 = vector.load %arg3[%c15_146, %c0_147, %c0_148] : memref<16x32x128xbf16, #tpu.memory_space<vmem>>, vector<1x32x128xbf16>
    %121 = vector.shape_cast %120 : vector<1x32x128xbf16> to vector<32x128xbf16>
    %cst_149 = arith.constant dense<0.000000e+00> : vector<10x128xf32>
    %122 = tpu.matmul %119, %121, %cst_149 {dimension_numbers = #tpu.dot_dimension_numbers<[1], [0], [0], [1], [0, 0, 1, 1], [], []>} : vector<10x32xbf16>, vector<32x128xbf16>, vector<10x128xf32> -> vector<10x128xf32>
    %c0_150 = arith.constant 0 : index
    %c0_151 = arith.constant 0 : index
    %123 = vector.load %arg7[%c0_150, %c0_151] : memref<10x128xf32, #tpu.memory_space<vmem>>, vector<10x128xf32>
    %124 = arith.addf %123, %122 : vector<10x128xf32>
    %c0_152 = arith.constant 0 : index
    %c0_153 = arith.constant 0 : index
    %125 = vector.load %arg7[%c0_152, %c0_153] : memref<10x128xf32, #tpu.memory_space<vmem>>, vector<10x128xf32>
    tpu.vector_store %arg7[%c0_152, %c0_153], %124 {strides = array<i32>} : memref<10x128xf32, #tpu.memory_space<vmem>>, vector<10x128xf32>,
    %c0_154 = arith.constant 0 : index
    %c0_155 = arith.constant 0 : index
    %126 = vector.load %arg7[%c0_154, %c0_155] : memref<10x128xf32, #tpu.memory_space<vmem>>, vector<10x128xf32>
    %c0_156 = arith.constant 0 : index
    %c0_157 = arith.constant 0 : index
    %127 = vector.load %arg4[%c0_156, %c0_157] : memref<1x128xf32, #tpu.memory_space<vmem>>, vector<1x128xf32>
    %128 = vector.broadcast %127 : vector<1x128xf32> to vector<10x128xf32>
    %129 = arith.addf %126, %128 : vector<10x128xf32>
    %c0_158 = arith.constant 0 : index
    %c0_159 = arith.constant 0 : index
    %c0_160 = arith.constant 0 : index
    %130 = vector.load %arg6[%c0_158, %c0_159, %c0_160] : memref<1x10x128xf32, #tpu.memory_space<vmem>>, vector<1x10x128xf32>
    %131 = vector.shape_cast %130 : vector<1x10x128xf32> to vector<10x128xf32>
    %132 = vector.shape_cast %129 : vector<10x128xf32> to vector<1x10x128xf32>
    tpu.vector_store %arg6[%c0_158, %c0_159, %c0_160], %132 {strides = array<i32>} : memref<1x10x128xf32, #tpu.memory_space<vmem>>, vector<1x10x128xf32>,
    return
  }
  func.func @transform_0(%arg0: i32, %arg1: i32) -> (i32, i32, i32) {
    %c0_i32 = arith.constant 0 : i32
    %c0_i32_0 = arith.constant 0 : i32
    %c0_i32_1 = arith.constant 0 : i32
    return %arg0, %c0_i32, %c0_i32_0 : i32, i32, i32
  }
  func.func @transform_1(%arg0: i32, %arg1: i32) -> (i32, i32, i32) {
    %c0_i32 = arith.constant 0 : i32
    %c0_i32_0 = arith.constant 0 : i32
    %c0_i32_1 = arith.constant 0 : i32
    %c0_i32_2 = arith.constant 0 : i32
    return %c0_i32, %c0_i32_0, %c0_i32_1 : i32, i32, i32
  }
  func.func @transform_2(%arg0: i32, %arg1: i32) -> (i32, i32) {
    %c0_i32 = arith.constant 0 : i32
    %c0_i32_0 = arith.constant 0 : i32
    %c0_i32_1 = arith.constant 0 : i32
    return %c0_i32, %c0_i32_0 : i32, i32
  }
  func.func @transform_3(%arg0: i32, %arg1: i32) -> (i32, i32) {
    %c0_i32 = arith.constant 0 : i32
    %c0_i32_0 = arith.constant 0 : i32
    %c0_i32_1 = arith.constant 0 : i32
    return %c0_i32, %c0_i32_0 : i32, i32
  }
  func.func @transform_4(%arg0: i32, %arg1: i32) -> (i32, i32, i32) {
    %c0_i32 = arith.constant 0 : i32
    %c0_i32_0 = arith.constant 0 : i32
    return %arg0, %c0_i32, %arg1 : i32, i32, i32
  }
}

</mosaic_0001>

<bundles_post_ra>
// kernel: _lambda_.4
= control target key start
LH: loop header
LB: loop body
LE: loop exit
PB: predicated region body
PF: predicated region fallthrough
CT: control target
= control target key end

     0   :  { %s1410_s15 = smov 0   ;;  %s1412_s16 = smov 0   ;;  %s1587_s0 = inlined_call_operand.vmem [shape: bf16[2,82,16], index: 0, kind: input, shape index: {}]   ;;  %s1588_s1 = inlined_call_operand.vmem [shape: bf16[4,16,128], index: 1, kind: input, shape index: {}]   ;;  %s1589_s2 = inlined_call_operand.vmem [shape: f32[1,128], index: 2, kind: input, shape index: {}]   ;;  %s1590_s3 = inlined_call_operand.vmem [shape: f32[72,1], index: 3, kind: input, shape index: {}]   ;;  %s1591_s4 = inlined_call_operand.vmem [shape: bf16[2,72,128], index: 4, kind: output, shape index: {}]  }
   0x1   :  { %s1414_s17 = smov 0  }
   0x2 LB: > { %s26_s3 = sadd.s32 1, %s1377_s16  ;;  %p1098_p0 = scmp.ge.s32.totalorder %s1381_s17, 1  ;;  %s1381_s17 = sphi %s1414_s17, %s14_s17   ;;  %s1377_s16 = sphi %s1412_s16, %s1593_s16   ;;  %s1373_s15 = sphi %s1410_s15, %s1592_s15  }
   0x3   : > { %p28_p1 = scmp.ge.s32.totalorder %s26_s3, 2  ;;  %p176_p2 = scmp.lt.s32.totalorder %s1381_s17, 3 }
   0x5   : > { %s1595_s3 = smov (%p28_p1, %s26_s3), 0  ;;  %p177_p3 = pnand %p1098_p0, %p176_p2 }
   0x6   : > { %v1335_v0 = vld [vmem:[%s1588_s1] sm:$0xff] (!%p177_p3)   ;;  %v1383_v1 = vmov (!%p177_p3), 0.0   ;;  %p205_p4 = scmp.lt.s32.totalorder (!%p177_p3), %s1373_s15, 1  ;;  %v1337_v2 = vld [vmem:[%s1588_s1 + $0x8] sm:$0xff] (!%p177_p3)   ;;  %vm1384_vm0 = vmmov (!%p177_p3), 0   ;;  %vm259_vm1 = vcmask (!%p177_p3), 130048  }
   0x7   : > { %180 = sbr.rel (%p177_p3) target bundleno = 321 (0x141), region = 36  ;;  %1219 = vmatprep.subr.bf16.mxu0 (!%p177_p3), %v1383_v1  ;;  %1241 = vmatprep.subr.bf16.mxu1 (!%p177_p3), %v1383_v1  ;;  %v1338_v3 = vld [vmem:[%s1588_s1 + $0x10] sm:$0xff] (!%p177_p3)   ;;  %vm394_vm2 = vsmask.f32 (!%p177_p3), 7424  ;;  %v1341_v16 = vld [vmem:[%s1588_s1 + $0x18] sm:$0xff] (!%p177_p3)   ;;  %vm789_vm3 = vcmask (!%p177_p3), 1046528  }
   0x8   : > { %1220 = vmatpush3.bf16.msra.mxu0 (!%p177_p3), %v1335_v0  ;;  %1221 = vmatprep.mubr.msk.bf16.mxu0 (!%p177_p3), %vm1384_vm0, %v1383_v1 }
   0x9   : > { %1242 = vmatpush3.bf16.msra.mxu1 (!%p177_p3), %v1337_v2  ;;  %1263 = vmatprep.subr.bf16.mxu0 (!%p177_p3), %v1383_v1 }
   0xa   : > { %1243 = vmatprep.mubr.msk.bf16.mxu1 (!%p177_p3), %vm1384_vm0, %v1383_v1  ;;  %1285 = vmatprep.subr.bf16.mxu1 (!%p177_p3), %v1383_v1 }
   0xe   : > { %s1597_s15 = smov (!%p205_p4, %s1373_s15), 1 }
   0xf   : > { %s1307_s22 = smul.u32 44, %s1597_s15 }
  0x10   : > { %s1308_s6 = smul.u32 36, %s1597_s15 }
  0x11   : > { %s1448_s25 = scalar_lea.vmem %s1587_s0, %s1307_s22 }
  0x12   : > { %v1336_v4 = vld [vmem:[%s1448_s25] sm:$0xff]   ;;  %v1340_v6 = vld [vmem:[%s1448_s25 + $0x8] sm:$0xff]   ;;  %v1343_v10 = vld [vmem:[%s1448_s25 + $0x10] sm:$0xff]   ;;  %s1561_s9 = scalar_lea.vmem %s1591_s4, %s1308_s6 }
  0x13   : > { %1222 = vmatmul.mubr.msk.bf16.vlgmr.msra.gmra.mrb[0].mxu0 %vm259_vm1, %v1336_v4  ;;  %v1339_v5 = vld [vmem:[%s1448_s25] sm:$0xff]   ;;  %v403_v9 = vshll.u32 %v1340_v6, 16  ;;  %v1342_v13 = vld [vmem:[%s1448_s25 + $0x8] sm:$0xff]   ;;  %v411_v14 = vshll.u32 %v1343_v10, 16  ;;  %v407_v17 = vshrl.u32 %v1340_v6, 16  ;;  %v1345_v20 = vld [vmem:[%s1448_s25 + $0x18] sm:$0xff]  }
  0x14   : > { %1264 = vmatpush3.bf16.msra.mxu0 %v1338_v3  ;;  %1225 = vmatprep.mubr.msk.bf16.mxu0 %vm1384_vm0, %v1383_v1  ;;  %v396_v7 = vshrl.u32 %v1339_v5, 16  ;;  %v398_v8 = vshll.u32 %v1339_v5, 16  ;;  %v1344_v22 = vld [vmem:[%s1448_s25 + $0x10] sm:$0xff]   ;;  %v415_v24 = vshrl.u32 %v1343_v10, 16  ;;  %v419_v25 = vshll.u32 %v1345_v20, 16  ;;  %v1346_v29 = vld [vmem:[%s1448_s25 + $0x18] sm:$0xff]  }
  0x15   : > { %v405_v12 = vrot.slane %v403_v9, 1  ;;  %v413_v19 = vrot.slane %v411_v14, 1  ;;  %v1347_v26 = vld [vmem:[%s1448_s25 + $0x20] sm:$0x1f]   ;;  %v423_v32 = vshrl.u32 %v1345_v20, 16  ;;  %v1350_v34 = vld [vmem:[%s1448_s25 + $0xc] sm:$0xff]  }
  0x16   : > { %v400_v11 = vrot.slane %v398_v8, 1  ;;  %v421_v28 = vrot.slane %v419_v25, 1  ;;  %v1349_v30 = vld [vmem:[%s1448_s25 + $0x4] sm:$0xff]   ;;  %v427_v33 = vshll.u32 %v1347_v26, 16  ;;  %v1348_v38 = vld [vmem:[%s1448_s25 + $0x20] ss:$0 sps:$4 sm:$0xff]  }
  0x17   : > { %v409_v21 = vor.u32 %v407_v17, %v405_v12  ;;  %v417_v27 = vor.u32 %v415_v24, %v413_v19  ;;  %v595_v35 = vshll.u32 %v1349_v30, 16  ;;  %v593_v39 = vshrl.u32 %v1349_v30, 16  ;;  %v1353_v46 = vld [vmem:[%s1448_s25 + $0x14] sm:$0xff]   ;;  %v1351_v51 = vld [vmem:[%s1448_s25 + $0x4] sm:$0xfe]   ;;  %v1352_v52 = vld [vmem:[%s1448_s25 + $0xc] sm:$0xff]  }
  0x18   : > { %v401_v15 = vor.u32 %v400_v11, %v396_v7  ;;  %v425_v36 = vor.u32 %v423_v32, %v421_v28  ;;  %v429_v37 = vrot.slane %v427_v33, 1  ;;  %v600_v41 = vshll.u32 %v1350_v34, 16  ;;  %v1355_v55 = vld [vmem:[%s1448_s25 + $0x1c] sm:$0xff]   ;;  %v1354_v62 = vld [vmem:[%s1448_s25 + $0x14] sm:$0xff]   ;;  %v1357_v2 = vld [vmem:[%s1448_s25 + $0x24] sm:$0x1f]  }
  0x19   : > { %v414_v23 = vsel %vm394_vm2, %v409_v21, %v413_v19  ;;  %v422_v31 = vsel %vm394_vm2, %v417_v27, %v421_v28  ;;  %v597_v40 = vrot.slane %v595_v35, 1  ;;  %v431_v43 = vshrl.u32 %v1347_v26, 16  ;;  %v1356_v8 = vld [vmem:[%s1448_s25 + $0x1c] sm:$0xff]   ;;  %v1358_v14 = vld [vmem:[%s1448_s25 + $0x24] sm:$0x1f]  }
  0x1a   : > { %v406_v18 = vsel %vm394_vm2, %v401_v15, %v405_v12  ;;  %v430_v42 = vsel %vm394_vm2, %v425_v36, %v429_v37  ;;  %v602_v45 = vrot.slane %v600_v41, 1  ;;  %v604_v49 = vshrl.u32 %v1350_v34, 16 }
  0x1b   : > { %1226 = vmatmul.mubr.msk.bf16.gmra.mrb[4].mxu0 %vm259_vm1, %v1342_v13  ;;  %1244 = vmatmul.mubr.msk.bf16.vlgmr.msra.gmra.mrb[0].mxu1 %vm259_vm1, %v406_v18  ;;  %v598_v44 = vor.u32 %v597_v40, %v593_v39  ;;  %v433_v47 = vor.u32 %v431_v43, %v429_v37  ;;  %v608_v50 = vshll.u32 %v1353_v46, 16  ;;  %v790_v56 = vrot.slane %v1351_v51, 1 }
  0x1c   : > { %1229 = vmatprep.mubr.msk.bf16.mxu0 %vm1384_vm0, %v1383_v1  ;;  %1286 = vmatpush3.bf16.msra.mxu1 %v1341_v16  ;;  %v606_v53 = vor.u32 %v604_v49, %v602_v45  ;;  %v791_v57 = vrot.slane %v1352_v52, 1  ;;  %v612_v59 = vshrl.u32 %v1353_v46, 16  ;;  %v616_v60 = vshll.u32 %v1355_v55, 16 }
  0x1d   : > { %1247 = vmatprep.mubr.msk.bf16.mxu1 %vm1384_vm0, %v1383_v1  ;;  %v603_v48 = vsel %vm394_vm2, %v598_v44, %v602_v45  ;;  %v610_v54 = vrot.slane %v608_v50, 1  ;;  %v793_v3 = vrot.slane %v1354_v62, 1  ;;  %v620_v5 = vshrl.u32 %v1355_v55, 16 }
  0x1e   : > { %v792_v61 = vsel %vm789_vm3, %v790_v56, %v791_v57  ;;  %v618_v0 = vrot.slane %v616_v60, 1  ;;  %v624_v6 = vshll.u32 %v1357_v2, 16  ;;  %v795_v11 = vrot.slane %v1356_v8, 1 }
  0x1f   : > { %v611_v58 = vsel %vm394_vm2, %v606_v53, %v610_v54  ;;  %v614_v63 = vor.u32 %v612_v59, %v610_v54  ;;  %v794_v7 = vsel %vm789_vm3, %v791_v57, %v793_v3  ;;  %v628_v15 = vshrl.u32 %v1357_v2, 16 }
  0x20   : > { %v622_v9 = vor.u32 %v620_v5, %v618_v0  ;;  %v626_v10 = vrot.slane %v624_v6, 1  ;;  %v796_v13 = vsel %vm789_vm3, %v793_v3, %v795_v11  ;;  %v797_v16 = vrot.slane %v1358_v14, 1 }
  0x21   : > { %v619_v4 = vsel %vm394_vm2, %v614_v63, %v618_v0 }
  0x22   : > { %v627_v12 = vsel %vm394_vm2, %v622_v9, %v626_v10  ;;  %v630_v17 = vor.u32 %v628_v15, %v626_v10  ;;  %v798_v18 = vsel %vm789_vm3, %v795_v11, %v797_v16 }
  0x23   : > { %1230 = vmatmul.mubr.msk.bf16.gmra.mrb[8].mxu0 %vm259_vm1, %v1344_v22  ;;  %1248 = vmatmul.mubr.msk.bf16.gmra.mrb[4].mxu1 %vm259_vm1, %v414_v23 }
  0x24   : > { %1233 = vmatprep.mubr.msk.bf16.mxu0 %vm1384_vm0, %v1383_v1  ;;  %1251 = vmatprep.mubr.msk.bf16.mxu1 %vm1384_vm0, %v1383_v1 }
  0x2b   : > { %1234 = vmatmul.mubr.msk.bf16.gmra.mrb[12].mxu0 %vm259_vm1, %v1346_v29  ;;  %1252 = vmatmul.mubr.msk.bf16.gmra.mrb[8].mxu1 %vm259_vm1, %v422_v31 }
  0x2c   : > { %1237 = vmatprep.mubr.msk.bf16.mxu0 %vm1384_vm0, %v1383_v1  ;;  %1255 = vmatprep.mubr.msk.bf16.mxu1 %vm1384_vm0, %v1383_v1 }
  0x33   : > { %1238 = vmatmul.mubr.msk.bf16.gmra.mrb[16].mxu0 %vm259_vm1, %v1348_v38  ;;  %1256 = vmatmul.mubr.msk.bf16.gmra.mrb[12].mxu1 %vm259_vm1, %v430_v42 }
  0x34   : > { %1265 = vmatprep.mubr.msk.bf16.mxu0 %vm1384_vm0, %v1383_v1  ;;  %1259 = vmatprep.mubr.msk.bf16.mxu1 %vm1384_vm0, %v1383_v1 }
  0x3b   : > { %1266 = vmatmul.mubr.msk.bf16.vlgmr.msra.gmra.mrb[20].mxu0 %vm259_vm1, %v603_v48  ;;  %1260 = vmatmul.mubr.msk.bf16.gmra.mrb[16].mxu1 %vm259_vm1, %v433_v47 }
  0x3c   : > { %1269 = vmatprep.mubr.msk.bf16.mxu0 %vm1384_vm0, %v1383_v1  ;;  %1287 = vmatprep.mubr.msk.bf16.mxu1 %vm1384_vm0, %v1383_v1 }
  0x43   : > { %1270 = vmatmul.mubr.msk.bf16.gmra.mrb[24].mxu0 %vm259_vm1, %v611_v58  ;;  %1288 = vmatmul.mubr.msk.bf16.vlgmr.msra.gmra.mrb[20].mxu1 %vm259_vm1, %v792_v61 }
  0x44   : > { %1273 = vmatprep.mubr.msk.bf16.mxu0 %vm1384_vm0, %v1383_v1  ;;  %1291 = vmatprep.mubr.msk.bf16.mxu1 %vm1384_vm0, %v1383_v1 }
  0x4b   : > { %1274 = vmatmul.mubr.msk.bf16.gmra.mrb[28].mxu0 %vm259_vm1, %v619_v4  ;;  %1292 = vmatmul.mubr.msk.bf16.gmra.mrb[24].mxu1 %vm259_vm1, %v794_v7 }
  0x4c   : > { %1277 = vmatprep.mubr.msk.bf16.mxu0 %vm1384_vm0, %v1383_v1  ;;  %1295 = vmatprep.mubr.msk.bf16.mxu1 %vm1384_vm0, %v1383_v1 }
  0x53   : > { %1278 = vmatmul.mubr.msk.bf16.gmra.mrb[32].mxu0 %vm259_vm1, %v627_v12  ;;  %1296 = vmatmul.mubr.msk.bf16.gmra.mrb[28].mxu1 %vm259_vm1, %v796_v13  ;;  %v1553_v12 = vld [vmem:[%s1589_s2] ss:$0 sm:$0xff] }
  0x54   : > { %1281 = vmatprep.mubr.msk.bf16.mxu0 %vm1384_vm0, %v1383_v1  ;;  %1299 = vmatprep.mubr.msk.bf16.mxu1 %vm1384_vm0, %v1383_v1 }
  0x5b   : > { %1282 = vmatmul.mubr.msk.bf16.gmra.mrb[36].mxu0 %vm259_vm1, %v630_v17  ;;  %1300 = vmatmul.mubr.msk.bf16.gmra.mrb[32].mxu1 %vm259_vm1, %v798_v18 }
  0x5c   : > { %1303 = vmatprep.mubr.msk.bf16.mxu1 %vm1384_vm0, %v1383_v1 }
  0x63   : > { %1304 = vmatmul.mubr.msk.bf16.gmra.mrb[36].mxu1 %vm259_vm1, %v797_v16 }
  0xe6   : > { %v309_v19 = vpop.f32.mrb[0].mxu0 }
  0xe7   : > { %v1223_v20 = vpop.f32.mrb[1].mxu0 }
  0xe8   : > { %v312_v21 = vpop.f32.mrb[2].mxu0 }
  0xe9   : > { %v1224_v22 = vpop.f32.mrb[3].mxu0 }
  0xee   : > { %v317_v23 = vpop.f32.mrb[4].mxu0  ;;  %v489_v24 = vpop.f32.mrb[0].mxu1 }
  0xef   : > { %v1227_v25 = vpop.f32.mrb[5].mxu0  ;;  %v536_v26 = vadd.f32 %v489_v24, %v309_v19  ;;  %v1245_v27 = vpop.f32.mrb[1].mxu1 }
  0xf0   : > { %v320_v28 = vpop.f32.mrb[6].mxu0  ;;  %v492_v29 = vpop.f32.mrb[2].mxu1 }
  0xf1   : > { %v1228_v30 = vpop.f32.mrb[7].mxu0  ;;  %v537_v31 = vadd.f32 %v492_v29, %v312_v21  ;;  %v1246_v32 = vpop.f32.mrb[3].mxu1 }
  0xf6   : > { %v325_v33 = vpop.f32.mrb[8].mxu0  ;;  %v497_v34 = vpop.f32.mrb[4].mxu1 }
  0xf7   : > { %v1231_v35 = vpop.f32.mrb[9].mxu0  ;;  %v538_v1 = vadd.f32 %v497_v34, %v317_v23  ;;  %v1249_v36 = vpop.f32.mrb[5].mxu1 }
  0xf8   : > { %v328_v37 = vpop.f32.mrb[10].mxu0  ;;  %v500_v38 = vpop.f32.mrb[6].mxu1 }
  0xf9   : > { %v1232_v39 = vpop.f32.mrb[11].mxu0  ;;  %v539_v40 = vadd.f32 %v500_v38, %v320_v28  ;;  %v1250_v41 = vpop.f32.mrb[7].mxu1 }
  0xfe   : > { %v333_v42 = vpop.f32.mrb[12].mxu0  ;;  %v505_v43 = vpop.f32.mrb[8].mxu1 }
  0xff   : > { %v1235_v44 = vpop.f32.mrb[13].mxu0  ;;  %v540_v45 = vadd.f32 %v505_v43, %v325_v33  ;;  %v1253_v46 = vpop.f32.mrb[9].mxu1 }
 0x100   : > { %v336_v47 = vpop.f32.mrb[14].mxu0  ;;  %v508_v48 = vpop.f32.mrb[10].mxu1 }
 0x101   : > { %v1236_v49 = vpop.f32.mrb[15].mxu0  ;;  %v541_v50 = vadd.f32 %v508_v48, %v328_v37  ;;  %v1254_v51 = vpop.f32.mrb[11].mxu1 }
 0x106   : > { %v341_v52 = vpop.f32.mrb[16].mxu0  ;;  %v513_v53 = vpop.f32.mrb[12].mxu1 }
 0x107   : > { %v1239_v54 = vpop.f32.mrb[17].mxu0  ;;  %v1544_v55 = vadd.f32 %v513_v53, %v333_v42  ;;  %v1257_v56 = vpop.f32.mrb[13].mxu1 }
 0x108   : > { %v344_v57 = vpop.f32.mrb[18].mxu0  ;;  %v516_v58 = vpop.f32.mrb[14].mxu1 }
 0x109   : > { %v1240_v59 = vpop.f32.mrb[19].mxu0  ;;  %v1546_v60 = vadd.f32 %v516_v58, %v336_v47  ;;  %v1258_v61 = vpop.f32.mrb[15].mxu1 }
 0x10e   : > { %v686_v62 = vpop.f32.mrb[20].mxu0  ;;  %v521_v63 = vpop.f32.mrb[16].mxu1 }
 0x10f   : > { %v733_v0 = vadd.f32 %v686_v62, %v536_v26  ;;  %v1267_v2 = vpop.f32.mrb[21].mxu0  ;;  %v1548_v3 = vadd.f32 %v521_v63, %v341_v52  ;;  %v1261_v4 = vpop.f32.mrb[17].mxu1 }
 0x110   : > { %v689_v5 = vpop.f32.mrb[22].mxu0  ;;  %v524_v6 = vpop.f32.mrb[18].mxu1 }
 0x111   : > { %v734_v7 = vadd.f32 %v689_v5, %v537_v31  ;;  %v1268_v8 = vpop.f32.mrb[23].mxu0  ;;  %v1262_v9 = vpop.f32.mrb[19].mxu1 }
 0x116   : > { %v694_v10 = vpop.f32.mrb[24].mxu0  ;;  %v854_v11 = vpop.f32.mrb[20].mxu1 }
 0x117   : > { %v735_v13 = vadd.f32 %v694_v10, %v538_v1  ;;  %v1271_v14 = vpop.f32.mrb[25].mxu0  ;;  %v901_v15 = vadd.f32 %v854_v11, %v733_v0  ;;  %v1289_v16 = vpop.f32.mrb[21].mxu1 }
 0x118   : > { %v697_v17 = vpop.f32.mrb[26].mxu0  ;;  %v857_v18 = vpop.f32.mrb[22].mxu1 }
 0x119   : > { %v736_v19 = vadd.f32 %v697_v17, %v539_v40  ;;  %v1272_v20 = vpop.f32.mrb[27].mxu0  ;;  %v935_v21 = vadd.f32 %v1553_v12, %v901_v15  ;;  %v902_v22 = vadd.f32 %v857_v18, %v734_v7  ;;  %v1290_v23 = vpop.f32.mrb[23].mxu1 }
 0x11b   : > { %v953_v24 = vmul.f32 0.2, %v935_v21  ;;  %v936_v25 = vadd.f32 %v1553_v12, %v902_v22  ;;  %vm944_vm4 = vcmp.ge.f32.partialorder %v935_v21, 0.0 }
 0x11d   : > { %vm945_vm5 = vcmp.ge.f32.partialorder %v936_v25, 0.0  ;;  %v954_v26 = vmul.f32 0.2, %v936_v25  ;;  %v962_v31 = vsel %vm944_vm4, %v935_v21, %v953_v24 }
 0x11e   : > { %v702_v27 = vpop.f32.mrb[28].mxu0  ;;  %v862_v28 = vpop.f32.mrb[24].mxu1 }
 0x11f   : > { %v737_v29 = vadd.f32 %v702_v27, %v540_v45  ;;  %v1275_v30 = vpop.f32.mrb[29].mxu0  ;;  %v963_v32 = vsel %vm945_vm5, %v936_v25, %v954_v26  ;;  %v903_v33 = vadd.f32 %v862_v28, %v735_v13  ;;  %v1293_v34 = vpop.f32.mrb[25].mxu1 }
 0x120   : > { %v705_v35 = vpop.f32.mrb[30].mxu0  ;;  %v1175_v1 = vpack.c.bf16 %v963_v32, %v962_v31  ;;  %v865_v36 = vpop.f32.mrb[26].mxu1 }
 0x121   : > { %v738_v37 = vadd.f32 %v705_v35, %v541_v50  ;;  %v1276_v38 = vpop.f32.mrb[31].mxu0  ;;  %v937_v39 = vadd.f32 %v1553_v12, %v903_v33  ;;  %v904_v40 = vadd.f32 %v865_v36, %v736_v19  ;;  %v1294_v41 = vpop.f32.mrb[27].mxu1 }
 0x122   : > { %1176 = vst [vmem:[%s1561_s9] sm:$0xff] %v1175_v1  }
 0x123   : > { %v955_v42 = vmul.f32 0.2, %v937_v39  ;;  %v938_v43 = vadd.f32 %v1553_v12, %v904_v40  ;;  %vm946_vm6 = vcmp.ge.f32.partialorder %v937_v39, 0.0 }
 0x125   : > { %vm947_vm7 = vcmp.ge.f32.partialorder %v938_v43, 0.0  ;;  %v956_v44 = vmul.f32 0.2, %v938_v43  ;;  %v964_v49 = vsel %vm946_vm6, %v937_v39, %v955_v42 }
 0x126   : > { %v710_v45 = vpop.f32.mrb[32].mxu0  ;;  %v870_v46 = vpop.f32.mrb[28].mxu1 }
 0x127   : > { %v739_v47 = vadd.f32 %v710_v45, %v1544_v55  ;;  %v1279_v48 = vpop.f32.mrb[33].mxu0  ;;  %v965_v50 = vsel %vm947_vm7, %v938_v43, %v956_v44  ;;  %v905_v51 = vadd.f32 %v870_v46, %v737_v29  ;;  %v1297_v52 = vpop.f32.mrb[29].mxu1 }
 0x128   : > { %v713_v53 = vpop.f32.mrb[34].mxu0  ;;  %v1180_v54 = vpack.c.bf16 %v965_v50, %v964_v49  ;;  %v873_v56 = vpop.f32.mrb[30].mxu1 }
 0x129   : > { %v740_v57 = vadd.f32 %v713_v53, %v1546_v60  ;;  %v1280_v58 = vpop.f32.mrb[35].mxu0  ;;  %v939_v59 = vadd.f32 %v1553_v12, %v905_v51  ;;  %v906_v61 = vadd.f32 %v873_v56, %v738_v37  ;;  %v1298_v62 = vpop.f32.mrb[31].mxu1 }
 0x12a   : > { %1192 = vst [vmem:[%s1561_s9 + $0x8] sm:$0xff] %v1180_v54  }
 0x12b   : > { %v957_v63 = vmul.f32 0.2, %v939_v59  ;;  %v940_v0 = vadd.f32 %v1553_v12, %v906_v61  ;;  %vm948_vm8 = vcmp.ge.f32.partialorder %v939_v59, 0.0 }
 0x12d   : > { %vm949_vm9 = vcmp.ge.f32.partialorder %v940_v0, 0.0  ;;  %v958_v55 = vmul.f32 0.2, %v940_v0  ;;  %v966_v7 = vsel %vm948_vm8, %v939_v59, %v957_v63 }
 0x12e   : > { %v718_v2 = vpop.f32.mrb[36].mxu0  ;;  %v878_v4 = vpop.f32.mrb[32].mxu1 }
 0x12f   : > { %v741_v5 = vadd.f32 %v718_v2, %v1548_v3  ;;  %v1283_v6 = vpop.f32.mrb[37].mxu0  ;;  %v967_v60 = vsel %vm949_vm9, %v940_v0, %v958_v55  ;;  %v907_v8 = vadd.f32 %v878_v4, %v739_v47  ;;  %v1301_v9 = vpop.f32.mrb[33].mxu1 }
 0x130   : > { %v721_v10 = vpop.f32.mrb[38].mxu0  ;;  %v1185_v11 = vpack.c.bf16 %v967_v60, %v966_v7  ;;  %v881_v13 = vpop.f32.mrb[34].mxu1 }
 0x131   : > { %v1284_v14 = vpop.f32.mrb[39].mxu0  ;;  %v941_v15 = vadd.f32 %v1553_v12, %v907_v8  ;;  %v908_v16 = vadd.f32 %v881_v13, %v740_v57  ;;  %v1302_v17 = vpop.f32.mrb[35].mxu1 }
 0x132   : > { %1193 = vst [vmem:[%s1561_s9 + $0x10] sm:$0xff] %v1185_v11  }
 0x133   : > { %v959_v18 = vmul.f32 0.2, %v941_v15  ;;  %v942_v19 = vadd.f32 %v1553_v12, %v908_v16  ;;  %vm950_vm10 = vcmp.ge.f32.partialorder %v941_v15, 0.0 }
 0x135   : > { %vm951_vm11 = vcmp.ge.f32.partialorder %v942_v19, 0.0  ;;  %v960_v3 = vmul.f32 0.2, %v942_v19  ;;  %v968_v21 = vsel %vm950_vm10, %v941_v15, %v959_v18 }
 0x136   : > { %v886_v20 = vpop.f32.mrb[36].mxu1 }
 0x137   : > { %v969_v22 = vsel %vm951_vm11, %v942_v19, %v960_v3  ;;  %v909_v23 = vadd.f32 %v886_v20, %v741_v5  ;;  %v1305_v24 = vpop.f32.mrb[37].mxu1 }
 0x138   : > { %v1190_v25 = vpack.c.bf16 %v969_v22, %v968_v21  ;;  %v889_v26 = vpop.f32.mrb[38].mxu1 }
 0x139   : > { %v943_v27 = vadd.f32 %v1553_v12, %v909_v23  ;;  %v1306_v28 = vpop.f32.mrb[39].mxu1 }
 0x13a   : > { %1194 = vst [vmem:[%s1561_s9 + $0x18] sm:$0xff] %v1190_v25  }
 0x13b   : > { %vm952_vm12 = vcmp.ge.f32.partialorder %v943_v27, 0.0  ;;  %v961_v29 = vmul.f32 0.2, %v943_v27 }
 0x13d   : > { %v970_v30 = vsel %vm952_vm12, %v943_v27, %v961_v29 }
 0x13e   : > { %v1171_v31 = vpack.c.bf16 %v970_v30, %v970_v30 }
 0x140   : > { %1016 = vst [vmem:[%s1561_s9 + $0x20] sm:$0xf] %v1171_v31 }
 0x141 PF: > { %s14_s17 = sadd.s32 1, %s1381_s17   ;;  %s1592_s15 = smov %s1377_s16 }
 0x142   : > { %p11_p5 = scmp.ge.s32.totalorder %s14_s17, 4   ;;  %s1593_s16 = smov %s1595_s3 }
 0x144   :  { %13 = sbr.rel (!%p11_p5) target bundleno = 2 (0x2), region = 69 }

// kernel: _lambda_.5
= control target key start
LH: loop header
LB: loop body
LE: loop exit
PB: predicated region body
PF: predicated region fallthrough
CT: control target
= control target key end

     0   :  { %s995_s15 = smov 0   ;;  %s997_s16 = smov 0   ;;  %s1090_s0 = inlined_call_operand.vmem [shape: bf16[2,26,32], index: 0, kind: input, shape index: {}]   ;;  %s1091_s1 = inlined_call_operand.vmem [shape: bf16[4,32,128], index: 1, kind: input, shape index: {}]   ;;  %s1092_s2 = inlined_call_operand.vmem [shape: f32[1,128], index: 2, kind: input, shape index: {}]   ;;  %s1093_s3 = inlined_call_operand.vmem [shape: f32[20,1], index: 3, kind: input, shape index: {}]   ;;  %s1094_s4 = inlined_call_operand.vmem [shape: bf16[2,20,128], index: 4, kind: output, shape index: {}]  }
   0x1   :  { %s999_s17 = smov 0  }
   0x2 LB: > { %s26_s18 = sadd.s32 1, %s963_s16  ;;  %p796_p0 = scmp.ge.s32.totalorder %s967_s17, 1  ;;  %s967_s17 = sphi %s999_s17, %s14_s17   ;;  %s963_s16 = sphi %s997_s16, %s1096_s16   ;;  %s959_s15 = sphi %s995_s15, %s1095_s15  }
   0x3   : > { %p28_p1 = scmp.ge.s32.totalorder %s26_s18, 2  ;;  %p176_p2 = scmp.lt.s32.totalorder %s967_s17, 3 }
   0x5   : > { %s1098_s18 = smov (%p28_p1, %s26_s18), 0  ;;  %p177_p3 = pnand %p796_p0, %p176_p2 }
   0x6   : > { %v927_v0 = vld [vmem:[%s1091_s1] sm:$0xff] (!%p177_p3)   ;;  %p205_p4 = scmp.lt.s32.totalorder (!%p177_p3), %s959_s15, 1  ;;  %v928_v1 = vld [vmem:[%s1091_s1 + $0x8] sm:$0xff] (!%p177_p3)   ;;  %v929_v2 = vld [vmem:[%s1091_s1 + $0x10] sm:$0xff] (!%p177_p3)   ;;  %vm246_vm0 = vcmask (!%p177_p3), 261120   ;;  %v969_v8 = vmov (!%p177_p3), 0  }
   0x7   : > { %180 = sbr.rel (%p177_p3) target bundleno = 336 (0x150), region = 36  ;;  %867 = vmatprep.subr.bf16.mxu0 (!%p177_p3), %v927_v0  ;;  %v932_v3 = vld [vmem:[%s1091_s1 + $0x18] sm:$0xff] (!%p177_p3)   ;;  %875 = vmatprep.subr.bf16.mxu1 (!%p177_p3), %v929_v2  ;;  %vm320_vm1 = vsmask.f32 (!%p177_p3), 7424  ;;  %v935_v4 = vld [vmem:[%s1091_s1 + $0x20] sm:$0xff] (!%p177_p3)   ;;  %v936_v12 = vld [vmem:[%s1091_s1 + $0x28] sm:$0xff] (!%p177_p3)  }
   0x8   : > { %868 = vmatpush3.bf16.msra.mxu0 (!%p177_p3), %v927_v0  ;;  %876 = vmatpush3.bf16.msra.mxu1 (!%p177_p3), %v929_v2  ;;  %v939_v16 = vld [vmem:[%s1091_s1 + $0x30] sm:$0xff] (!%p177_p3)   ;;  %vm430_vm2 = vsmask.f32 (!%p177_p3), 5376  ;;  %v940_v21 = vld [vmem:[%s1091_s1 + $0x38] sm:$0xff] (!%p177_p3)   ;;  %vm542_vm3 = vcmask (!%p177_p3), 1044480   ;;  %v634_v36 = vld [vmem:[%s1093_s3] sm:$0xff] (!%p177_p3) }
   0x9   : > { %869 = vmatprep.subr.bf16.mxu0 (!%p177_p3), %v928_v1  ;;  %877 = vmatprep.subr.bf16.mxu1 (!%p177_p3), %v932_v3  ;;  %v636_v37 = vld [vmem:[%s1093_s3 + $0x10] sm:$0xf] (!%p177_p3)  ;;  %v635_v41 = vld [vmem:[%s1093_s3 + $0x8] sm:$0xff] (!%p177_p3)  ;;  %v836_v0 = vld [vmem:[%s1092_s2] ss:$0 sm:$0xff] (!%p177_p3)  ;;  %vm656_vm4 = vcmask (!%p177_p3), 1043456  }
   0xa   : > { %925 = vset.pattern.permute.xlu0 (!%p177_p3), %v969_v8  ;;  %926 = vset.pattern.permute.xlu1 (!%p177_p3), %v969_v8 }
   0xb   : > { %639 = vperm.xlu0 (!%p177_p3), %925, %v634_v36   ;;  %649 = vperm.xlu1 (!%p177_p3), %926, %v636_v37  }
   0xc   : > { %870 = vmatpush3.bf16.msra.mxu0 (!%p177_p3), %v928_v1  ;;  %878 = vmatpush3.bf16.msra.mxu1 (!%p177_p3), %v932_v3 }
   0xd   : > { %883 = vmatprep.subr.bf16.mxu0 (!%p177_p3), %v935_v4  ;;  %891 = vmatprep.subr.bf16.mxu1 (!%p177_p3), %v939_v16 }
   0xe   : > { %s1100_s15 = smov (!%p205_p4, %s959_s15), 1 }
   0xf   : > { %s842_s27 = sshll.u32 %s1100_s15, 4  ;;  %644 = vperm.xlu0 %925, %v635_v41   ;;  %s899_s25 = smul.u32 12, %s1100_s15 }
  0x10   : > { %s1034_s6 = scalar_lea.vmem %s1090_s0, %s842_s27 }
  0x11   : > { %v930_v5 = vld [vmem:[%s1034_s6] sm:$0xff]   ;;  %v931_v6 = vld [vmem:[%s1034_s6 + $0x8] ss:$0 sps:$4 sm:$0x33]   ;;  %s217_s28 = scalar_lea.vmem %s1094_s4, %s899_s25 }
  0x12   : > { %v933_v7 = vld [vmem:[%s1034_s6] sm:$0xff]   ;;  %871 = vmatprep.mubr.msk.bf16.mxu0 %vm246_vm0, %v930_v5  ;;  %v934_v9 = vld [vmem:[%s1034_s6 + $0x8] ss:$0 sps:$4 sm:$0x77]  }
  0x13   : > { %v322_v10 = vshrl.u32 %v933_v7, 16  ;;  %v324_v11 = vshll.u32 %v933_v7, 16  ;;  %872 = vmatmul.mubr.msk.bf16.vlgmr.msra.gmra.mrb[0].mxu0 %vm246_vm0, %v931_v6  ;;  %v329_v14 = vshll.u32 %v934_v9, 16  ;;  %v333_v15 = vshrl.u32 %v934_v9, 16  ;;  %v937_v17 = vld [vmem:[%s1034_s6] sm:$0xfc]  }
  0x14   : > { %884 = vmatpush3.bf16.msra.mxu0 %v935_v4  ;;  %v938_v18 = vld [vmem:[%s1034_s6 + $0x8] sm:$0x1f]   ;;  %v432_v22 = vshrl.u32 %v937_v17, 16  ;;  %v435_v23 = vshll.u32 %v937_v17, 16  ;;  %v941_v32 = vld [vmem:[%s1034_s6] sm:$0xf8]  }
  0x15   : > { %v326_v13 = vrot.slane %v324_v11, 1  ;;  %885 = vmatprep.subr.bf16.mxu0 %v936_v12  ;;  %v331_v20 = vrot.slane %v329_v14, 1  ;;  %v440_v24 = vshrl.u32 %v938_v18, 16  ;;  %v443_v25 = vshll.u32 %v938_v18, 16  ;;  %v942_v33 = vld [vmem:[%s1034_s6 + $0x8] sm:$0x1f]  }
  0x16   : > { %v434_v28 = vrot.slane %v432_v22, 2  ;;  %v437_v29 = vrot.slane %v435_v23, 3  ;;  %v543_v38 = vrot.slane %v941_v32, 3  ;;  %v544_v39 = vrot.slane %v942_v33, 3 }
  0x17   : > { %v327_v19 = vor.u32 %v326_v13, %v322_v10  ;;  %v335_v27 = vor.u32 %v333_v15, %v331_v20  ;;  %v442_v30 = vrot.slane %v440_v24, 2  ;;  %v445_v31 = vrot.slane %v443_v25, 3 }
  0x18   : > { %886 = vmatpush3.bf16.msra.mxu0 %v936_v12  ;;  %v438_v34 = vor.u32 %v437_v29, %v434_v28  ;;  %v545_v42 = vsel %vm542_vm3, %v543_v38, %v544_v39 }
  0x19   : > { %v332_v26 = vsel %vm320_vm1, %v327_v19, %v331_v20  ;;  %v446_v35 = vor.u32 %v445_v31, %v442_v30 }
  0x1a   : > { %879 = vmatprep.mubr.msk.bf16.mxu1 %vm246_vm0, %v332_v26 }
  0x1b   : > { %880 = vmatmul.mubr.msk.bf16.vlgmr.msra.gmra.mrb[0].mxu1 %vm246_vm0, %v335_v27  ;;  %v447_v40 = vsel %vm430_vm2, %v438_v34, %v446_v35 }
  0x1c   : > { %892 = vmatpush3.bf16.msra.mxu1 %v939_v16  ;;  %887 = vmatprep.mubr.msk.bf16.mxu0 %vm246_vm0, %v447_v40 }
  0x1d   : > { %893 = vmatprep.subr.bf16.mxu1 %v940_v21  ;;  %888 = vmatmul.mubr.msk.bf16.vlgmr.msra.gmra.mrb[4].mxu0 %vm246_vm0, %v446_v35 }
  0x1e   : > { %895 = vmatprep.mubr.msk.bf16.mxu1 %vm246_vm0, %v545_v42 }
  0x20   : > { %894 = vmatpush3.bf16.msra.mxu1 %v940_v21 }
  0x23   : > { %896 = vmatmul.mubr.msk.bf16.vlgmr.msra.gmra.mrb[4].mxu1 %vm246_vm0, %v544_v39 }
  0x8a   : > { %v640_v59 = vpop.permute.xlu0 %639  ;;  %v650_v15 = vpop.permute.xlu1 %649 }
  0x8e   : > { %v645_v8 = vpop.permute.xlu0 %644 }
  0xe6   : > { %v873_v43 = vpop.f32.mrb[0].mxu0 }
  0xe7   : > { %303 = vst [vmem:[#allocation2 + $0x10] sm:$0xf] %v873_v43  ;;  %v287_v44 = vpop.f32.mrb[1].mxu0 }
  0xe8   : > { %v874_v45 = vpop.f32.mrb[2].mxu0 }
  0xe9   : > { %v290_v46 = vpop.f32.mrb[3].mxu0 }
  0xee   : > { %v881_v47 = vpop.f32.mrb[0].mxu1  ;;  %v404_v48 = vld [vmem:[#allocation2 + $0x10] sm:$0xf] }
  0xef   : > { %v388_v49 = vpop.f32.mrb[1].mxu1  ;;  %v407_v50 = vadd.f32 %v881_v47, %v404_v48 }
  0xf0   : > { %v405_v51 = vadd.f32 %v388_v49, %v287_v44  ;;  %v882_v52 = vpop.f32.mrb[2].mxu1  ;;  %v889_v55 = vpop.f32.mrb[4].mxu0 }
  0xf1   : > { %v391_v53 = vpop.f32.mrb[3].mxu1  ;;  %410 = vst [vmem:[#allocation2 + $0x10] sm:$0xf] %v407_v50  ;;  %v500_v56 = vpop.f32.mrb[5].mxu0 }
  0xf2   : > { %v406_v54 = vadd.f32 %v391_v53, %v290_v46  ;;  %v517_v57 = vadd.f32 %v500_v56, %v405_v51  ;;  %v890_v58 = vpop.f32.mrb[6].mxu0 }
  0xf3   : > { %v503_v60 = vpop.f32.mrb[7].mxu0 }
  0xf4   : > { %v518_v62 = vadd.f32 %v503_v60, %v406_v54 }
  0xf6   : > { %v897_v61 = vpop.f32.mrb[4].mxu1 }
  0xf7   : > { %v598_v63 = vpop.f32.mrb[5].mxu1 }
  0xf8   : > { %v615_v1 = vadd.f32 %v598_v63, %v517_v57  ;;  %v898_v2 = vpop.f32.mrb[6].mxu1  ;;  %v516_v3 = vld [vmem:[#allocation2 + $0x10] sm:$0xf] }
  0xf9   : > { %v601_v4 = vpop.f32.mrb[7].mxu1  ;;  %v519_v5 = vadd.f32 %v889_v55, %v516_v3 }
  0xfa   : > { %v616_v6 = vadd.f32 %v601_v4, %v518_v62  ;;  %v631_v7 = vadd.f32 %v836_v0, %v615_v1 }
  0xfb   : > { %522 = vst [vmem:[#allocation2 + $0x10] sm:$0xf] %v519_v5 }
  0xfc   : > { %v632_v9 = vadd.f32 %v836_v0, %v616_v6  ;;  %v652_v10 = vmul.f32 %v640_v59, %v631_v7 }
  0xfe   : > { %v653_v11 = vmul.f32 %v645_v8, %v632_v9 }
 0x100   : > { %v655_v12 = vadd.f32 %v653_v11, %v652_v10 }
 0x102   : > { %v614_v13 = vld [vmem:[#allocation2 + $0x10] sm:$0xf] }
 0x103   : > { %v617_v14 = vadd.f32 %v897_v61, %v614_v13 }
 0x105   : > { %620 = vst [vmem:[#allocation2 + $0x10] sm:$0xf] %v617_v14 }
 0x10c   : > { %v623_v16 = vld [vmem:[#allocation2 + $0x10] sm:$0xf] }
 0x10d   : > { %v633_v17 = vadd.f32 %v836_v0, %v623_v16 }
 0x10f   : > { %v654_v18 = vmul.f32 %v650_v15, %v633_v17 }
 0x111   : > { %v657_v19 = vsel %vm656_vm4, %v654_v18, 0.0 }
 0x112   : > { %v658_v20 = vadd.f32 %v657_v19, %v655_v12 }
 0x114   : > { %v659_v21 = vrot.slane %v658_v20, 4 }
 0x116   : > { %v660_v22 = vadd.f32 %v659_v21, %v658_v20 }
 0x118   : > { %v661_v23 = vrot.slane %v660_v22, 2 }
 0x11a   : > { %v662_v24 = vadd.f32 %v661_v23, %v660_v22 }
 0x11c   : > { %v663_v25 = vrot.slane %v662_v24, 1 }
 0x11e   : > { %v664_v26 = vadd.f32 %v663_v25, %v662_v24 }
 0x120   : > { %v665_v27 = vmul.f32 0.0625, %v664_v26 }
 0x122   : > { %v666_v28 = vsub.f32 %v631_v7, %v665_v27  ;;  %v667_v29 = vsub.f32 %v632_v9, %v665_v27  ;;  %v668_v30 = vsub.f32 %v633_v17, %v665_v27 }
 0x124   : > { %v669_v31 = vmul.f32 %v666_v28, %v640_v59  ;;  %v670_v32 = vmul.f32 %v667_v29, %v645_v8  ;;  %v671_v33 = vmul.f32 %v668_v30, %v650_v15 }
 0x126   : > { %v672_v34 = vmul.f32 %v669_v31, %v669_v31  ;;  %v673_v35 = vmul.f32 %v670_v32, %v670_v32  ;;  %v674_v36 = vmul.f32 %v671_v33, %v671_v33 }
 0x128   : > { %v675_v37 = vadd.f32 %v673_v35, %v672_v34  ;;  %v676_v38 = vsel %vm656_vm4, %v674_v36, 0.0 }
 0x12a   : > { %v677_v39 = vadd.f32 %v676_v38, %v675_v37 }
 0x12c   : > { %v678_v40 = vrot.slane %v677_v39, 4 }
 0x12e   : > { %v679_v41 = vadd.f32 %v678_v40, %v677_v39 }
 0x130   : > { %v680_v42 = vrot.slane %v679_v41, 2 }
 0x132   : > { %v681_v43 = vadd.f32 %v680_v42, %v679_v41 }
 0x134   : > { %v682_v44 = vrot.slane %v681_v43, 1 }
 0x136   : > { %v683_v45 = vadd.f32 %v682_v44, %v681_v43 }
 0x138   : > { %v684_v46 = vmul.f32 0.0625, %v683_v45 }
 0x13a   : > { %v685_v47 = vadd.f32 1e-05, %v684_v46 }
 0x13c   : > { %943 = vrsqrt.f32 %v685_v47 }
 0x146   : > { %v944_v48 = vpop.eup %943 }
 0x147   : > { %v687_v49 = vmul.f32 %v944_v48, %v666_v28  ;;  %v688_v50 = vmul.f32 %v944_v48, %v667_v29  ;;  %v689_v51 = vmul.f32 %v944_v48, %v668_v30 }
 0x149   : > { %vm690_vm5 = vcmp.ge.f32.partialorder %v687_v49, 0.0  ;;  %vm691_vm6 = vcmp.ge.f32.partialorder %v688_v50, 0.0  ;;  %vm692_vm7 = vcmp.ge.f32.partialorder %v689_v51, 0.0  ;;  %v693_v52 = vmul.f32 0.2, %v687_v49 }
 0x14a   : > { %v694_v53 = vmul.f32 0.2, %v688_v50  ;;  %v695_v54 = vmul.f32 0.2, %v689_v51 }
 0x14b   : > { %v696_v55 = vsel %vm690_vm5, %v687_v49, %v693_v52 }
 0x14c   : > { %v697_v56 = vsel %vm691_vm6, %v688_v50, %v694_v53  ;;  %v698_v57 = vsel %vm692_vm7, %v689_v51, %v695_v54 }
 0x14d   : > { %v845_v58 = vpack.c.bf16 %v698_v57, %v698_v57  ;;  %v849_v59 = vpack.c.bf16 %v697_v56, %v696_v55 }
 0x14f   : > { %850 = vst [vmem:[%s217_s28] sm:$0xff] %v849_v59   ;;  %714 = vst [vmem:[%s217_s28 + $0x8] sm:$0x3] %v845_v58 }
 0x150 PF: > { %s14_s17 = sadd.s32 1, %s967_s17   ;;  %s1095_s15 = smov %s963_s16 }
 0x151   : > { %p11_p5 = scmp.ge.s32.totalorder %s14_s17, 4   ;;  %s1096_s16 = smov %s1098_s18 }
 0x153   :  { %13 = sbr.rel (!%p11_p5) target bundleno = 2 (0x2), region = 69 }

// kernel: _lambda_.6
= control target key start
LH: loop header
LB: loop body
LE: loop exit
PB: predicated region body
PF: predicated region fallthrough
CT: control target
= control target key end

     0   :  { %s2279_s15 = smov 0   ;;  %s2281_s16 = smov 0   ;;  %s2470_s0 = inlined_call_operand.vmem [shape: bf16[2,39,16], index: 0, kind: input, shape index: {}]   ;;  %s2471_s1 = inlined_call_operand.vmem [shape: bf16[16,16,128], index: 1, kind: input, shape index: {}]   ;;  %s2472_s2 = inlined_call_operand.vmem [shape: f32[1,128], index: 2, kind: input, shape index: {}]   ;;  %s2473_s3 = inlined_call_operand.vmem [shape: f32[18,1], index: 3, kind: input, shape index: {}]   ;;  %s2474_s4 = inlined_call_operand.vmem [shape: bf16[2,18,128], index: 4, kind: output, shape index: {}]  }
   0x1   :  { %s2283_s17 = smov 0  }
   0x2 LB: > { %s26_s18 = sadd.s32 1, %s2247_s16  ;;  %p1879_p0 = scmp.ge.s32.totalorder %s2251_s17, 1  ;;  %s2251_s17 = sphi %s2283_s17, %s14_s17   ;;  %s2247_s16 = sphi %s2281_s16, %s2476_s16   ;;  %s2243_s15 = sphi %s2279_s15, %s2475_s15  }
   0x3   : > { %p28_p1 = scmp.ge.s32.totalorder %s26_s18, 2  ;;  %p176_p2 = scmp.lt.s32.totalorder %s2251_s17, 3 }
   0x5   : > { %s2478_s18 = smov (%p28_p1, %s26_s18), 0  ;;  %p177_p3 = pnand %p1879_p0, %p176_p2 }
   0x6   : > { %v2179_v0 = vld [vmem:[%s2471_s1] sm:$0xff] (!%p177_p3)   ;;  %p205_p4 = scmp.lt.s32.totalorder (!%p177_p3), %s2243_s15, 1  ;;  %v2182_v1 = vld [vmem:[%s2471_s1 + $0x8] sm:$0xff] (!%p177_p3)   ;;  %v2185_v2 = vld [vmem:[%s2471_s1 + $0x10] sm:$0xff] (!%p177_p3)   ;;  %vm310_vm0 = vsmask.f32 (!%p177_p3), 7424 }
   0x7   : > { %180 = sbr.rel (%p177_p3) target bundleno = 457 (0x1c9), region = 36  ;;  %2054 = vmatprep.subr.bf16.mxu0 (!%p177_p3), %v2179_v0  ;;  %2060 = vmatprep.subr.bf16.mxu1 (!%p177_p3), %v2182_v1  ;;  %v2188_v3 = vld [vmem:[%s2471_s1 + $0x18] sm:$0xff] (!%p177_p3)   ;;  %vm238_vm1 = vcmask (!%p177_p3), 130048   ;;  %v2191_v4 = vld [vmem:[%s2471_s1 + $0x20] sm:$0xff] (!%p177_p3)   ;;  %vm409_vm2 = vcmask (!%p177_p3), 1046528   ;;  %v2194_v19 = vld [vmem:[%s2471_s1 + $0x28] sm:$0xff] (!%p177_p3)  }
   0x8   : > { %2055 = vmatpush3.bf16.msra.mxu0 (!%p177_p3), %v2179_v0  ;;  %2061 = vmatpush3.bf16.msra.mxu1 (!%p177_p3), %v2182_v1  ;;  %vm496_vm3 = vsmask.f32 (!%p177_p3), 6400  ;;  %v2197_v30 = vld [vmem:[%s2471_s1 + $0x30] sm:$0xff] (!%p177_p3)   ;;  %vm597_vm4 = vcmask (!%p177_p3), 1044480   ;;  %vm687_vm5 = vsmask.f32 (!%p177_p3), 4352 }
   0x9   : > { %2066 = vmatprep.subr.bf16.mxu0 (!%p177_p3), %v2185_v2  ;;  %2072 = vmatprep.subr.bf16.mxu1 (!%p177_p3), %v2188_v3  ;;  %v2200_v51 = vld [vmem:[%s2471_s1 + $0x38] sm:$0xff] (!%p177_p3)   ;;  %v2203_v53 = vld [vmem:[%s2471_s1 + $0x40] sm:$0xff] (!%p177_p3)   ;;  %vm969_vm6 = vcmask (!%p177_p3), 1045504   ;;  %vm1056_vm7 = vsmask.f32 (!%p177_p3), 5376  ;;  %vm1739_vm8 = vcmask (!%p177_p3), 1041408  }
   0xe   : > { %s2480_s15 = smov (!%p205_p4, %s2243_s15), 1 }
   0xf   : > { %s2150_s27 = smul.u32 20, %s2480_s15 }
  0x10   : > { %s2151_s19 = smul.u32 12, %s2480_s15 }
  0x11   : > { %s2315_s30 = scalar_lea.vmem %s2470_s0, %s2150_s27 }
  0x12   : > { %v2180_v5 = vld [vmem:[%s2315_s30] sm:$0xff]   ;;  %v2181_v6 = vld [vmem:[%s2315_s30 + $0x8] ss:$0 sps:$4 sm:$0x11]   ;;  %s217_s22 = scalar_lea.vmem %s2474_s4, %s2151_s19 }
  0x13   : > { %v2183_v7 = vld [vmem:[%s2315_s30] sm:$0xff]   ;;  %2056 = vmatprep.mubr.msk.bf16.mxu0 %vm238_vm1, %v2180_v5  ;;  %v2184_v8 = vld [vmem:[%s2315_s30 + $0x8] ss:$0 sps:$4 sm:$0x33]  }
  0x14   : > { %2057 = vmatmul.mubr.msk.bf16.vlgmr.msra.gmra.mrb[0].mxu0 %vm238_vm1, %v2181_v6  ;;  %v312_v9 = vshrl.u32 %v2183_v7, 16  ;;  %v314_v10 = vshll.u32 %v2183_v7, 16  ;;  %v319_v12 = vshll.u32 %v2184_v8, 16  ;;  %v323_v13 = vshrl.u32 %v2184_v8, 16  ;;  %v2186_v14 = vld [vmem:[%s2315_s30] sm:$0xfe]  }
  0x15   : > { %2067 = vmatpush3.bf16.msra.mxu0 %v2185_v2  ;;  %v2187_v15 = vld [vmem:[%s2315_s30 + $0x8] ss:$0 sps:$4 sm:$0x33]   ;;  %v410_v18 = vrot.slane %v2186_v14, 1  ;;  %v2189_v21 = vld [vmem:[%s2315_s30] sm:$0xfe]  }
  0x16   : > { %v316_v11 = vrot.slane %v314_v10, 1  ;;  %2078 = vmatprep.subr.bf16.mxu0 %v2191_v4  ;;  %v321_v17 = vrot.slane %v319_v12, 1  ;;  %v411_v20 = vrot.slane %v2187_v15, 1  ;;  %v2190_v22 = vld [vmem:[%s2315_s30 + $0x8] ss:$0 sps:$4 sm:$0x77]  }
  0x17   : > { %v498_v26 = vshrl.u32 %v2189_v21, 16  ;;  %v501_v27 = vshll.u32 %v2189_v21, 16  ;;  %v506_v28 = vshrl.u32 %v2190_v22, 16  ;;  %v2192_v29 = vld [vmem:[%s2315_s30] sm:$0xf8]   ;;  %v509_v31 = vshll.u32 %v2190_v22, 16 }
  0x18   : > { %v317_v16 = vor.u32 %v316_v11, %v312_v9  ;;  %v325_v24 = vor.u32 %v323_v13, %v321_v17  ;;  %v412_v25 = vsel %vm409_vm2, %v410_v18, %v411_v20  ;;  %v2193_v32 = vld [vmem:[%s2315_s30 + $0x8] ss:$0 sps:$4 sm:$0xff]   ;;  %v598_v36 = vrot.slane %v2192_v29, 3  ;;  %v2195_v41 = vld [vmem:[%s2315_s30] sm:$0xf8]   ;;  %v2209_v10 = vld [vmem:[%s2471_s1 + $0x50] sm:$0xff]  }
  0x19   : > { %2068 = vmatprep.mubr.msk.bf16.mxu0 %vm238_vm1, %v412_v25  ;;  %v500_v33 = vrot.slane %v498_v26, 1  ;;  %v503_v34 = vrot.slane %v501_v27, 2  ;;  %v508_v35 = vrot.slane %v506_v28, 1  ;;  %v511_v37 = vrot.slane %v509_v31, 2  ;;  %v2201_v39 = vld [vmem:[%s2315_s30 + $0x4] sm:$0xff]  }
  0x1a   : > { %v322_v23 = vsel %vm310_vm0, %v317_v16, %v321_v17  ;;  %v599_v38 = vrot.slane %v2193_v32, 3  ;;  %v2196_v42 = vld [vmem:[%s2315_s30 + $0x8] sm:$0x1f]   ;;  %v689_v46 = vshrl.u32 %v2195_v41, 16  ;;  %v692_v47 = vshll.u32 %v2195_v41, 16  ;;  %v2215_v32 = vld [vmem:[%s2471_s1 + $0x60] sm:$0xff]  }
  0x1b   : > { %2062 = vmatprep.mubr.msk.bf16.mxu1 %vm238_vm1, %v322_v23  ;;  %v504_v40 = vor.u32 %v503_v34, %v500_v33  ;;  %v512_v43 = vor.u32 %v511_v37, %v508_v35  ;;  %v2198_v45 = vld [vmem:[%s2315_s30 + $0x4] sm:$0xff]   ;;  %v697_v48 = vshrl.u32 %v2196_v42, 16  ;;  %v700_v49 = vshll.u32 %v2196_v42, 16  ;;  %v2202_v60 = vld [vmem:[%s2315_s30 + $0xc] ss:$0 sps:$4 sm:$0x33]  }
  0x1c   : > { %2063 = vmatmul.mubr.msk.bf16.vlgmr.msra.gmra.mrb[0].mxu1 %vm238_vm1, %v325_v24  ;;  %2069 = vmatmul.mubr.msk.bf16.vlgmr.msra.gmra.mrb[4].mxu0 %vm238_vm1, %v411_v20  ;;  %v600_v44 = vsel %vm597_vm4, %v598_v36, %v599_v38  ;;  %v872_v52 = vshrl.u32 %v2201_v39, 16  ;;  %v691_v54 = vrot.slane %v689_v46, 3  ;;  %v694_v55 = vrot.slane %v692_v47, 4  ;;  %v2199_v63 = vld [vmem:[%s2315_s30 + $0xc] ss:$0 sps:$4 sm:$0x11]  }
  0x1d   : > { %2073 = vmatpush3.bf16.msra.mxu1 %v2188_v3  ;;  %2079 = vmatpush3.bf16.msra.mxu0 %v2191_v4  ;;  %v513_v50 = vsel %vm496_vm3, %v504_v40, %v512_v43  ;;  %v699_v56 = vrot.slane %v697_v48, 3  ;;  %v702_v57 = vrot.slane %v700_v49, 4  ;;  %v874_v61 = vshll.u32 %v2201_v39, 16  ;;  %v2204_v3 = vld [vmem:[%s2315_s30 + $0x4] sm:$0xfc]  }
  0x1e   : > { %2084 = vmatprep.subr.bf16.mxu1 %v2194_v19  ;;  %2090 = vmatprep.subr.bf16.mxu0 %v2197_v30  ;;  %v695_v58 = vor.u32 %v694_v55, %v691_v54  ;;  %v879_v1 = vshll.u32 %v2202_v60, 16  ;;  %v883_v2 = vshrl.u32 %v2202_v60, 16  ;;  %v2205_v4 = vld [vmem:[%s2315_s30 + $0xc] ss:$0 sps:$4 sm:$0x77]   ;;  %v970_v8 = vrot.slane %v2204_v3, 2 }
  0x1f   : > { %2080 = vmatprep.mubr.msk.bf16.mxu0 %vm238_vm1, %v600_v44  ;;  %2074 = vmatprep.mubr.msk.bf16.mxu1 %vm238_vm1, %v513_v50  ;;  %v703_v59 = vor.u32 %v702_v57, %v699_v56  ;;  %v876_v0 = vrot.slane %v874_v61, 1  ;;  %v2206_v7 = vld [vmem:[%s2471_s1 + $0x48] sm:$0xff]   ;;  %v971_v9 = vrot.slane %v2205_v4, 2  ;;  %v2221_v54 = vld [vmem:[%s2471_s1 + $0x70] sm:$0xff]   ;;  %v1717_v55 = vld [vmem:[%s2473_s3] sm:$0xff] }
  0x20   : > { %v881_v6 = vrot.slane %v879_v1, 1  ;;  %v2207_v12 = vld [vmem:[%s2315_s30 + $0x4] sm:$0xfc]   ;;  %v2208_v13 = vld [vmem:[%s2315_s30 + $0xc] ss:$0 sps:$4 sm:$0xff]  }
  0x21   : > { %v704_v62 = vsel %vm687_vm5, %v695_v58, %v703_v59  ;;  %v877_v5 = vor.u32 %v876_v0, %v872_v52  ;;  %v972_v14 = vsel %vm969_vm6, %v970_v8, %v971_v9  ;;  %v1058_v15 = vshrl.u32 %v2207_v12, 16  ;;  %v2211_v24 = vld [vmem:[%s2315_s30 + $0xc] ss:$0 sps:$4 sm:$0xff]   ;;  %v2213_v31 = vld [vmem:[%s2315_s30 + $0x4] sm:$0xf8]  }
  0x22   : > { %v1061_v16 = vshll.u32 %v2207_v12, 16  ;;  %v1066_v17 = vshrl.u32 %v2208_v13, 16  ;;  %v1069_v18 = vshll.u32 %v2208_v13, 16  ;;  %v885_v25 = vor.u32 %v883_v2, %v881_v6  ;;  %v2214_v34 = vld [vmem:[%s2315_s30 + $0xc] sm:$0x1f]   ;;  %v2224_v12 = vld [vmem:[%s2471_s1 + $0x78] sm:$0xff]  }
  0x23   : > { %v882_v11 = vsel %vm310_vm0, %v877_v5, %v881_v6  ;;  %v1060_v20 = vrot.slane %v1058_v15, 2  ;;  %v1158_v29 = vrot.slane %v2211_v24, 3  ;;  %v1247_v36 = vshrl.u32 %v2213_v31, 16  ;;  %v2216_v40 = vld [vmem:[%s2315_s30 + $0x8] sm:$0xfe]  }
  0x24   : > { %2075 = vmatmul.mubr.msk.bf16.vlgmr.msra.gmra.mrb[4].mxu1 %vm238_vm1, %v512_v43  ;;  %2081 = vmatmul.mubr.msk.bf16.vlgmr.msra.gmra.mrb[8].mxu0 %vm238_vm1, %v599_v38  ;;  %v1063_v21 = vrot.slane %v1061_v16, 3  ;;  %v1068_v22 = vrot.slane %v1066_v17, 2  ;;  %v1071_v23 = vrot.slane %v1069_v18, 3  ;;  %v1250_v37 = vshll.u32 %v2213_v31, 16  ;;  %v2218_v50 = vld [vmem:[%s2471_s1 + $0x68] sm:$0xff]  }
  0x25   : > { %2085 = vmatpush3.bf16.msra.mxu1 %v2194_v19  ;;  %2091 = vmatpush3.bf16.msra.mxu0 %v2197_v30  ;;  %v2210_v19 = vld [vmem:[%s2315_s30 + $0x4] sm:$0xf8]   ;;  %v2212_v30 = vld [vmem:[%s2471_s1 + $0x58] sm:$0xff]   ;;  %v1255_v38 = vshrl.u32 %v2214_v34, 16  ;;  %v1258_v39 = vshll.u32 %v2214_v34, 16  ;;  %v1249_v41 = vrot.slane %v1247_v36, 3 }
  0x26   : > { %2092 = vmatprep.mubr.msk.bf16.mxu0 %vm238_vm1, %v2198_v45  ;;  %2096 = vmatprep.subr.bf16.mxu1 %v2200_v51  ;;  %v1157_v26 = vrot.slane %v2210_v19, 3  ;;  %v1064_v27 = vor.u32 %v1063_v21, %v1060_v20  ;;  %v1072_v28 = vor.u32 %v1071_v23, %v1068_v22  ;;  %v1252_v42 = vrot.slane %v1250_v37, 4  ;;  %v2217_v43 = vld [vmem:[%s2315_s30 + $0x10] ss:$0 sps:$4 sm:$0x33]   ;;  %v1718_v4 = vld [vmem:[%s2473_s3 + $0x8] sm:$0xff] }
  0x27   : > { %2102 = vmatprep.subr.bf16.mxu0 %v2203_v53  ;;  %2086 = vmatprep.mubr.msk.bf16.mxu1 %vm238_vm1, %v704_v62  ;;  %v1257_v44 = vrot.slane %v1255_v38, 3  ;;  %v1260_v45 = vrot.slane %v1258_v39, 4  ;;  %v1346_v46 = vrot.slane %v2216_v40, 1  ;;  %v1347_v48 = vrot.slane %v2217_v43, 1  ;;  %v2222_v0 = vld [vmem:[%s2315_s30 + $0x8] sm:$0xfc]  }
  0x28   : > { %v1073_v33 = vsel %vm1056_vm7, %v1064_v27, %v1072_v28  ;;  %v1159_v35 = vsel %vm597_vm4, %v1157_v26, %v1158_v29  ;;  %v1253_v47 = vor.u32 %v1252_v42, %v1249_v41  ;;  %v2253_v52 = vmov 0   ;;  %v2223_v3 = vld [vmem:[%s2315_s30 + $0x10] ss:$0 sps:$4 sm:$0x77]  }
  0x29   : > { %v1261_v49 = vor.u32 %v1260_v45, %v1257_v44  ;;  %2177 = vset.pattern.permute.xlu0 %v2253_v52  ;;  %2178 = vset.pattern.permute.xlu1 %v2253_v52  ;;  %v1533_v8 = vrot.slane %v2223_v3, 2 }
  0x2a   : > { %1722 = vperm.xlu0 %2177, %v1717_v55  }
  0x2b   : > { %v1262_v56 = vsel %vm687_vm5, %v1253_v47, %v1261_v49 }
  0x2c   : > { %2087 = vmatmul.mubr.msk.bf16.vlgmr.msra.gmra.mrb[8].mxu1 %vm238_vm1, %v703_v59  ;;  %2093 = vmatmul.mubr.msk.bf16.vlgmr.msra.gmra.mrb[12].mxu0 %vm238_vm1, %v2199_v63  ;;  %v1348_v59 = vsel %vm409_vm2, %v1346_v46, %v1347_v48 }
  0x2d   : > { %2097 = vmatpush3.bf16.msra.mxu1 %v2200_v51  ;;  %2098 = vmatprep.mubr.msk.bf16.mxu1 %vm238_vm1, %v882_v11  ;;  %v2219_v51 = vld [vmem:[%s2315_s30 + $0x8] sm:$0xfe]  }
  0x2e   : > { %2103 = vmatpush3.bf16.msra.mxu0 %v2203_v53  ;;  %2104 = vmatprep.mubr.msk.bf16.mxu0 %vm238_vm1, %v972_v14  ;;  %v2220_v53 = vld [vmem:[%s2315_s30 + $0x10] ss:$0 sps:$4 sm:$0x77]   ;;  %v1433_v57 = vshrl.u32 %v2219_v51, 16  ;;  %v1436_v58 = vshll.u32 %v2219_v51, 16 }
  0x2f   : > { %2108 = vmatprep.subr.bf16.mxu1 %v2206_v7  ;;  %2114 = vmatprep.subr.bf16.mxu0 %v2209_v10  ;;  %v1441_v60 = vshrl.u32 %v2220_v53, 16  ;;  %v1444_v61 = vshll.u32 %v2220_v53, 16 }
  0x30   : > { %v1435_v62 = vrot.slane %v1433_v57, 1  ;;  %v1438_v63 = vrot.slane %v1436_v58, 2  ;;  %1727 = vperm.xlu0 %2177, %v1718_v4  }
  0x31   : > { %v1443_v1 = vrot.slane %v1441_v60, 1  ;;  %v1446_v2 = vrot.slane %v1444_v61, 2 }
  0x32   : > { %v1439_v5 = vor.u32 %v1438_v63, %v1435_v62 }
  0x33   : > { %v1447_v6 = vor.u32 %v1446_v2, %v1443_v1 }
  0x34   : > { %2099 = vmatmul.mubr.msk.bf16.vlgmr.msra.gmra.mrb[12].mxu1 %vm238_vm1, %v885_v25  ;;  %2105 = vmatmul.mubr.msk.bf16.vlgmr.msra.gmra.mrb[16].mxu0 %vm238_vm1, %v971_v9  ;;  %v2225_v9 = vld [vmem:[%s2315_s30 + $0x8] sm:$0xfc]   ;;  %v1719_v25 = vld [vmem:[%s2473_s3 + $0x10] sm:$0x3] }
  0x35   : > { %2109 = vmatpush3.bf16.msra.mxu1 %v2206_v7  ;;  %2110 = vmatprep.mubr.msk.bf16.mxu1 %vm238_vm1, %v1073_v33  ;;  %v1532_v7 = vrot.slane %v2222_v0, 2  ;;  %v1448_v11 = vsel %vm496_vm3, %v1439_v5, %v1447_v6  ;;  %v1619_v13 = vshrl.u32 %v2225_v9, 16  ;;  %v1622_v14 = vshll.u32 %v2225_v9, 16 }
  0x36   : > { %2115 = vmatpush3.bf16.msra.mxu0 %v2209_v10  ;;  %2116 = vmatprep.mubr.msk.bf16.mxu0 %vm238_vm1, %v1159_v35  ;;  %v2226_v10 = vld [vmem:[%s2315_s30 + $0x10] ss:$0 sps:$4 sm:$0xff]  }
  0x37   : > { %2120 = vmatprep.subr.bf16.mxu1 %v2212_v30  ;;  %2126 = vmatprep.subr.bf16.mxu0 %v2215_v32  ;;  %v1627_v15 = vshrl.u32 %v2226_v10, 16  ;;  %v1630_v16 = vshll.u32 %v2226_v10, 16  ;;  %v1534_v17 = vsel %vm969_vm6, %v1532_v7, %v1533_v8  ;;  %v1621_v18 = vrot.slane %v1619_v13, 2 }
  0x38   : > { %v1624_v19 = vrot.slane %v1622_v14, 3  ;;  %1732 = vperm.xlu1 %2178, %v1719_v25  }
  0x39   : > { %v1629_v20 = vrot.slane %v1627_v15, 2  ;;  %v1632_v21 = vrot.slane %v1630_v16, 3 }
  0x3a   : > { %v1625_v22 = vor.u32 %v1624_v19, %v1621_v18 }
  0x3b   : > { %v1633_v23 = vor.u32 %v1632_v21, %v1629_v20 }
  0x3c   : > { %2111 = vmatmul.mubr.msk.bf16.vlgmr.msra.gmra.mrb[16].mxu1 %vm238_vm1, %v1072_v28  ;;  %2117 = vmatmul.mubr.msk.bf16.vlgmr.msra.gmra.mrb[20].mxu0 %vm238_vm1, %v1158_v29 }
  0x3d   : > { %2121 = vmatpush3.bf16.msra.mxu1 %v2212_v30  ;;  %2122 = vmatprep.mubr.msk.bf16.mxu1 %vm238_vm1, %v1262_v56  ;;  %v1634_v24 = vsel %vm1056_vm7, %v1625_v22, %v1633_v23 }
  0x3e   : > { %2127 = vmatpush3.bf16.msra.mxu0 %v2215_v32  ;;  %2128 = vmatprep.mubr.msk.bf16.mxu0 %vm238_vm1, %v1348_v59 }
  0x3f   : > { %2132 = vmatprep.subr.bf16.mxu1 %v2218_v50  ;;  %2138 = vmatprep.subr.bf16.mxu0 %v2221_v54 }
  0x44   : > { %2123 = vmatmul.mubr.msk.bf16.vlgmr.msra.gmra.mrb[20].mxu1 %vm238_vm1, %v1261_v49  ;;  %2129 = vmatmul.mubr.msk.bf16.vlgmr.msra.gmra.mrb[24].mxu0 %vm238_vm1, %v1347_v48 }
  0x45   : > { %2133 = vmatpush3.bf16.msra.mxu1 %v2218_v50  ;;  %2134 = vmatprep.mubr.msk.bf16.mxu1 %vm238_vm1, %v1448_v11 }
  0x46   : > { %2139 = vmatpush3.bf16.msra.mxu0 %v2221_v54  ;;  %2140 = vmatprep.mubr.msk.bf16.mxu0 %vm238_vm1, %v1534_v17 }
  0x47   : > { %2144 = vmatprep.subr.bf16.mxu1 %v2224_v12 }
  0x4c   : > { %2135 = vmatmul.mubr.msk.bf16.vlgmr.msra.gmra.mrb[24].mxu1 %vm238_vm1, %v1447_v6  ;;  %2141 = vmatmul.mubr.msk.bf16.vlgmr.msra.gmra.mrb[28].mxu0 %vm238_vm1, %v1533_v8 }
  0x4d   : > { %2145 = vmatpush3.bf16.msra.mxu1 %v2224_v12  ;;  %2146 = vmatprep.mubr.msk.bf16.mxu1 %vm238_vm1, %v1634_v24 }
  0x54   : > { %2147 = vmatmul.mubr.msk.bf16.vlgmr.msra.gmra.mrb[28].mxu1 %vm238_vm1, %v1633_v23 }
  0xe7   : > { %v2058_v26 = vpop.f32.mrb[0].mxu0 }
  0xe8   : > { %295 = vst [vmem:[#allocation2 + $0x10] sm:$0x3] %v2058_v26  ;;  %v279_v27 = vpop.f32.mrb[1].mxu0 }
  0xe9   : > { %v2059_v28 = vpop.f32.mrb[2].mxu0 }
  0xea   : > { %v282_v29 = vpop.f32.mrb[3].mxu0 }
  0xef   : > { %v388_v30 = vld [vmem:[#allocation2 + $0x10] sm:$0x3]  ;;  %v2064_v31 = vpop.f32.mrb[0].mxu1  ;;  %v2070_v34 = vpop.f32.mrb[4].mxu0 }
  0xf0   : > { %v391_v32 = vadd.f32 %v2064_v31, %v388_v30  ;;  %v372_v33 = vpop.f32.mrb[1].mxu1  ;;  %v459_v37 = vpop.f32.mrb[5].mxu0 }
  0xf1   : > { %v389_v35 = vadd.f32 %v372_v33, %v279_v27  ;;  %v2065_v36 = vpop.f32.mrb[2].mxu1  ;;  %v2071_v39 = vpop.f32.mrb[6].mxu0 }
  0xf2   : > { %394 = vst [vmem:[#allocation2 + $0x10] sm:$0x3] %v391_v32  ;;  %v375_v38 = vpop.f32.mrb[3].mxu1  ;;  %v462_v42 = vpop.f32.mrb[7].mxu0 }
  0xf3   : > { %v390_v40 = vadd.f32 %v375_v38, %v282_v29  ;;  %v476_v41 = vadd.f32 %v459_v37, %v389_v35 }
  0xf5   : > { %v477_v43 = vadd.f32 %v462_v42, %v390_v40 }
  0xf7   : > { %v2076_v44 = vpop.f32.mrb[4].mxu1  ;;  %v2082_v46 = vpop.f32.mrb[8].mxu0 }
  0xf8   : > { %v560_v45 = vpop.f32.mrb[5].mxu1  ;;  %v647_v50 = vpop.f32.mrb[9].mxu0 }
  0xf9   : > { %v475_v47 = vld [vmem:[#allocation2 + $0x10] sm:$0x3]  ;;  %v577_v48 = vadd.f32 %v560_v45, %v476_v41  ;;  %v2077_v49 = vpop.f32.mrb[6].mxu1  ;;  %v2083_v53 = vpop.f32.mrb[10].mxu0 }
  0xfa   : > { %v478_v51 = vadd.f32 %v2070_v34, %v475_v47  ;;  %v563_v52 = vpop.f32.mrb[7].mxu1  ;;  %v650_v56 = vpop.f32.mrb[11].mxu0 }
  0xfb   : > { %v578_v54 = vadd.f32 %v563_v52, %v477_v43  ;;  %v664_v55 = vadd.f32 %v647_v50, %v577_v48 }
  0xfc   : > { %481 = vst [vmem:[#allocation2 + $0x10] sm:$0x3] %v478_v51 }
  0xfd   : > { %v665_v57 = vadd.f32 %v650_v56, %v578_v54 }
  0xff   : > { %v2088_v58 = vpop.f32.mrb[8].mxu1  ;;  %v2094_v60 = vpop.f32.mrb[12].mxu0 }
 0x100   : > { %v751_v59 = vpop.f32.mrb[9].mxu1  ;;  %v834_v63 = vpop.f32.mrb[13].mxu0 }
 0x101   : > { %v768_v61 = vadd.f32 %v751_v59, %v664_v55  ;;  %v2089_v62 = vpop.f32.mrb[10].mxu1  ;;  %v2095_v1 = vpop.f32.mrb[14].mxu0 }
 0x102   : > { %v754_v0 = vpop.f32.mrb[11].mxu1  ;;  %v837_v5 = vpop.f32.mrb[15].mxu0 }
 0x103   : > { %v576_v2 = vld [vmem:[#allocation2 + $0x10] sm:$0x3]  ;;  %v769_v3 = vadd.f32 %v754_v0, %v665_v57  ;;  %v851_v4 = vadd.f32 %v834_v63, %v768_v61  ;;  %v1723_v63 = vpop.permute.xlu0 %1722 }
 0x104   : > { %v579_v6 = vadd.f32 %v2076_v44, %v576_v2  ;;  %v1992_v2 = vld [vmem:[%s2472_s2] ss:$0 sm:$0xff] }
 0x105   : > { %v852_v7 = vadd.f32 %v837_v5, %v769_v3 }
 0x106   : > { %582 = vst [vmem:[#allocation2 + $0x10] sm:$0x3] %v579_v6 }
 0x107   : > { %v2440_v8 = vpop.f32.mrb[12].mxu1  ;;  %v2442_v10 = vpop.f32.mrb[16].mxu0 }
 0x108   : > { %v932_v9 = vpop.f32.mrb[13].mxu1  ;;  %v1019_v13 = vpop.f32.mrb[17].mxu0 }
 0x109   : > { %v949_v11 = vadd.f32 %v932_v9, %v851_v4  ;;  %v2101_v12 = vpop.f32.mrb[14].mxu1  ;;  %v2107_v15 = vpop.f32.mrb[18].mxu0 }
 0x10a   : > { %v935_v14 = vpop.f32.mrb[15].mxu1  ;;  %v1022_v18 = vpop.f32.mrb[19].mxu0 }
 0x10b   : > { %v950_v16 = vadd.f32 %v935_v14, %v852_v7  ;;  %v1036_v17 = vadd.f32 %v1019_v13, %v949_v11  ;;  %v1728_v11 = vpop.permute.xlu0 %1727 }
 0x10d   : > { %v663_v19 = vld [vmem:[#allocation2 + $0x10] sm:$0x3]  ;;  %v1037_v20 = vadd.f32 %v1022_v18, %v950_v16 }
 0x10e   : > { %v666_v21 = vadd.f32 %v2082_v46, %v663_v19 }
 0x10f   : > { %v2444_v22 = vpop.f32.mrb[16].mxu1  ;;  %v2446_v24 = vpop.f32.mrb[20].mxu0 }
 0x110   : > { %669 = vst [vmem:[#allocation2 + $0x10] sm:$0x3] %v666_v21  ;;  %v1120_v23 = vpop.f32.mrb[17].mxu1  ;;  %v1206_v27 = vpop.f32.mrb[21].mxu0 }
 0x111   : > { %v1137_v25 = vadd.f32 %v1120_v23, %v1036_v17  ;;  %v2113_v26 = vpop.f32.mrb[18].mxu1  ;;  %v2119_v29 = vpop.f32.mrb[22].mxu0 }
 0x112   : > { %v1123_v28 = vpop.f32.mrb[19].mxu1  ;;  %v1209_v32 = vpop.f32.mrb[23].mxu0 }
 0x113   : > { %v1138_v30 = vadd.f32 %v1123_v28, %v1037_v20  ;;  %v1223_v31 = vadd.f32 %v1206_v27, %v1137_v25 }
 0x115   : > { %v1224_v33 = vadd.f32 %v1209_v32, %v1138_v30 }
 0x117   : > { %v767_v34 = vld [vmem:[#allocation2 + $0x10] sm:$0x3]  ;;  %v2124_v35 = vpop.f32.mrb[20].mxu1  ;;  %v2130_v38 = vpop.f32.mrb[24].mxu0 }
 0x118   : > { %v770_v36 = vadd.f32 %v2088_v58, %v767_v34  ;;  %v1309_v37 = vpop.f32.mrb[21].mxu1  ;;  %v1395_v41 = vpop.f32.mrb[25].mxu0 }
 0x119   : > { %v1326_v39 = vadd.f32 %v1309_v37, %v1223_v31  ;;  %v2125_v40 = vpop.f32.mrb[22].mxu1  ;;  %v2131_v43 = vpop.f32.mrb[26].mxu0 }
 0x11a   : > { %773 = vst [vmem:[#allocation2 + $0x10] sm:$0x3] %v770_v36  ;;  %v1312_v42 = vpop.f32.mrb[23].mxu1  ;;  %v1398_v46 = vpop.f32.mrb[27].mxu0 }
 0x11b   : > { %v1327_v44 = vadd.f32 %v1312_v42, %v1224_v33  ;;  %v1412_v45 = vadd.f32 %v1395_v41, %v1326_v39 }
 0x11d   : > { %v1413_v47 = vadd.f32 %v1398_v46, %v1327_v44 }
 0x11f   : > { %v2136_v48 = vpop.f32.mrb[24].mxu1  ;;  %v2142_v50 = vpop.f32.mrb[28].mxu0 }
 0x120   : > { %v1495_v49 = vpop.f32.mrb[25].mxu1  ;;  %v1581_v54 = vpop.f32.mrb[29].mxu0 }
 0x121   : > { %v850_v51 = vld [vmem:[#allocation2 + $0x10] sm:$0x3]  ;;  %v1512_v52 = vadd.f32 %v1495_v49, %v1412_v45  ;;  %v2137_v53 = vpop.f32.mrb[26].mxu1  ;;  %v2143_v57 = vpop.f32.mrb[30].mxu0 }
 0x122   : > { %v853_v55 = vadd.f32 %v2094_v60, %v850_v51  ;;  %v1498_v56 = vpop.f32.mrb[27].mxu1  ;;  %v1584_v61 = vpop.f32.mrb[31].mxu0 }
 0x123   : > { %v1513_v58 = vadd.f32 %v1498_v56, %v1413_v47  ;;  %v1598_v59 = vadd.f32 %v1581_v54, %v1512_v52 }
 0x124   : > { %856 = vst [vmem:[#allocation2 + $0x10] sm:$0x3] %v853_v55 }
 0x125   : > { %v1599_v62 = vadd.f32 %v1584_v61, %v1513_v58 }
 0x127   : > { %v2148_v0 = vpop.f32.mrb[28].mxu1 }
 0x128   : > { %v1681_v1 = vpop.f32.mrb[29].mxu1 }
 0x129   : > { %v1698_v3 = vadd.f32 %v1681_v1, %v1598_v59  ;;  %v2149_v4 = vpop.f32.mrb[30].mxu1 }
 0x12a   : > { %v1684_v5 = vpop.f32.mrb[31].mxu1 }
 0x12b   : > { %v948_v6 = vld [vmem:[#allocation2 + $0x10] sm:$0x3]  ;;  %v1699_v7 = vadd.f32 %v1684_v5, %v1599_v62  ;;  %v1714_v60 = vadd.f32 %v1992_v2, %v1698_v3 }
 0x12c   : > { %v951_v9 = vadd.f32 %v2440_v8, %v948_v6 }
 0x12d   : > { %v1715_v12 = vadd.f32 %v1992_v2, %v1699_v7  ;;  %v1735_v13 = vmul.f32 %v1723_v63, %v1714_v60 }
 0x12e   : > { %954 = vst [vmem:[#allocation2 + $0x10] sm:$0x3] %v951_v9 }
 0x12f   : > { %v1736_v14 = vmul.f32 %v1728_v11, %v1715_v12 }
 0x131   : > { %v1738_v15 = vadd.f32 %v1736_v14, %v1735_v13 }
 0x135   : > { %v1035_v16 = vld [vmem:[#allocation2 + $0x10] sm:$0x3] }
 0x136   : > { %v1038_v17 = vadd.f32 %v2442_v10, %v1035_v16 }
 0x138   : > { %1041 = vst [vmem:[#allocation2 + $0x10] sm:$0x3] %v1038_v17 }
 0x13f   : > { %v1136_v18 = vld [vmem:[#allocation2 + $0x10] sm:$0x3] }
 0x140   : > { %v1139_v19 = vadd.f32 %v2444_v22, %v1136_v18  ;;  %v1733_v22 = vpop.permute.xlu1 %1732 }
 0x142   : > { %1142 = vst [vmem:[#allocation2 + $0x10] sm:$0x3] %v1139_v19 }
 0x149   : > { %v1222_v20 = vld [vmem:[#allocation2 + $0x10] sm:$0x3] }
 0x14a   : > { %v1225_v21 = vadd.f32 %v2446_v24, %v1222_v20 }
 0x14c   : > { %1228 = vst [vmem:[#allocation2 + $0x10] sm:$0x3] %v1225_v21 }
 0x153   : > { %v1325_v23 = vld [vmem:[#allocation2 + $0x10] sm:$0x3] }
 0x154   : > { %v1328_v8 = vadd.f32 %v2124_v35, %v1325_v23 }
 0x156   : > { %1331 = vst [vmem:[#allocation2 + $0x10] sm:$0x3] %v1328_v8 }
 0x15d   : > { %v1411_v25 = vld [vmem:[#allocation2 + $0x10] sm:$0x3] }
 0x15e   : > { %v1414_v26 = vadd.f32 %v2130_v38, %v1411_v25 }
 0x160   : > { %1417 = vst [vmem:[#allocation2 + $0x10] sm:$0x3] %v1414_v26 }
 0x167   : > { %v1511_v27 = vld [vmem:[#allocation2 + $0x10] sm:$0x3] }
 0x168   : > { %v1514_v28 = vadd.f32 %v2136_v48, %v1511_v27 }
 0x16a   : > { %1517 = vst [vmem:[#allocation2 + $0x10] sm:$0x3] %v1514_v28 }
 0x171   : > { %v1597_v29 = vld [vmem:[#allocation2 + $0x10] sm:$0x3] }
 0x172   : > { %v1600_v10 = vadd.f32 %v2142_v50, %v1597_v29 }
 0x174   : > { %1603 = vst [vmem:[#allocation2 + $0x10] sm:$0x3] %v1600_v10 }
 0x17b   : > { %v1697_v30 = vld [vmem:[#allocation2 + $0x10] sm:$0x3] }
 0x17c   : > { %v1700_v31 = vadd.f32 %v2148_v0, %v1697_v30 }
 0x17e   : > { %1703 = vst [vmem:[#allocation2 + $0x10] sm:$0x3] %v1700_v31 }
 0x185   : > { %v1706_v32 = vld [vmem:[#allocation2 + $0x10] sm:$0x3] }
 0x186   : > { %v1716_v33 = vadd.f32 %v1992_v2, %v1706_v32 }
 0x188   : > { %v1737_v24 = vmul.f32 %v1733_v22, %v1716_v33 }
 0x18a   : > { %v1740_v34 = vsel %vm1739_vm8, %v1737_v24, 0.0 }
 0x18b   : > { %v1741_v35 = vadd.f32 %v1740_v34, %v1738_v15 }
 0x18d   : > { %v1742_v36 = vrot.slane %v1741_v35, 4 }
 0x18f   : > { %v1743_v37 = vadd.f32 %v1742_v36, %v1741_v35 }
 0x191   : > { %v1744_v38 = vrot.slane %v1743_v37, 2 }
 0x193   : > { %v1745_v39 = vadd.f32 %v1744_v38, %v1743_v37 }
 0x195   : > { %v1746_v40 = vrot.slane %v1745_v39, 1 }
 0x197   : > { %v1747_v41 = vadd.f32 %v1746_v40, %v1745_v39 }
 0x199   : > { %v1748_v42 = vmul.f32 0.11111111, %v1747_v41 }
 0x19b   : > { %v1749_v43 = vsub.f32 %v1714_v60, %v1748_v42  ;;  %v1750_v44 = vsub.f32 %v1715_v12, %v1748_v42  ;;  %v1751_v45 = vsub.f32 %v1716_v33, %v1748_v42 }
 0x19d   : > { %v1752_v46 = vmul.f32 %v1749_v43, %v1723_v63  ;;  %v1753_v47 = vmul.f32 %v1750_v44, %v1728_v11  ;;  %v1754_v48 = vmul.f32 %v1751_v45, %v1733_v22 }
 0x19f   : > { %v1755_v49 = vmul.f32 %v1752_v46, %v1752_v46  ;;  %v1756_v50 = vmul.f32 %v1753_v47, %v1753_v47  ;;  %v1757_v51 = vmul.f32 %v1754_v48, %v1754_v48 }
 0x1a1   : > { %v1758_v52 = vadd.f32 %v1756_v50, %v1755_v49  ;;  %v1759_v53 = vsel %vm1739_vm8, %v1757_v51, 0.0 }
 0x1a3   : > { %v1760_v54 = vadd.f32 %v1759_v53, %v1758_v52 }
 0x1a5   : > { %v1761_v55 = vrot.slane %v1760_v54, 4 }
 0x1a7   : > { %v1762_v56 = vadd.f32 %v1761_v55, %v1760_v54 }
 0x1a9   : > { %v1763_v57 = vrot.slane %v1762_v56, 2 }
 0x1ab   : > { %v1764_v58 = vadd.f32 %v1763_v57, %v1762_v56 }
 0x1ad   : > { %v1765_v59 = vrot.slane %v1764_v58, 1 }
 0x1af   : > { %v1766_v61 = vadd.f32 %v1765_v59, %v1764_v58 }
 0x1b1   : > { %v1767_v62 = vmul.f32 0.11111111, %v1766_v61 }
 0x1b3   : > { %v1768_v0 = vadd.f32 1e-05, %v1767_v62 }
 0x1b5   : > { %2227 = vrsqrt.f32 %v1768_v0 }
 0x1bf   : > { %v2228_v63 = vpop.eup %2227 }
 0x1c0   : > { %v1770_v1 = vmul.f32 %v2228_v63, %v1749_v43  ;;  %v1771_v2 = vmul.f32 %v2228_v63, %v1750_v44  ;;  %v1772_v3 = vmul.f32 %v2228_v63, %v1751_v45 }
 0x1c2   : > { %vm1773_vm9 = vcmp.ge.f32.partialorder %v1770_v1, 0.0  ;;  %vm1774_vm10 = vcmp.ge.f32.partialorder %v1771_v2, 0.0  ;;  %vm1775_vm11 = vcmp.ge.f32.partialorder %v1772_v3, 0.0  ;;  %v1776_v4 = vmul.f32 0.2, %v1770_v1 }
 0x1c3   : > { %v1777_v5 = vmul.f32 0.2, %v1771_v2  ;;  %v1778_v6 = vmul.f32 0.2, %v1772_v3 }
 0x1c4   : > { %v1779_v7 = vsel %vm1773_vm9, %v1770_v1, %v1776_v4 }
 0x1c5   : > { %v1780_v60 = vsel %vm1774_vm10, %v1771_v2, %v1777_v5  ;;  %v1781_v9 = vsel %vm1775_vm11, %v1772_v3, %v1778_v6 }
 0x1c6   : > { %v2000_v11 = vpack.c.bf16 %v1781_v9, %v1781_v9  ;;  %v2004_v12 = vpack.c.bf16 %v1780_v60, %v1779_v7 }
 0x1c8   : > { %2005 = vst [vmem:[%s217_s22] sm:$0xff] %v2004_v12   ;;  %1797 = vst [vmem:[%s217_s22 + $0x8] sm:$0x1] %v2000_v11 }
 0x1c9 PF: > { %s14_s17 = sadd.s32 1, %s2251_s17   ;;  %s2475_s15 = smov %s2247_s16 }
 0x1ca   : > { %p11_p5 = scmp.ge.s32.totalorder %s14_s17, 4   ;;  %s2476_s16 = smov %s2478_s18 }
 0x1cc   :  { %13 = sbr.rel (!%p11_p5) target bundleno = 2 (0x2), region = 81 }

// kernel: _lambda_.7
= control target key start
LH: loop header
LB: loop body
LE: loop exit
PB: predicated region body
PF: predicated region fallthrough
CT: control target
= control target key end

     0   :  { %s2018_s15 = smov 0   ;;  %s2020_s16 = smov 0   ;;  %s2263_s0 = inlined_call_operand.vmem [shape: bf16[2,28,32], index: 0, kind: input, shape index: {}]   ;;  %s2264_s1 = inlined_call_operand.vmem [shape: bf16[16,32,128], index: 1, kind: input, shape index: {}]   ;;  %s2265_s2 = inlined_call_operand.vmem [shape: f32[1,128], index: 2, kind: input, shape index: {}]   ;;  %s2266_s3 = inlined_call_operand.vmem [shape: f32[10,1], index: 3, kind: input, shape index: {}]   ;;  %s2267_s4 = inlined_call_operand.vmem [shape: f32[2,10,128], index: 4, kind: output, shape index: {}]  }
   0x1   :  { %s2022_s17 = smov 0  }
   0x2 LB: > { %s26_s3 = sadd.s32 1, %s1985_s16  ;;  %p1579_p0 = scmp.ge.s32.totalorder %s1989_s17, 1  ;;  %s1989_s17 = sphi %s2022_s17, %s14_s17   ;;  %s1985_s16 = sphi %s2020_s16, %s2269_s16   ;;  %s1981_s15 = sphi %s2018_s15, %s2268_s15  }
   0x3   : > { %p28_p1 = scmp.ge.s32.totalorder %s26_s3, 2  ;;  %p176_p2 = scmp.lt.s32.totalorder %s1989_s17, 3 }
   0x5   : > { %s2271_s3 = smov (%p28_p1, %s26_s3), 0  ;;  %p177_p3 = pnand %p1579_p0, %p176_p2 }
   0x6   : > { %v1917_v0 = vld [vmem:[%s2264_s1] sm:$0xff] (!%p177_p3)   ;;  %v1991_v1 = vmov (!%p177_p3), 0.0   ;;  %v1918_v2 = vld [vmem:[%s2264_s1 + $0x8] sm:$0xff] (!%p177_p3)   ;;  %v1919_v3 = vld [vmem:[%s2264_s1 + $0x10] sm:$0xff] (!%p177_p3)   ;;  %vm1992_vm0 = vmmov (!%p177_p3), 0   ;;  %p205_p4 = scmp.lt.s32.totalorder (!%p177_p3), %s1981_s15, 1 }
   0x7   : > { %180 = sbr.rel (%p177_p3) target bundleno = 393 (0x189), region = 36  ;;  %1763 = vmatprep.subr.bf16.mxu0 (!%p177_p3), %v1991_v1  ;;  %1771 = vmatprep.subr.bf16.mxu1 (!%p177_p3), %v1991_v1  ;;  %v1921_v4 = vld [vmem:[%s2264_s1 + $0x18] sm:$0xff] (!%p177_p3)   ;;  %vm242_vm1 = vcmask (!%p177_p3), 261120   ;;  %v1923_v5 = vld [vmem:[%s2264_s1 + $0x20] sm:$0xff] (!%p177_p3)   ;;  %v1924_v8 = vld [vmem:[%s2264_s1 + $0x28] sm:$0xff] (!%p177_p3)  }
   0x8   : > { %1764 = vmatpush3.bf16.msra.mxu0 (!%p177_p3), %v1917_v0  ;;  %1767 = vmatprep.mubr.msk.bf16.mxu0 (!%p177_p3), %vm1992_vm0, %v1991_v1  ;;  %v1926_v12 = vld [vmem:[%s2264_s1 + $0x30] sm:$0xff] (!%p177_p3)   ;;  %v1929_v22 = vld [vmem:[%s2264_s1 + $0x40] sm:$0xff] (!%p177_p3)   ;;  %v1927_v25 = vld [vmem:[%s2264_s1 + $0x38] sm:$0xff] (!%p177_p3)   ;;  %vm700_vm2 = vsmask.f32 (!%p177_p3), 4352 }
   0x9   : > { %1765 = vmatprep.subr.bf16.mxu0 (!%p177_p3), %v1991_v1  ;;  %1775 = vmatprep.mubr.msk.bf16.mxu1 (!%p177_p3), %vm1992_vm0, %v1991_v1  ;;  %v1930_v28 = vld [vmem:[%s2264_s1 + $0x48] sm:$0xff] (!%p177_p3)   ;;  %v1932_v30 = vld [vmem:[%s2264_s1 + $0x50] sm:$0xff] (!%p177_p3)   ;;  %v1935_v34 = vld [vmem:[%s2264_s1 + $0x60] sm:$0xff] (!%p177_p3)  }
   0xa   : > { %1772 = vmatpush3.bf16.msra.mxu1 (!%p177_p3), %v1919_v3  ;;  %v1933_v39 = vld [vmem:[%s2264_s1 + $0x58] sm:$0xff] (!%p177_p3)   ;;  %v1936_v43 = vld [vmem:[%s2264_s1 + $0x68] sm:$0xff] (!%p177_p3)   ;;  %v1939_v46 = vld [vmem:[%s2264_s1 + $0x70] sm:$0xff] (!%p177_p3)  }
   0xb   : > { %1773 = vmatprep.subr.bf16.mxu1 (!%p177_p3), %v1991_v1  ;;  %v1940_v48 = vld [vmem:[%s2264_s1 + $0x78] sm:$0xff] (!%p177_p3)   ;;  %v1942_v49 = vld [vmem:[%s2264_s1 + $0x80] sm:$0xff] (!%p177_p3)   ;;  %v1943_v53 = vld [vmem:[%s2264_s1 + $0x88] sm:$0xff] (!%p177_p3)  }
   0xc   : > { %1766 = vmatpush3.bf16.msra.mxu0 (!%p177_p3), %v1918_v2  ;;  %v1945_v57 = vld [vmem:[%s2264_s1 + $0x90] sm:$0xff] (!%p177_p3)   ;;  %v1946_v59 = vld [vmem:[%s2264_s1 + $0x98] sm:$0xff] (!%p177_p3)   ;;  %v1948_v60 = vld [vmem:[%s2264_s1 + $0xa0] sm:$0xff] (!%p177_p3)  }
   0xd   : > { %1779 = vmatprep.subr.bf16.mxu0 (!%p177_p3), %v1991_v1 }
   0xe   : > { %s2273_s15 = smov (!%p205_p4, %s1981_s15), 1  ;;  %1774 = vmatpush3.bf16.msra.mxu1 %v1921_v4  ;;  %v1949_v4 = vld [vmem:[%s2264_s1 + $0xa8] sm:$0xff]  }
   0xf   : > { %s1713_s26 = sshll.u32 %s2273_s15, 4  ;;  %1787 = vmatprep.subr.bf16.mxu1 %v1991_v1 }
  0x10   : > { %s2064_s29 = scalar_lea.vmem %s2263_s0, %s1713_s26  ;;  %s2250_s24 = scalar_lea.vmem %s2267_s4, %s1713_s26 }
  0x11   : > { %v1920_v6 = vld [vmem:[%s2064_s29] sm:$0x1f]   ;;  %v1938_v35 = vld [vmem:[%s2064_s29 + $0x8] ss:$0 sps:$4 sm:$0x11]  }
  0x12   : > { %v1922_v7 = vld [vmem:[%s2064_s29] sm:$0x3f]   ;;  %1768 = vmatmul.mubr.msk.bf16.vlgmr.msra.gmra.mrb[0].mxu0 %vm242_vm1, %v1920_v6  ;;  %v710_v38 = vshll.u32 %v1938_v35, 16  ;;  %v1953_v58 = vld [vmem:[%s2064_s29 + $0x4] sm:$0xfc]   ;;  %v1965_v35 = vld [vmem:[%s2264_s1 + $0xf8] sm:$0xff]  }
  0x13   : > { %v1925_v9 = vld [vmem:[%s2064_s29] sm:$0x3e]   ;;  %v302_v10 = vshrl.u32 %v1922_v7, 16  ;;  %v304_v11 = vshll.u32 %v1922_v7, 16  ;;  %1780 = vmatpush3.bf16.msra.mxu0 %v1923_v5  ;;  %1783 = vmatprep.mubr.msk.bf16.mxu0 %vm1992_vm0, %v1991_v1  ;;  %v1950_v63 = vld [vmem:[%s2064_s29 + $0x4] sm:$0x7c]  }
  0x14   : > { %1781 = vmatprep.subr.bf16.mxu0 %v1991_v1  ;;  %v1928_v13 = vld [vmem:[%s2064_s29] sm:$0x7e]   ;;  %v382_v15 = vrot.slane %v1925_v9, 1  ;;  %v712_v45 = vrot.slane %v710_v38, 4  ;;  %v1095_v0 = vshrl.u32 %v1953_v58, 16  ;;  %v1098_v2 = vshll.u32 %v1953_v58, 16 }
  0x15   : > { %v306_v14 = vrot.slane %v304_v11, 1  ;;  %v458_v16 = vshrl.u32 %v1928_v13, 16  ;;  %v461_v17 = vshll.u32 %v1928_v13, 16  ;;  %v1931_v19 = vld [vmem:[%s2064_s29] sm:$0xfc]   ;;  %v1019_v9 = vrot.slane %v1950_v63, 2 }
  0x16   : > { %v540_v23 = vshrl.u32 %v1931_v19, 16  ;;  %v543_v24 = vshll.u32 %v1931_v19, 16  ;;  %v1934_v31 = vld [vmem:[%s2064_s29] sm:$0xf8]   ;;  %v1097_v11 = vrot.slane %v1095_v0, 2  ;;  %v1955_v19 = vld [vmem:[%s2264_s1 + $0xc8] sm:$0xff]  }
  0x17   : > { %v307_v18 = vor.u32 %v306_v14, %v302_v10  ;;  %1782 = vmatpush3.bf16.msra.mxu0 %v1924_v8  ;;  %v460_v20 = vrot.slane %v458_v16, 1  ;;  %v463_v21 = vrot.slane %v461_v17, 2  ;;  %v1937_v32 = vld [vmem:[%s2064_s29] sm:$0xf8]   ;;  %v621_v42 = vrot.slane %v1934_v31, 3  ;;  %v1951_v10 = vld [vmem:[%s2264_s1 + $0xb0] sm:$0xff]  }
  0x18   : > { %1795 = vmatprep.subr.bf16.mxu0 %v1991_v1  ;;  %v542_v26 = vrot.slane %v540_v23, 2  ;;  %v545_v27 = vrot.slane %v543_v24, 3  ;;  %v702_v36 = vshrl.u32 %v1937_v32, 16  ;;  %v705_v37 = vshll.u32 %v1937_v32, 16  ;;  %v1947_v50 = vld [vmem:[%s2064_s29 + $0x4] sm:$0x7e]  }
  0x19   : > { %1776 = vmatmul.mubr.msk.bf16.vlgmr.msra.gmra.mrb[0].mxu1 %vm242_vm1, %v307_v18  ;;  %v464_v29 = vor.u32 %v463_v21, %v460_v20  ;;  %v1944_v51 = vld [vmem:[%s2064_s29 + $0x4] sm:$0x3e]   ;;  %v938_v54 = vshrl.u32 %v1947_v50, 16  ;;  %v941_v55 = vshll.u32 %v1947_v50, 16  ;;  %v1952_v17 = vld [vmem:[%s2264_s1 + $0xb8] sm:$0xff]   ;;  %v1958_v23 = vld [vmem:[%s2264_s1 + $0xd0] sm:$0xff]  }
  0x1a   : > { %1784 = vmatmul.mubr.msk.bf16.vlgmr.msra.gmra.mrb[4].mxu0 %vm242_vm1, %v382_v15  ;;  %1788 = vmatpush3.bf16.msra.mxu1 %v1926_v12  ;;  %v546_v33 = vor.u32 %v545_v27, %v542_v26  ;;  %v704_v40 = vrot.slane %v702_v36, 3  ;;  %v707_v41 = vrot.slane %v705_v37, 4  ;;  %v1941_v52 = vld [vmem:[%s2064_s29 + $0x4] sm:$0x1f]   ;;  %v862_v56 = vrot.slane %v1944_v51, 1  ;;  %v1959_v27 = vld [vmem:[%s2264_s1 + $0xd8] sm:$0xff]  }
  0x1b   : > { %1789 = vmatprep.subr.bf16.mxu1 %v1991_v1  ;;  %1791 = vmatprep.mubr.msk.bf16.mxu1 %vm1992_vm0, %v1991_v1  ;;  %v940_v61 = vrot.slane %v938_v54, 1  ;;  %v943_v62 = vrot.slane %v941_v55, 2  ;;  %v1956_v3 = vld [vmem:[%s2064_s29 + $0x4] sm:$0xf8]   ;;  %v1100_v12 = vrot.slane %v1098_v2, 3  ;;  %v1964_v32 = vld [vmem:[%s2264_s1 + $0xf0] sm:$0xff]  }
  0x1c   : > { %1796 = vmatpush3.bf16.msra.mxu0 %v1929_v22  ;;  %1799 = vmatprep.mubr.msk.bf16.mxu0 %vm1992_vm0, %v1991_v1  ;;  %v708_v44 = vor.u32 %v707_v41, %v704_v40  ;;  %v1957_v5 = vld [vmem:[%s2064_s29 + $0xc] ss:$0 sps:$4 sm:$0x11]   ;;  %v1181_v7 = vshrl.u32 %v1956_v3, 16  ;;  %v1184_v8 = vshll.u32 %v1956_v3, 16  ;;  %v1954_v13 = vld [vmem:[%s2264_s1 + $0xc0] sm:$0xff]  }
  0x1d   : > { %1797 = vmatprep.subr.bf16.mxu0 %v1991_v1  ;;  %v944_v6 = vor.u32 %v943_v62, %v940_v61  ;;  %v1189_v14 = vshll.u32 %v1957_v5, 16  ;;  %v1963_v18 = vld [vmem:[%s2064_s29 + $0x8] sm:$0x3f]   ;;  %v1101_v22 = vor.u32 %v1100_v12, %v1097_v11  ;;  %v1961_v26 = vld [vmem:[%s2264_s1 + $0xe0] sm:$0xff]  }
  0x1e   : > { %1790 = vmatpush3.bf16.msra.mxu1 %v1927_v25  ;;  %v713_v47 = vsel %vm700_vm2, %v708_v44, %v712_v45  ;;  %v1183_v15 = vrot.slane %v1181_v7, 3  ;;  %v1186_v16 = vrot.slane %v1184_v8, 4  ;;  %v1344_v24 = vshll.u32 %v1963_v18, 16  ;;  %v1960_v31 = vld [vmem:[%s2064_s29 + $0x8] sm:$0x1f]  }
  0x1f   : > { %1803 = vmatprep.subr.bf16.mxu1 %v1991_v1  ;;  %v1191_v21 = vrot.slane %v1189_v14, 4 }
  0x20   : > { %1798 = vmatpush3.bf16.msra.mxu0 %v1930_v28  ;;  %v1187_v20 = vor.u32 %v1186_v16, %v1183_v15  ;;  %v1342_v28 = vshrl.u32 %v1963_v18, 16 }
  0x21   : > { %1792 = vmatmul.mubr.msk.bf16.vlgmr.msra.gmra.mrb[4].mxu1 %vm242_vm1, %v464_v29  ;;  %1811 = vmatprep.subr.bf16.mxu0 %v1991_v1  ;;  %v1346_v29 = vrot.slane %v1344_v24, 1 }
  0x22   : > { %1804 = vmatpush3.bf16.msra.mxu1 %v1932_v30  ;;  %1807 = vmatprep.mubr.msk.bf16.mxu1 %vm1992_vm0, %v1991_v1  ;;  %v1192_v25 = vsel %vm700_vm2, %v1187_v20, %v1191_v21  ;;  %v1962_v30 = vld [vmem:[%s2264_s1 + $0xe8] sm:$0xff]  }
  0x23   : > { %1800 = vmatmul.mubr.msk.bf16.vlgmr.msra.gmra.mrb[8].mxu0 %vm242_vm1, %v546_v33  ;;  %1805 = vmatprep.subr.bf16.mxu1 %v1991_v1  ;;  %v1347_v33 = vor.u32 %v1346_v29, %v1342_v28 }
  0x24   : > { %1812 = vmatpush3.bf16.msra.mxu0 %v1935_v34  ;;  %1815 = vmatprep.mubr.msk.bf16.mxu0 %vm1992_vm0, %v1991_v1  ;;  %v1966_v34 = vld [vmem:[%s2064_s29 + $0x8] sm:$0x3e]  }
  0x25   : > { %1813 = vmatprep.subr.bf16.mxu0 %v1991_v1  ;;  %v1422_v36 = vrot.slane %v1966_v34, 1 }
  0x26   : > { %1806 = vmatpush3.bf16.msra.mxu1 %v1933_v39 }
  0x27   : > { %1819 = vmatprep.subr.bf16.mxu1 %v1991_v1 }
  0x28   : > { %1814 = vmatpush3.bf16.msra.mxu0 %v1936_v43 }
  0x29   : > { %1808 = vmatmul.mubr.msk.bf16.vlgmr.msra.gmra.mrb[8].mxu1 %vm242_vm1, %v621_v42  ;;  %1827 = vmatprep.subr.bf16.mxu0 %v1991_v1 }
  0x2a   : > { %1820 = vmatpush3.bf16.msra.mxu1 %v1939_v46  ;;  %1823 = vmatprep.mubr.msk.bf16.mxu1 %vm1992_vm0, %v1991_v1 }
  0x2b   : > { %1816 = vmatmul.mubr.msk.bf16.vlgmr.msra.gmra.mrb[12].mxu0 %vm242_vm1, %v713_v47  ;;  %1821 = vmatprep.subr.bf16.mxu1 %v1991_v1 }
  0x2c   : > { %1828 = vmatpush3.bf16.msra.mxu0 %v1942_v49  ;;  %1831 = vmatprep.mubr.msk.bf16.mxu0 %vm1992_vm0, %v1991_v1 }
  0x2d   : > { %1829 = vmatprep.subr.bf16.mxu0 %v1991_v1 }
  0x2e   : > { %1822 = vmatpush3.bf16.msra.mxu1 %v1940_v48 }
  0x2f   : > { %1835 = vmatprep.subr.bf16.mxu1 %v1991_v1 }
  0x30   : > { %1830 = vmatpush3.bf16.msra.mxu0 %v1943_v53 }
  0x31   : > { %1824 = vmatmul.mubr.msk.bf16.vlgmr.msra.gmra.mrb[12].mxu1 %vm242_vm1, %v1941_v52  ;;  %1843 = vmatprep.subr.bf16.mxu0 %v1991_v1 }
  0x32   : > { %1836 = vmatpush3.bf16.msra.mxu1 %v1945_v57  ;;  %1839 = vmatprep.mubr.msk.bf16.mxu1 %vm1992_vm0, %v1991_v1 }
  0x33   : > { %1832 = vmatmul.mubr.msk.bf16.vlgmr.msra.gmra.mrb[16].mxu0 %vm242_vm1, %v862_v56  ;;  %1837 = vmatprep.subr.bf16.mxu1 %v1991_v1 }
  0x34   : > { %1844 = vmatpush3.bf16.msra.mxu0 %v1948_v60  ;;  %1847 = vmatprep.mubr.msk.bf16.mxu0 %vm1992_vm0, %v1991_v1 }
  0x35   : > { %1845 = vmatprep.subr.bf16.mxu0 %v1991_v1 }
  0x36   : > { %1838 = vmatpush3.bf16.msra.mxu1 %v1946_v59 }
  0x37   : > { %1851 = vmatprep.subr.bf16.mxu1 %v1991_v1 }
  0x38   : > { %1846 = vmatpush3.bf16.msra.mxu0 %v1949_v4 }
  0x39   : > { %1840 = vmatmul.mubr.msk.bf16.vlgmr.msra.gmra.mrb[16].mxu1 %vm242_vm1, %v944_v6  ;;  %1859 = vmatprep.subr.bf16.mxu0 %v1991_v1 }
  0x3a   : > { %1852 = vmatpush3.bf16.msra.mxu1 %v1951_v10  ;;  %1855 = vmatprep.mubr.msk.bf16.mxu1 %vm1992_vm0, %v1991_v1 }
  0x3b   : > { %1848 = vmatmul.mubr.msk.bf16.vlgmr.msra.gmra.mrb[20].mxu0 %vm242_vm1, %v1019_v9  ;;  %1853 = vmatprep.subr.bf16.mxu1 %v1991_v1 }
  0x3c   : > { %1860 = vmatpush3.bf16.msra.mxu0 %v1954_v13  ;;  %1863 = vmatprep.mubr.msk.bf16.mxu0 %vm1992_vm0, %v1991_v1 }
  0x3d   : > { %1861 = vmatprep.subr.bf16.mxu0 %v1991_v1 }
  0x3e   : > { %1854 = vmatpush3.bf16.msra.mxu1 %v1952_v17 }
  0x3f   : > { %1867 = vmatprep.subr.bf16.mxu1 %v1991_v1 }
  0x40   : > { %1862 = vmatpush3.bf16.msra.mxu0 %v1955_v19 }
  0x41   : > { %1856 = vmatmul.mubr.msk.bf16.vlgmr.msra.gmra.mrb[20].mxu1 %vm242_vm1, %v1101_v22  ;;  %1875 = vmatprep.subr.bf16.mxu0 %v1991_v1 }
  0x42   : > { %1868 = vmatpush3.bf16.msra.mxu1 %v1958_v23  ;;  %1871 = vmatprep.mubr.msk.bf16.mxu1 %vm1992_vm0, %v1991_v1 }
  0x43   : > { %1864 = vmatmul.mubr.msk.bf16.vlgmr.msra.gmra.mrb[24].mxu0 %vm242_vm1, %v1192_v25  ;;  %1869 = vmatprep.subr.bf16.mxu1 %v1991_v1 }
  0x44   : > { %1876 = vmatpush3.bf16.msra.mxu0 %v1961_v26  ;;  %1879 = vmatprep.mubr.msk.bf16.mxu0 %vm1992_vm0, %v1991_v1 }
  0x45   : > { %1877 = vmatprep.subr.bf16.mxu0 %v1991_v1 }
  0x46   : > { %1870 = vmatpush3.bf16.msra.mxu1 %v1959_v27 }
  0x47   : > { %1883 = vmatprep.subr.bf16.mxu1 %v1991_v1 }
  0x48   : > { %1878 = vmatpush3.bf16.msra.mxu0 %v1962_v30 }
  0x49   : > { %1872 = vmatmul.mubr.msk.bf16.vlgmr.msra.gmra.mrb[24].mxu1 %vm242_vm1, %v1960_v31 }
  0x4a   : > { %1884 = vmatpush3.bf16.msra.mxu1 %v1964_v32  ;;  %1887 = vmatprep.mubr.msk.bf16.mxu1 %vm1992_vm0, %v1991_v1 }
  0x4b   : > { %1880 = vmatmul.mubr.msk.bf16.vlgmr.msra.gmra.mrb[28].mxu0 %vm242_vm1, %v1347_v33  ;;  %1885 = vmatprep.subr.bf16.mxu1 %v1991_v1 }
  0x4e   : > { %1886 = vmatpush3.bf16.msra.mxu1 %v1965_v35 }
  0x51   : > { %1888 = vmatmul.mubr.msk.bf16.vlgmr.msra.gmra.mrb[28].mxu1 %vm242_vm1, %v1422_v36 }
  0xe5   : > { %v280_v37 = vpop.f32.mrb[0].mxu0 }
  0xe6   : > { %v1769_v38 = vpop.f32.mrb[1].mxu0 }
  0xe7   : > { %v283_v39 = vpop.f32.mrb[2].mxu0 }
  0xe8   : > { %288 = vst [vmem:[#allocation2 + $0x8] sm:$0x3] %v283_v39  ;;  %v1770_v40 = vpop.f32.mrb[3].mxu0 }
  0xec   : > { %v357_v41 = vpop.f32.mrb[0].mxu1 }
  0xed   : > { %v366_v42 = vadd.f32 %v357_v41, %v280_v37  ;;  %v1777_v43 = vpop.f32.mrb[1].mxu1  ;;  %v432_v44 = vpop.f32.mrb[4].mxu0 }
  0xee   : > { %v360_v45 = vpop.f32.mrb[2].mxu1  ;;  %v1785_v46 = vpop.f32.mrb[5].mxu0 }
  0xef   : > { %v365_v47 = vld [vmem:[#allocation2 + $0x8] sm:$0x3]  ;;  %v1778_v48 = vpop.f32.mrb[3].mxu1  ;;  %v441_v49 = vadd.f32 %v432_v44, %v366_v42  ;;  %v435_v50 = vpop.f32.mrb[6].mxu0 }
  0xf0   : > { %v367_v1 = vadd.f32 %v365_v47, %v360_v45  ;;  %v1786_v51 = vpop.f32.mrb[7].mxu0 }
  0xf2   : > { %369 = vst [vmem:[#allocation2 + $0x8] sm:$0x3] %v367_v1 }
  0xf4   : > { %v514_v52 = vpop.f32.mrb[4].mxu1 }
  0xf5   : > { %v523_v53 = vadd.f32 %v514_v52, %v441_v49  ;;  %v1793_v54 = vpop.f32.mrb[5].mxu1 }
  0xf6   : > { %v517_v55 = vpop.f32.mrb[6].mxu1  ;;  %v596_v56 = vpop.f32.mrb[8].mxu0 }
  0xf7   : > { %v1794_v57 = vpop.f32.mrb[7].mxu1  ;;  %v605_v58 = vadd.f32 %v596_v56, %v523_v53  ;;  %v1801_v59 = vpop.f32.mrb[9].mxu0 }
  0xf8   : > { %v599_v60 = vpop.f32.mrb[10].mxu0  ;;  %v1710_v59 = vld [vmem:[%s2265_s2] ss:$0 sm:$0xff] }
  0xf9   : > { %v440_v61 = vld [vmem:[#allocation2 + $0x8] sm:$0x3]  ;;  %v1802_v62 = vpop.f32.mrb[11].mxu0 }
  0xfa   : > { %v442_v63 = vadd.f32 %v440_v61, %v435_v50 }
  0xfc   : > { %444 = vst [vmem:[#allocation2 + $0x8] sm:$0x3] %v442_v63  ;;  %v671_v0 = vpop.f32.mrb[8].mxu1 }
  0xfd   : > { %v680_v2 = vadd.f32 %v671_v0, %v605_v58  ;;  %v1809_v3 = vpop.f32.mrb[9].mxu1 }
  0xfe   : > { %v674_v4 = vpop.f32.mrb[10].mxu1  ;;  %v763_v5 = vpop.f32.mrb[12].mxu0 }
  0xff   : > { %v1810_v6 = vpop.f32.mrb[11].mxu1  ;;  %v772_v7 = vadd.f32 %v763_v5, %v680_v2  ;;  %v1817_v8 = vpop.f32.mrb[13].mxu0 }
 0x100   : > { %v766_v9 = vpop.f32.mrb[14].mxu0 }
 0x101   : > { %v1818_v10 = vpop.f32.mrb[15].mxu0 }
 0x103   : > { %v522_v11 = vld [vmem:[#allocation2 + $0x8] sm:$0x3] }
 0x104   : > { %v524_v12 = vadd.f32 %v522_v11, %v517_v55  ;;  %v837_v13 = vpop.f32.mrb[12].mxu1 }
 0x105   : > { %v846_v14 = vadd.f32 %v837_v13, %v772_v7  ;;  %v1825_v15 = vpop.f32.mrb[13].mxu1 }
 0x106   : > { %526 = vst [vmem:[#allocation2 + $0x8] sm:$0x3] %v524_v12  ;;  %v840_v16 = vpop.f32.mrb[14].mxu1  ;;  %v912_v17 = vpop.f32.mrb[16].mxu0 }
 0x107   : > { %v1826_v18 = vpop.f32.mrb[15].mxu1  ;;  %v921_v19 = vadd.f32 %v912_v17, %v846_v14  ;;  %v1833_v20 = vpop.f32.mrb[17].mxu0 }
 0x108   : > { %v915_v21 = vpop.f32.mrb[18].mxu0 }
 0x109   : > { %v1834_v22 = vpop.f32.mrb[19].mxu0 }
 0x10c   : > { %v994_v23 = vpop.f32.mrb[16].mxu1 }
 0x10d   : > { %v604_v24 = vld [vmem:[#allocation2 + $0x8] sm:$0x3]  ;;  %v1003_v25 = vadd.f32 %v994_v23, %v921_v19  ;;  %v1841_v26 = vpop.f32.mrb[17].mxu1 }
 0x10e   : > { %v606_v27 = vadd.f32 %v604_v24, %v599_v60  ;;  %v997_v28 = vpop.f32.mrb[18].mxu1  ;;  %v1069_v29 = vpop.f32.mrb[20].mxu0 }
 0x10f   : > { %v1842_v30 = vpop.f32.mrb[19].mxu1  ;;  %v1078_v31 = vadd.f32 %v1069_v29, %v1003_v25  ;;  %v1849_v32 = vpop.f32.mrb[21].mxu0 }
 0x110   : > { %608 = vst [vmem:[#allocation2 + $0x8] sm:$0x3] %v606_v27  ;;  %v1072_v33 = vpop.f32.mrb[22].mxu0 }
 0x111   : > { %v1850_v34 = vpop.f32.mrb[23].mxu0 }
 0x114   : > { %v1151_v35 = vpop.f32.mrb[20].mxu1 }
 0x115   : > { %v1160_v36 = vadd.f32 %v1151_v35, %v1078_v31  ;;  %v1857_v37 = vpop.f32.mrb[21].mxu1 }
 0x116   : > { %v1154_v38 = vpop.f32.mrb[22].mxu1  ;;  %v1242_v39 = vpop.f32.mrb[24].mxu0 }
 0x117   : > { %v679_v40 = vld [vmem:[#allocation2 + $0x8] sm:$0x3]  ;;  %v1858_v41 = vpop.f32.mrb[23].mxu1  ;;  %v1251_v42 = vadd.f32 %v1242_v39, %v1160_v36  ;;  %v1865_v43 = vpop.f32.mrb[25].mxu0 }
 0x118   : > { %v681_v44 = vadd.f32 %v679_v40, %v674_v4  ;;  %v1245_v45 = vpop.f32.mrb[26].mxu0 }
 0x119   : > { %v1866_v46 = vpop.f32.mrb[27].mxu0 }
 0x11a   : > { %683 = vst [vmem:[#allocation2 + $0x8] sm:$0x3] %v681_v44 }
 0x11c   : > { %v1316_v47 = vpop.f32.mrb[24].mxu1 }
 0x11d   : > { %v1325_v48 = vadd.f32 %v1316_v47, %v1251_v42  ;;  %v1873_v49 = vpop.f32.mrb[25].mxu1 }
 0x11e   : > { %v1319_v50 = vpop.f32.mrb[26].mxu1  ;;  %v1397_v1 = vpop.f32.mrb[28].mxu0 }
 0x11f   : > { %v1874_v51 = vpop.f32.mrb[27].mxu1  ;;  %v1406_v52 = vadd.f32 %v1397_v1, %v1325_v48  ;;  %v1881_v53 = vpop.f32.mrb[29].mxu0 }
 0x120   : > { %v1400_v54 = vpop.f32.mrb[30].mxu0 }
 0x121   : > { %v771_v55 = vld [vmem:[#allocation2 + $0x8] sm:$0x3]  ;;  %v1882_v56 = vpop.f32.mrb[31].mxu0 }
 0x122   : > { %v773_v57 = vadd.f32 %v771_v55, %v766_v9 }
 0x124   : > { %775 = vst [vmem:[#allocation2 + $0x8] sm:$0x3] %v773_v57  ;;  %v1472_v58 = vpop.f32.mrb[28].mxu1 }
 0x125   : > { %v1481_v60 = vadd.f32 %v1472_v58, %v1406_v52  ;;  %v1889_v61 = vpop.f32.mrb[29].mxu1 }
 0x126   : > { %v1475_v62 = vpop.f32.mrb[30].mxu1 }
 0x127   : > { %v1494_v63 = vadd.f32 %v1710_v59, %v1481_v60  ;;  %v1890_v0 = vpop.f32.mrb[31].mxu1 }
 0x129   : > { %1496 = vst [vmem:[%s2250_s24] sm:$0xff] %v1494_v63 }
 0x12b   : > { %v845_v2 = vld [vmem:[#allocation2 + $0x8] sm:$0x3] }
 0x12c   : > { %v847_v3 = vadd.f32 %v845_v2, %v840_v16 }
 0x12e   : > { %849 = vst [vmem:[#allocation2 + $0x8] sm:$0x3] %v847_v3 }
 0x135   : > { %v920_v4 = vld [vmem:[#allocation2 + $0x8] sm:$0x3] }
 0x136   : > { %v922_v5 = vadd.f32 %v920_v4, %v915_v21 }
 0x138   : > { %924 = vst [vmem:[#allocation2 + $0x8] sm:$0x3] %v922_v5 }
 0x13f   : > { %v1002_v6 = vld [vmem:[#allocation2 + $0x8] sm:$0x3] }
 0x140   : > { %v1004_v7 = vadd.f32 %v1002_v6, %v997_v28 }
 0x142   : > { %1006 = vst [vmem:[#allocation2 + $0x8] sm:$0x3] %v1004_v7 }
 0x149   : > { %v1077_v8 = vld [vmem:[#allocation2 + $0x8] sm:$0x3] }
 0x14a   : > { %v1079_v9 = vadd.f32 %v1077_v8, %v1072_v33 }
 0x14c   : > { %1081 = vst [vmem:[#allocation2 + $0x8] sm:$0x3] %v1079_v9 }
 0x153   : > { %v1159_v10 = vld [vmem:[#allocation2 + $0x8] sm:$0x3] }
 0x154   : > { %v1161_v11 = vadd.f32 %v1159_v10, %v1154_v38 }
 0x156   : > { %1163 = vst [vmem:[#allocation2 + $0x8] sm:$0x3] %v1161_v11 }
 0x15d   : > { %v1250_v12 = vld [vmem:[#allocation2 + $0x8] sm:$0x3] }
 0x15e   : > { %v1252_v13 = vadd.f32 %v1250_v12, %v1245_v45 }
 0x160   : > { %1254 = vst [vmem:[#allocation2 + $0x8] sm:$0x3] %v1252_v13 }
 0x167   : > { %v1324_v14 = vld [vmem:[#allocation2 + $0x8] sm:$0x3] }
 0x168   : > { %v1326_v15 = vadd.f32 %v1324_v14, %v1319_v50 }
 0x16a   : > { %1328 = vst [vmem:[#allocation2 + $0x8] sm:$0x3] %v1326_v15 }
 0x171   : > { %v1405_v16 = vld [vmem:[#allocation2 + $0x8] sm:$0x3] }
 0x172   : > { %v1407_v17 = vadd.f32 %v1405_v16, %v1400_v54 }
 0x174   : > { %1409 = vst [vmem:[#allocation2 + $0x8] sm:$0x3] %v1407_v17 }
 0x17b   : > { %v1480_v18 = vld [vmem:[#allocation2 + $0x8] sm:$0x3] }
 0x17c   : > { %v1482_v19 = vadd.f32 %v1480_v18, %v1475_v62 }
 0x17e   : > { %1484 = vst [vmem:[#allocation2 + $0x8] sm:$0x3] %v1482_v19 }
 0x185   : > { %v1486_v20 = vld [vmem:[#allocation2 + $0x8] sm:$0x3] }
 0x186   : > { %v1495_v21 = vadd.f32 %v1710_v59, %v1486_v20 }
 0x188   : > { %1497 = vst [vmem:[%s2250_s24 + $0x8] sm:$0x3] %v1495_v21 }
 0x189 PF: > { %s14_s17 = sadd.s32 1, %s1989_s17   ;;  %s2268_s15 = smov %s1985_s16 }
 0x18a   : > { %p11_p5 = scmp.ge.s32.totalorder %s14_s17, 4   ;;  %s2269_s16 = smov %s2271_s3 }
 0x18c   :  { %13 = sbr.rel (!%p11_p5) target bundleno = 2 (0x2), region = 81 }

</bundles_post_ra>
